<compile_context>
chip_gen: v7x
topology: tpu7x:2x2x1
jax: 0.10.0
libtpu: 0.0.40
codegen_flags: <defaults>
</compile_context>

<pallas_src>
import functools

import numpy as np

import jax
import jax.numpy as jnp
from jax.experimental import pallas as pl
from jax.experimental.pallas import tpu as pltpu


# ---------------------------------------------------------------------------
# Fused Pallas kernel: conv2 + conv3 + fc1 + fc2 + per-action softmax.
# One grid step processes a TB-row batch tile; every matmul is (TB, K)@(K, N).
# ---------------------------------------------------------------------------
def _c51_kernel(h1_ref, w2_ref, b2_ref, w3_ref, b3_ref,
                wfc1_ref, bfc1_ref, wfc2_ref, bfc2_ref,
                out_ref, *, num_actions, atom_pad, compute_dtype):
    f32 = jnp.float32
    cd = compute_dtype

    # conv2: gather + taps folded into one weight -> single matmul, K = C1*P1.
    h = jnp.dot(h1_ref[...], w2_ref[...], preferred_element_type=f32)
    h = jnp.maximum(h + b2_ref[...], 0.0).astype(cd)                 # (TB, P2*C2)

    # conv3: same folding, K = P2*C2.
    h = jnp.dot(h, w3_ref[...], preferred_element_type=f32)
    h = jnp.maximum(h + b3_ref[...], 0.0).astype(cd)                 # (TB, P3*C3)

    # fc1 (torch's NCHW flatten order is folded into the weight row layout).
    h = jnp.dot(h, wfc1_ref[...], preferred_element_type=f32)
    h = jnp.maximum(h + bfc1_ref[...], 0.0).astype(cd)               # (TB, 512)

    # fc2: ONE matmul to (TB, A*atom_pad).  Padded atom lanes have weight 0 and
    # bias -1e9, so they never win the max and their exp underflows to exactly 0.
    logits = jnp.dot(h, wfc2_ref[...], preferred_element_type=f32) + bfc2_ref[...]

    # Per-action softmax over 128-lane-aligned atom segments (exact normalization).
    for a in range(num_actions):
        lo = a * atom_pad
        seg = logits[:, lo:lo + atom_pad]                            # (TB, 128)
        m = jnp.max(seg, axis=-1, keepdims=True)
        e = jnp.exp(seg - m)
        s = jnp.sum(e, axis=-1, keepdims=True)
        out_ref[:, lo:lo + atom_pad] = (
            e * pl.reciprocal(s, approx=False)).astype(out_ref.dtype)


# ---------------------------------------------------------------------------
# One-time weight preprocessing (runs on <1 MB of parameters).
# ---------------------------------------------------------------------------
def _gather_mats(h_in, w_in, k, s):
    """0/1 selection tensor g[j, p_out, p_in] = 1 iff input position p_in is tap j
    (j = kh*k + kw) of output position p_out for a VALID conv with stride s."""
    h_out = (h_in - k) // s + 1
    w_out = (w_in - k) // s + 1
    g = np.zeros((k * k, h_out * w_out, h_in * w_in), np.float32)
    for kh in range(k):
        for kw in range(k):
            j = kh * k + kw
            for oh in range(h_out):
                for ow in range(w_out):
                    g[j, oh * w_out + ow, (oh * s + kh) * w_in + (ow * s + kw)] = 1.0
    return g, h_out, w_out


def _conv_taps(w):
    """(C_out, C_in, k, k) torch conv weight -> (k*k, C_in, C_out), tap j = kh*k + kw."""
    c_out, c_in, k, _ = w.shape
    return jnp.transpose(w, (2, 3, 1, 0)).reshape(k * k, c_in, c_out)


def _fold_conv_chw_rows(g, w_taps):
    """Folded conv weight with rows ordered (c_in, p_in)  -- matches an NCHW-flattened
    input -- and columns ordered (p_out, c_out).  Exact 0/1 placement of the taps."""
    big = jnp.einsum("jqp,jcd->cpqd", jnp.asarray(g), w_taps)
    ci, pi, po, co = big.shape
    return big.reshape(ci * pi, po * co)


def _fold_conv_hwc_rows(g, w_taps):
    """Folded conv weight with rows ordered (p_in, c_in) -- matches the previous layer's
    (p_out, c_out) column order -- and columns ordered (p_out, c_out)."""
    big = jnp.einsum("jqp,jcd->pcqd", jnp.asarray(g), w_taps)
    pi, ci, po, co = big.shape
    return big.reshape(pi * ci, po * co)


# ---------------------------------------------------------------------------
# Full Network.forward
# ---------------------------------------------------------------------------
def network_forward(params, x, num_actions, n_atom, *, batch_tile=128,
                    atom_pad=128, compute_dtype=jnp.bfloat16):
    assert n_atom <= atom_pad
    f32 = jnp.float32
    cd = compute_dtype
    B = x.shape[0]
    k1, s1, k2, s2, k3, s3 = 8, 4, 4, 2, 3, 1

    # ---- conv1 (+bias+ReLU) as one fused XLA conv; output NCHW-flattened to (B, C1*P1).
    h1 = jax.lax.conv_general_dilated(
        x.astype(cd), params["c1_w"].astype(cd), (s1, s1), "VALID",
        dimension_numbers=("NCHW", "OIHW", "NCHW"), preferred_element_type=f32)
    h1 = jax.nn.relu(h1 + params["c1_b"].astype(f32)[None, :, None, None])
    _, c1, ho1, wo1 = h1.shape
    p1 = ho1 * wo1
    h1_flat = h1.reshape(B, c1 * p1).astype(cd)          # free row-major reshape

    # ---- fold conv2 / conv3 gathers + taps into big matmul weights (exact).
    g2, ho2, wo2 = _gather_mats(ho1, wo1, k2, s2)
    w2_big = _fold_conv_chw_rows(g2, _conv_taps(params["c2_w"])).astype(cd)   # (C1*P1, P2*C2)
    c2 = params["c2_w"].shape[0]
    p2 = ho2 * wo2
    b2_big = jnp.tile(params["c2_b"].astype(f32), p2).reshape(1, p2 * c2)

    g3, ho3, wo3 = _gather_mats(ho2, wo2, k3, s3)
    w3_big = _fold_conv_hwc_rows(g3, _conv_taps(params["c3_w"])).astype(cd)   # (P2*C2, P3*C3)
    c3 = params["c3_w"].shape[0]
    p3 = ho3 * wo3
    b3_big = jnp.tile(params["c3_b"].astype(f32), p3).reshape(1, p3 * c3)

    # ---- fc1: reorder torch's NCHW-flatten rows (c3, p3) -> our (p3, c3) column order.
    fl = params["fc1_w"].shape[1]
    wfc1 = (params["fc1_w"].reshape(c3, p3, fl).transpose(1, 0, 2)
            .reshape(p3 * c3, fl).astype(cd))
    bfc1 = params["fc1_b"].reshape(1, fl).astype(f32)

    # ---- fc2: pad each action's atom block to atom_pad lanes (weight 0, bias -1e9).
    wfc2 = params["fc2_w"].reshape(fl, num_actions, n_atom)
    wfc2 = jnp.pad(wfc2, ((0, 0), (0, 0), (0, atom_pad - n_atom)))
    wfc2 = wfc2.reshape(fl, num_actions * atom_pad).astype(cd)
    bfc2 = params["fc2_b"].reshape(num_actions, n_atom)
    bfc2 = jnp.pad(bfc2, ((0, 0), (0, atom_pad - n_atom)), constant_values=-1e9)
    bfc2 = bfc2.reshape(1, num_actions * atom_pad).astype(f32)

    # ---- batch tile: multiple of 8 (sublane rule) and >=2 grid steps when possible.
    tb = int(min(batch_tile, B))
    if B % tb != 0 or (tb % 8 != 0 and tb != B):
        tb = B
    n_out = num_actions * atom_pad

    kernel = functools.partial(_c51_kernel, num_actions=num_actions,
                               atom_pad=atom_pad, compute_dtype=cd)

    def fullspec(arr):
        nd = arr.ndim
        return pl.BlockSpec(arr.shape, lambda i, _nd=nd: (0,) * _nd)

    flops = 2 * B * (w2_big.shape[0] * w2_big.shape[1]
                     + w3_big.shape[0] * w3_big.shape[1]
                     + wfc1.shape[0] * wfc1.shape[1]
                     + wfc2.shape[0] * wfc2.shape[1])
    weights = (w2_big, b2_big, w3_big, b3_big, wfc1, bfc1, wfc2, bfc2)
    bytes_accessed = (h1_flat.size * h1_flat.dtype.itemsize
                      + sum(int(a.size) * a.dtype.itemsize for a in weights)
                      + B * n_out * 4)

    out = pl.pallas_call(
        kernel,
        out_shape=jax.ShapeDtypeStruct((B, n_out), f32),
        grid_spec=pltpu.PrefetchScalarGridSpec(
            num_scalar_prefetch=0,
            grid=(B // tb,),
            in_specs=[
                pl.BlockSpec((tb, c1 * p1), lambda i: (i, 0)),   # per-tile activations
                fullspec(w2_big), fullspec(b2_big),
                fullspec(w3_big), fullspec(b3_big),
                fullspec(wfc1), fullspec(bfc1),
                fullspec(wfc2), fullspec(bfc2),
            ],
            out_specs=pl.BlockSpec((tb, n_out), lambda i: (i, 0)),
        ),
        compiler_params=pltpu.CompilerParams(
            dimension_semantics=("parallel",),
            vmem_limit_bytes=32 * 1024 * 1024,
        ),
        cost_estimate=pl.CostEstimate(
            flops=int(flops),
            transcendentals=int(B * n_out),
            bytes_accessed=int(bytes_accessed)),
    )(h1_flat, *weights)

    # Drop atom padding; expose (B, A, n_atom) like the PyTorch module.
    return out.reshape(B, num_actions, atom_pad)[:, :, :n_atom]


# ---------------------------------------------------------------------------
# Independent pure-JAX reference (lax.conv path) mirroring the kernel numerics
# (bf16 matmul inputs, f32 accumulation, f32 bias+ReLU epilogues).
# ---------------------------------------------------------------------------
def network_forward_ref(params, x, num_actions, n_atom, compute_dtype=jnp.bfloat16):
    cd = compute_dtype
    f32 = jnp.float32
    dn = ("NCHW", "OIHW", "NCHW")

    def conv(h, w, b, s):
        y = jax.lax.conv_general_dilated(
            h.astype(cd), w.astype(cd), (s, s), "VALID",
            dimension_numbers=dn, preferred_element_type=f32)
        return jax.nn.relu(y + b.astype(f32)[None, :, None, None])

    h = conv(x, params["c1_w"], params["c1_b"], 4)
    h = conv(h, params["c2_w"], params["c2_b"], 2)
    h = conv(h, params["c3_w"], params["c3_b"], 1)
    B = h.shape[0]
    h = h.reshape(B, -1)                                            # NCHW flatten
    h = jax.nn.relu(jnp.dot(h.astype(cd), params["fc1_w"].astype(cd),
                            preferred_element_type=f32) + params["fc1_b"])
    logits = jnp.dot(h.astype(cd), params["fc2_w"].astype(cd),
                     preferred_element_type=f32) + params["fc2_b"]
    return jax.nn.softmax(logits.reshape(B, num_actions, n_atom), axis=2)


if __name__ == "__main__":
    # Small shapes consistent with the module: 4 stacked frames, 36x36 spatial
    # (36 -> conv8/4 -> 8 -> conv4/2 -> 3 -> conv3/1 -> 1), batch=16, 6 actions, 51 atoms.
    B, C_in, H, W = 16, 4, 36, 36
    num_actions, n_atom = 6, 51
    depths, final_layer = (32, 64, 64), 512
    n_flatten = depths[2] * 1 * 1  # 64

    key = jax.random.PRNGKey(0)
    ks = jax.random.split(key, 11)
    x = jax.random.normal(ks[0], (B, C_in, H, W), jnp.float32)

    params = {
        "c1_w": 0.05 * jax.random.normal(ks[1], (depths[0], C_in, 8, 8), jnp.float32),
        "c1_b": 0.01 * jax.random.normal(ks[2], (depths[0],), jnp.float32),
        "c2_w": 0.05 * jax.random.normal(ks[3], (depths[1], depths[0], 4, 4), jnp.float32),
        "c2_b": 0.01 * jax.random.normal(ks[4], (depths[1],), jnp.float32),
        "c3_w": 0.05 * jax.random.normal(ks[5], (depths[2], depths[1], 3, 3), jnp.float32),
        "c3_b": 0.01 * jax.random.normal(ks[6], (depths[2],), jnp.float32),
        "fc1_w": 0.05 * jax.random.normal(ks[7], (n_flatten, final_layer), jnp.float32),
        "fc1_b": 0.01 * jax.random.normal(ks[8], (final_layer,), jnp.float32),
        "fc2_w": 0.05 * jax.random.normal(ks[9], (final_layer, num_actions * n_atom), jnp.float32),
        "fc2_b": 0.01 * jax.random.normal(ks[10], (num_actions * n_atom,), jnp.float32),
    }

    # batch_tile=8 -> 2 "parallel" grid steps (feeds both v7x TensorCores).
    fwd = jax.jit(functools.partial(network_forward, num_actions=num_actions,
                                    n_atom=n_atom, batch_tile=8))
    out = jax.block_until_ready(fwd(params, x))
    assert out.shape == (B, num_actions, n_atom)
    assert out.dtype == jnp.float32
    assert bool(jnp.all(jnp.isfinite(out)))

    ref = jax.block_until_ready(
        network_forward_ref(params, x, num_actions, n_atom))
    max_err = float(jnp.max(jnp.abs(out - ref)))
    assert jnp.allclose(out, ref, rtol=1e-2, atol=5e-3), max_err
    # exact normalization: per-action atom distributions sum to 1
    assert jnp.allclose(out.sum(axis=2), 1.0, atol=1e-3)

    print("KERNEL_OK")
</pallas_src>

<mosaic_0001>
module attributes {stable_mosaic.version = 11 : i64} {
  func.func @_c51_kernel(%arg0: i32, %arg1: memref<8x2048xbf16, #tpu.memory_space<vmem>>, %arg2: memref<2048x576xbf16, #tpu.memory_space<vmem>>, %arg3: memref<1x576xf32, #tpu.memory_space<vmem>>, %arg4: memref<576x64xbf16, #tpu.memory_space<vmem>>, %arg5: memref<1x64xf32, #tpu.memory_space<vmem>>, %arg6: memref<64x512xbf16, #tpu.memory_space<vmem>>, %arg7: memref<1x512xf32, #tpu.memory_space<vmem>>, %arg8: memref<512x768xbf16, #tpu.memory_space<vmem>>, %arg9: memref<1x768xf32, #tpu.memory_space<vmem>>, %arg10: memref<8x768xf32, #tpu.memory_space<vmem>>) attributes {dimension_semantics = [#tpu.dimension_semantics<parallel>], iteration_bounds = array<i64: 2>, scalar_prefetch = 0 : i64, scratch_operands = 0 : i64, tpu.core_type = #tpu.core_type<tc>, window_params = [{transform_indices = @transform_0, window_bounds = array<i64: 8, 2048>}, {pipeline_mode = #tpu.pipeline_mode<synchronous>, transform_indices = @transform_1, window_bounds = array<i64: 2048, 576>}, {pipeline_mode = #tpu.pipeline_mode<synchronous>, transform_indices = @transform_2, window_bounds = array<i64: 1, 576>}, {pipeline_mode = #tpu.pipeline_mode<synchronous>, transform_indices = @transform_3, window_bounds = array<i64: 576, 64>}, {pipeline_mode = #tpu.pipeline_mode<synchronous>, transform_indices = @transform_4, window_bounds = array<i64: 1, 64>}, {pipeline_mode = #tpu.pipeline_mode<synchronous>, transform_indices = @transform_5, window_bounds = array<i64: 64, 512>}, {pipeline_mode = #tpu.pipeline_mode<synchronous>, transform_indices = @transform_6, window_bounds = array<i64: 1, 512>}, {pipeline_mode = #tpu.pipeline_mode<synchronous>, transform_indices = @transform_7, window_bounds = array<i64: 512, 768>}, {pipeline_mode = #tpu.pipeline_mode<synchronous>, transform_indices = @transform_8, window_bounds = array<i64: 1, 768>}, {transform_indices = @transform_9, window_bounds = array<i64: 8, 768>}]} {
    %c0 = arith.constant 0 : index
    %c0_0 = arith.constant 0 : index
    %0 = vector.load %arg1[%c0, %c0_0] : memref<8x2048xbf16, #tpu.memory_space<vmem>>, vector<8x2048xbf16>
    %c0_1 = arith.constant 0 : index
    %c0_2 = arith.constant 0 : index
    %1 = vector.load %arg2[%c0_1, %c0_2] : memref<2048x576xbf16, #tpu.memory_space<vmem>>, vector<2048x576xbf16>
    %cst = arith.constant dense<0.000000e+00> : vector<8x576xf32>
    %2 = tpu.matmul %0, %1, %cst {dimension_numbers = #tpu.dot_dimension_numbers<[1], [0], [0], [1], [0, 0, 1, 1], [], []>} : vector<8x2048xbf16>, vector<2048x576xbf16>, vector<8x576xf32> -> vector<8x576xf32>
    %c0_3 = arith.constant 0 : index
    %c0_4 = arith.constant 0 : index
    %3 = vector.load %arg3[%c0_3, %c0_4] : memref<1x576xf32, #tpu.memory_space<vmem>>, vector<1x576xf32>
    %4 = vector.broadcast %3 : vector<1x576xf32> to vector<8x576xf32>
    %5 = arith.addf %2, %4 : vector<8x576xf32>
    %cst_5 = arith.constant 0.000000e+00 : f32
    %6 = vector.broadcast %cst_5 : f32 to vector<8x576xf32>
    %7 = arith.maximumf %5, %6 : vector<8x576xf32>
    %8 = arith.truncf %7 : vector<8x576xf32> to vector<8x576xbf16>
    %c0_6 = arith.constant 0 : index
    %c0_7 = arith.constant 0 : index
    %9 = vector.load %arg4[%c0_6, %c0_7] : memref<576x64xbf16, #tpu.memory_space<vmem>>, vector<576x64xbf16>
    %cst_8 = arith.constant dense<0.000000e+00> : vector<8x64xf32>
    %10 = tpu.matmul %8, %9, %cst_8 {dimension_numbers = #tpu.dot_dimension_numbers<[1], [0], [0], [1], [0, 0, 1, 1], [], []>} : vector<8x576xbf16>, vector<576x64xbf16>, vector<8x64xf32> -> vector<8x64xf32>
    %c0_9 = arith.constant 0 : index
    %c0_10 = arith.constant 0 : index
    %11 = vector.load %arg5[%c0_9, %c0_10] : memref<1x64xf32, #tpu.memory_space<vmem>>, vector<1x64xf32>
    %12 = vector.broadcast %11 : vector<1x64xf32> to vector<8x64xf32>
    %13 = arith.addf %10, %12 : vector<8x64xf32>
    %cst_11 = arith.constant 0.000000e+00 : f32
    %14 = vector.broadcast %cst_11 : f32 to vector<8x64xf32>
    %15 = arith.maximumf %13, %14 : vector<8x64xf32>
    %16 = arith.truncf %15 : vector<8x64xf32> to vector<8x64xbf16>
    %c0_12 = arith.constant 0 : index
    %c0_13 = arith.constant 0 : index
    %17 = vector.load %arg6[%c0_12, %c0_13] : memref<64x512xbf16, #tpu.memory_space<vmem>>, vector<64x512xbf16>
    %cst_14 = arith.constant dense<0.000000e+00> : vector<8x512xf32>
    %18 = tpu.matmul %16, %17, %cst_14 {dimension_numbers = #tpu.dot_dimension_numbers<[1], [0], [0], [1], [0, 0, 1, 1], [], []>} : vector<8x64xbf16>, vector<64x512xbf16>, vector<8x512xf32> -> vector<8x512xf32>
    %c0_15 = arith.constant 0 : index
    %c0_16 = arith.constant 0 : index
    %19 = vector.load %arg7[%c0_15, %c0_16] : memref<1x512xf32, #tpu.memory_space<vmem>>, vector<1x512xf32>
    %20 = vector.broadcast %19 : vector<1x512xf32> to vector<8x512xf32>
    %21 = arith.addf %18, %20 : vector<8x512xf32>
    %cst_17 = arith.constant 0.000000e+00 : f32
    %22 = vector.broadcast %cst_17 : f32 to vector<8x512xf32>
    %23 = arith.maximumf %21, %22 : vector<8x512xf32>
    %24 = arith.truncf %23 : vector<8x512xf32> to vector<8x512xbf16>
    %c0_18 = arith.constant 0 : index
    %c0_19 = arith.constant 0 : index
    %25 = vector.load %arg8[%c0_18, %c0_19] : memref<512x768xbf16, #tpu.memory_space<vmem>>, vector<512x768xbf16>
    %cst_20 = arith.constant dense<0.000000e+00> : vector<8x768xf32>
    %26 = tpu.matmul %24, %25, %cst_20 {dimension_numbers = #tpu.dot_dimension_numbers<[1], [0], [0], [1], [0, 0, 1, 1], [], []>} : vector<8x512xbf16>, vector<512x768xbf16>, vector<8x768xf32> -> vector<8x768xf32>
    %c0_21 = arith.constant 0 : index
    %c0_22 = arith.constant 0 : index
    %27 = vector.load %arg9[%c0_21, %c0_22] : memref<1x768xf32, #tpu.memory_space<vmem>>, vector<1x768xf32>
    %28 = vector.broadcast %27 : vector<1x768xf32> to vector<8x768xf32>
    %29 = arith.addf %26, %28 : vector<8x768xf32>
    %30 = vector.extract_strided_slice %29 {offsets = [0, 0], sizes = [8, 128], strides = [1, 1]} : vector<8x768xf32> to vector<8x128xf32>
    %cst_23 = arith.constant dense<0xFF800000> : vector<8xf32>
    %31 = vector.multi_reduction <maximumf>, %30, %cst_23 [1] : vector<8x128xf32> to vector<8xf32>
    %32 = vector.shape_cast %31 : vector<8xf32> to vector<8x1xf32>
    %33 = vector.broadcast %32 : vector<8x1xf32> to vector<8x128xf32>
    %34 = arith.subf %30, %33 : vector<8x128xf32>
    %35 = math.exp %34 : vector<8x128xf32>
    %cst_24 = arith.constant dense<0.000000e+00> : vector<8xf32>
    %36 = vector.multi_reduction <add>, %35, %cst_24 [1] : vector<8x128xf32> to vector<8xf32>
    %37 = vector.shape_cast %36 : vector<8xf32> to vector<8x1xf32>
    %38 = tpu.reciprocal %37 : vector<8x1xf32> -> vector<8x1xf32>
    %39 = vector.broadcast %38 : vector<8x1xf32> to vector<8x128xf32>
    %40 = arith.mulf %35, %39 : vector<8x128xf32>
    %c0_25 = arith.constant 0 : index
    %c0_26 = arith.constant 0 : index
    %41 = vector.load %arg10[%c0_25, %c0_26] : memref<8x768xf32, #tpu.memory_space<vmem>>, vector<8x128xf32>
    tpu.vector_store %arg10[%c0_25, %c0_26], %40 {strides = array<i32>} : memref<8x768xf32, #tpu.memory_space<vmem>>, vector<8x128xf32>,
    %42 = vector.extract_strided_slice %29 {offsets = [0, 128], sizes = [8, 128], strides = [1, 1]} : vector<8x768xf32> to vector<8x128xf32>
    %cst_27 = arith.constant dense<0xFF800000> : vector<8xf32>
    %43 = vector.multi_reduction <maximumf>, %42, %cst_27 [1] : vector<8x128xf32> to vector<8xf32>
    %44 = vector.shape_cast %43 : vector<8xf32> to vector<8x1xf32>
    %45 = vector.broadcast %44 : vector<8x1xf32> to vector<8x128xf32>
    %46 = arith.subf %42, %45 : vector<8x128xf32>
    %47 = math.exp %46 : vector<8x128xf32>
    %cst_28 = arith.constant dense<0.000000e+00> : vector<8xf32>
    %48 = vector.multi_reduction <add>, %47, %cst_28 [1] : vector<8x128xf32> to vector<8xf32>
    %49 = vector.shape_cast %48 : vector<8xf32> to vector<8x1xf32>
    %50 = tpu.reciprocal %49 : vector<8x1xf32> -> vector<8x1xf32>
    %51 = vector.broadcast %50 : vector<8x1xf32> to vector<8x128xf32>
    %52 = arith.mulf %47, %51 : vector<8x128xf32>
    %c0_29 = arith.constant 0 : index
    %c128 = arith.constant 128 : index
    %53 = vector.load %arg10[%c0_29, %c128] : memref<8x768xf32, #tpu.memory_space<vmem>>, vector<8x128xf32>
    tpu.vector_store %arg10[%c0_29, %c128], %52 {strides = array<i32>} : memref<8x768xf32, #tpu.memory_space<vmem>>, vector<8x128xf32>,
    %54 = vector.extract_strided_slice %29 {offsets = [0, 256], sizes = [8, 128], strides = [1, 1]} : vector<8x768xf32> to vector<8x128xf32>
    %cst_30 = arith.constant dense<0xFF800000> : vector<8xf32>
    %55 = vector.multi_reduction <maximumf>, %54, %cst_30 [1] : vector<8x128xf32> to vector<8xf32>
    %56 = vector.shape_cast %55 : vector<8xf32> to vector<8x1xf32>
    %57 = vector.broadcast %56 : vector<8x1xf32> to vector<8x128xf32>
    %58 = arith.subf %54, %57 : vector<8x128xf32>
    %59 = math.exp %58 : vector<8x128xf32>
    %cst_31 = arith.constant dense<0.000000e+00> : vector<8xf32>
    %60 = vector.multi_reduction <add>, %59, %cst_31 [1] : vector<8x128xf32> to vector<8xf32>
    %61 = vector.shape_cast %60 : vector<8xf32> to vector<8x1xf32>
    %62 = tpu.reciprocal %61 : vector<8x1xf32> -> vector<8x1xf32>
    %63 = vector.broadcast %62 : vector<8x1xf32> to vector<8x128xf32>
    %64 = arith.mulf %59, %63 : vector<8x128xf32>
    %c0_32 = arith.constant 0 : index
    %c256 = arith.constant 256 : index
    %65 = vector.load %arg10[%c0_32, %c256] : memref<8x768xf32, #tpu.memory_space<vmem>>, vector<8x128xf32>
    tpu.vector_store %arg10[%c0_32, %c256], %64 {strides = array<i32>} : memref<8x768xf32, #tpu.memory_space<vmem>>, vector<8x128xf32>,
    %66 = vector.extract_strided_slice %29 {offsets = [0, 384], sizes = [8, 128], strides = [1, 1]} : vector<8x768xf32> to vector<8x128xf32>
    %cst_33 = arith.constant dense<0xFF800000> : vector<8xf32>
    %67 = vector.multi_reduction <maximumf>, %66, %cst_33 [1] : vector<8x128xf32> to vector<8xf32>
    %68 = vector.shape_cast %67 : vector<8xf32> to vector<8x1xf32>
    %69 = vector.broadcast %68 : vector<8x1xf32> to vector<8x128xf32>
    %70 = arith.subf %66, %69 : vector<8x128xf32>
    %71 = math.exp %70 : vector<8x128xf32>
    %cst_34 = arith.constant dense<0.000000e+00> : vector<8xf32>
    %72 = vector.multi_reduction <add>, %71, %cst_34 [1] : vector<8x128xf32> to vector<8xf32>
    %73 = vector.shape_cast %72 : vector<8xf32> to vector<8x1xf32>
    %74 = tpu.reciprocal %73 : vector<8x1xf32> -> vector<8x1xf32>
    %75 = vector.broadcast %74 : vector<8x1xf32> to vector<8x128xf32>
    %76 = arith.mulf %71, %75 : vector<8x128xf32>
    %c0_35 = arith.constant 0 : index
    %c384 = arith.constant 384 : index
    %77 = vector.load %arg10[%c0_35, %c384] : memref<8x768xf32, #tpu.memory_space<vmem>>, vector<8x128xf32>
    tpu.vector_store %arg10[%c0_35, %c384], %76 {strides = array<i32>} : memref<8x768xf32, #tpu.memory_space<vmem>>, vector<8x128xf32>,
    %78 = vector.extract_strided_slice %29 {offsets = [0, 512], sizes = [8, 128], strides = [1, 1]} : vector<8x768xf32> to vector<8x128xf32>
    %cst_36 = arith.constant dense<0xFF800000> : vector<8xf32>
    %79 = vector.multi_reduction <maximumf>, %78, %cst_36 [1] : vector<8x128xf32> to vector<8xf32>
    %80 = vector.shape_cast %79 : vector<8xf32> to vector<8x1xf32>
    %81 = vector.broadcast %80 : vector<8x1xf32> to vector<8x128xf32>
    %82 = arith.subf %78, %81 : vector<8x128xf32>
    %83 = math.exp %82 : vector<8x128xf32>
    %cst_37 = arith.constant dense<0.000000e+00> : vector<8xf32>
    %84 = vector.multi_reduction <add>, %83, %cst_37 [1] : vector<8x128xf32> to vector<8xf32>
    %85 = vector.shape_cast %84 : vector<8xf32> to vector<8x1xf32>
    %86 = tpu.reciprocal %85 : vector<8x1xf32> -> vector<8x1xf32>
    %87 = vector.broadcast %86 : vector<8x1xf32> to vector<8x128xf32>
    %88 = arith.mulf %83, %87 : vector<8x128xf32>
    %c0_38 = arith.constant 0 : index
    %c512 = arith.constant 512 : index
    %89 = vector.load %arg10[%c0_38, %c512] : memref<8x768xf32, #tpu.memory_space<vmem>>, vector<8x128xf32>
    tpu.vector_store %arg10[%c0_38, %c512], %88 {strides = array<i32>} : memref<8x768xf32, #tpu.memory_space<vmem>>, vector<8x128xf32>,
    %90 = vector.extract_strided_slice %29 {offsets = [0, 640], sizes = [8, 128], strides = [1, 1]} : vector<8x768xf32> to vector<8x128xf32>
    %cst_39 = arith.constant dense<0xFF800000> : vector<8xf32>
    %91 = vector.multi_reduction <maximumf>, %90, %cst_39 [1] : vector<8x128xf32> to vector<8xf32>
    %92 = vector.shape_cast %91 : vector<8xf32> to vector<8x1xf32>
    %93 = vector.broadcast %92 : vector<8x1xf32> to vector<8x128xf32>
    %94 = arith.subf %90, %93 : vector<8x128xf32>
    %95 = math.exp %94 : vector<8x128xf32>
    %cst_40 = arith.constant dense<0.000000e+00> : vector<8xf32>
    %96 = vector.multi_reduction <add>, %95, %cst_40 [1] : vector<8x128xf32> to vector<8xf32>
    %97 = vector.shape_cast %96 : vector<8xf32> to vector<8x1xf32>
    %98 = tpu.reciprocal %97 : vector<8x1xf32> -> vector<8x1xf32>
    %99 = vector.broadcast %98 : vector<8x1xf32> to vector<8x128xf32>
    %100 = arith.mulf %95, %99 : vector<8x128xf32>
    %c0_41 = arith.constant 0 : index
    %c640 = arith.constant 640 : index
    %101 = vector.load %arg10[%c0_41, %c640] : memref<8x768xf32, #tpu.memory_space<vmem>>, vector<8x128xf32>
    tpu.vector_store %arg10[%c0_41, %c640], %100 {strides = array<i32>} : memref<8x768xf32, #tpu.memory_space<vmem>>, vector<8x128xf32>,
    return
  }
  func.func @transform_0(%arg0: i32) -> (i32, i32) {
    %c0_i32 = arith.constant 0 : i32
    %c0_i32_0 = arith.constant 0 : i32
    return %arg0, %c0_i32 : i32, i32
  }
  func.func @transform_1(%arg0: i32) -> (i32, i32) {
    %c0_i32 = arith.constant 0 : i32
    %c0_i32_0 = arith.constant 0 : i32
    %c0_i32_1 = arith.constant 0 : i32
    return %c0_i32, %c0_i32_0 : i32, i32
  }
  func.func @transform_2(%arg0: i32) -> (i32, i32) {
    %c0_i32 = arith.constant 0 : i32
    %c0_i32_0 = arith.constant 0 : i32
    %c0_i32_1 = arith.constant 0 : i32
    return %c0_i32, %c0_i32_0 : i32, i32
  }
  func.func @transform_3(%arg0: i32) -> (i32, i32) {
    %c0_i32 = arith.constant 0 : i32
    %c0_i32_0 = arith.constant 0 : i32
    %c0_i32_1 = arith.constant 0 : i32
    return %c0_i32, %c0_i32_0 : i32, i32
  }
  func.func @transform_4(%arg0: i32) -> (i32, i32) {
    %c0_i32 = arith.constant 0 : i32
    %c0_i32_0 = arith.constant 0 : i32
    %c0_i32_1 = arith.constant 0 : i32
    return %c0_i32, %c0_i32_0 : i32, i32
  }
  func.func @transform_5(%arg0: i32) -> (i32, i32) {
    %c0_i32 = arith.constant 0 : i32
    %c0_i32_0 = arith.constant 0 : i32
    %c0_i32_1 = arith.constant 0 : i32
    return %c0_i32, %c0_i32_0 : i32, i32
  }
  func.func @transform_6(%arg0: i32) -> (i32, i32) {
    %c0_i32 = arith.constant 0 : i32
    %c0_i32_0 = arith.constant 0 : i32
    %c0_i32_1 = arith.constant 0 : i32
    return %c0_i32, %c0_i32_0 : i32, i32
  }
  func.func @transform_7(%arg0: i32) -> (i32, i32) {
    %c0_i32 = arith.constant 0 : i32
    %c0_i32_0 = arith.constant 0 : i32
    %c0_i32_1 = arith.constant 0 : i32
    return %c0_i32, %c0_i32_0 : i32, i32
  }
  func.func @transform_8(%arg0: i32) -> (i32, i32) {
    %c0_i32 = arith.constant 0 : i32
    %c0_i32_0 = arith.constant 0 : i32
    %c0_i32_1 = arith.constant 0 : i32
    return %c0_i32, %c0_i32_0 : i32, i32
  }
  func.func @transform_9(%arg0: i32) -> (i32, i32) {
    %c0_i32 = arith.constant 0 : i32
    %c0_i32_0 = arith.constant 0 : i32
    return %arg0, %c0_i32 : i32, i32
  }
}

</mosaic_0001>

<bundles_post_ra>
// kernel: tile.9
= control target key start
LH: loop header
LB: loop body
LE: loop exit
PB: predicated region body
PF: predicated region fallthrough
CT: control target
= control target key end

     0   :  { %s28_s0 = inlined_call_operand.vmem [shape: f32[64], index: 0, kind: input, shape index: {}]   ;;  %s29_s1 = inlined_call_operand.vmem [shape: f32[9,64], index: 1, kind: output, shape index: {}]  }
   0x1   :  { %v4_v0 = vld [vmem:[%s28_s0] ss:$0 sm:$0xff] }
   0x2   :  { %5 = vst [vmem:[%s29_s1] sm:$0xff] %v4_v0  ;;  %8 = vst [vmem:[%s29_s1 + $0x8] sm:$0xff] %v4_v0 }

// kernel: tile.10
= control target key start
LH: loop header
LB: loop body
LE: loop exit
PB: predicated region body
PF: predicated region fallthrough
CT: control target
= control target key end

     0   :  { %vm3_vm0 = vcmask 523264   ;;  %s51_s8 = smov 64   ;;  %vm11_vm1 = vcmask 1048064   ;;  %s83_s0 = inlined_call_operand.vmem [shape: f32[9,64], index: 0, kind: input, shape index: {}]   ;;  %s84_s1 = inlined_call_operand.vmem [shape: f32[1,576], index: 1, kind: output, shape index: {}]  }
   0x1   :  { %v45_v0 = vld [vmem:[%s83_s0 + $0x1] ss:$2 sm:$0xf]   ;;  %v2_v1 = vld [vmem:[%s83_s0] ss:$2 sm:$0x1f]  }
   0x2   :  { %9 = vrot.lane.b32.xlu0 %v45_v0, %s51_s8  ;;  %4 = vst.msk [vmem:[#allocation0] ss:$8 sm:$0xf] %vm3_vm0, %v2_v1   ;;  %6 = vst.msk [vmem:[#allocation0 + $0x1c] sm:$0x10] %vm3_vm0, %v2_v1  }
   0x9   :  { %v37_v2 = vld [vmem:[#allocation0 + $0x20] sm:$0x1] }
   0xa   :  { %49 = vst [vmem:[%s84_s1 + $0x4] sm:$0x1] %v37_v2 }
  0x74   :  { %v10_v3 = vpop.permute.xlu0 %9  }
  0x75   :  { %12 = vst.msk [vmem:[#allocation0] ss:$8 sm:$0xf] %vm11_vm1, %v10_v3  }
  0x7c   :  { %v16_v4 = vld [vmem:[#allocation0] sm:$0x1]  ;;  %v20_v5 = vld [vmem:[#allocation0 + $0x8] sm:$0x1]  ;;  %v25_v6 = vld [vmem:[#allocation0 + $0x10] sm:$0x1] }
  0x7d   :  { %18 = vst [vmem:[%s84_s1] sm:$0x1] %v16_v4  ;;  %46 = vst [vmem:[%s84_s1 + $0x1] sm:$0x1] %v20_v5  ;;  %v31_v7 = vld [vmem:[#allocation0 + $0x18] sm:$0x1] }
  0x7e   :  { %47 = vst [vmem:[%s84_s1 + $0x2] sm:$0x1] %v25_v6  ;;  %48 = vst [vmem:[%s84_s1 + $0x3] sm:$0x1] %v31_v7 }

// kernel: network_forward.1
= control target key start
LH: loop header
LB: loop body
LE: loop exit
PB: predicated region body
PF: predicated region fallthrough
CT: control target
= control target key end

     0   :  { %s10269_s30 = smov 0   ;;  %s13170_s0 = inlined_call_operand.vmem [shape: bf16[16,2048], index: 0, kind: input, shape index: {}]   ;;  %s13171_s1 = inlined_call_operand.vmem [shape: bf16[2048,576], index: 1, kind: input, shape index: {}]   ;;  %s13172_s2 = inlined_call_operand.vmem [shape: f32[1,576], index: 2, kind: input, shape index: {}]   ;;  %s13173_s3 = inlined_call_operand.vmem [shape: bf16[576,64], index: 3, kind: input, shape index: {}]   ;;  %s13174_s4 = inlined_call_operand.vmem [shape: f32[1,64], index: 4, kind: input, shape index: {}]   ;;  %s13175_s5 = inlined_call_operand.vmem [shape: bf16[64,512], index: 5, kind: input, shape index: {}]   ;;  %s13176_s6 = inlined_call_operand.vmem [shape: f32[1,512], index: 6, kind: input, shape index: {}]   ;;  %s13177_s7 = inlined_call_operand.vmem [shape: bf16[512,768], index: 7, kind: input, shape index: {}]   ;;  %s13178_s8 = inlined_call_operand.vmem [shape: f32[1,768], index: 8, kind: input, shape index: {}]   ;;  %s13179_s9 = inlined_call_operand.vmem [shape: f32[16,768], index: 9, kind: output, shape index: {}]  }
   0x1 LB: > { %s7684_s10 = sadd.s32 4294967295, %s10214_s30   ;;  %p7688_p0 = scmp.ge.s32.totalorder %s10214_s30, 1  ;;  %s10214_s30 = sphi %s10269_s30, %s19_s30  }
   0x2   : > { %p287_p1 = scmp.lt.s32.totalorder %s10214_s30, 3 }
   0x4   : > { %p288_p2 = pnand %p7688_p0, %p287_p1 }
   0x5   : > { %v8924_v0 = vld [vmem:[%s13171_s1 + $0x4] ss:$20 sps:$4 sm:$0xff] (!%p288_p2)   ;;  %v8926_v1 = vld [vmem:[%s13171_s1 + $0x28c] ss:$20 sps:$4 sm:$0xff] (!%p288_p2)   ;;  %v8929_v3 = vld [vmem:[%s13171_s1 + $0x288] ss:$20 sps:$4 sm:$0xff] (!%p288_p2)  }
   0x6   : > { %291 = sbr.rel (%p288_p2) target bundleno = 2091 (0x82b), region = 56  ;;  %4521 = vmatprep.subr.bf16.mxu0 (!%p288_p2), %v8924_v0  ;;  %v8928_v2 = vld [vmem:[%s13171_s1] ss:$20 sps:$4 sm:$0xff] (!%p288_p2)   ;;  %4890 = vmatprep.subr.bf16.mxu1 (!%p288_p2), %v8926_v1  ;;  %v8934_v6 = vld [vmem:[%s13171_s1 + $0x28] ss:$20 sps:$4 sm:$0xff] (!%p288_p2)   ;;  %p323_p3 = scmp.lt.s32.totalorder (!%p288_p2), %s7684_s10, 1 }
   0x7   : > { %v8930_v4 = vld [vmem:[%s13171_s1 + $0x2c] ss:$20 sps:$4 sm:$0xff] (!%p288_p2)   ;;  %4522 = vmatpush1.bf16.msra.mxu0 (!%p288_p2), %v8928_v2  ;;  %4891 = vmatpush1.bf16.msra.mxu1 (!%p288_p2), %v8929_v3  ;;  %v8932_v5 = vld [vmem:[%s13171_s1 + $0x2b4] ss:$20 sps:$4 sm:$0xff] (!%p288_p2)   ;;  %v8935_v7 = vld [vmem:[%s13171_s1 + $0x2b0] ss:$20 sps:$4 sm:$0xff] (!%p288_p2)  }
   0x8   : > { %4523 = vmatprep.subr.bf16.mxu0 (!%p288_p2), %v8930_v4  ;;  %4892 = vmatprep.subr.bf16.mxu1 (!%p288_p2), %v8932_v5  ;;  %v8936_v8 = vld [vmem:[%s13171_s1 + $0x54] ss:$20 sps:$4 sm:$0xff] (!%p288_p2)   ;;  %v8938_v9 = vld [vmem:[%s13171_s1 + $0x2dc] ss:$20 sps:$4 sm:$0xff] (!%p288_p2)   ;;  %v8941_v11 = vld [vmem:[%s13171_s1 + $0x2d8] ss:$20 sps:$4 sm:$0xff] (!%p288_p2)  }
   0x9   : > { %v8940_v10 = vld [vmem:[%s13171_s1 + $0x50] ss:$20 sps:$4 sm:$0xff] (!%p288_p2)   ;;  %v8946_v14 = vld [vmem:[%s13171_s1 + $0x78] ss:$20 sps:$4 sm:$0xff] (!%p288_p2)   ;;  %v8947_v15 = vld [vmem:[%s13171_s1 + $0x300] ss:$20 sps:$4 sm:$0xff] (!%p288_p2)  }
   0xa   : > { %v8942_v12 = vld [vmem:[%s13171_s1 + $0x7c] ss:$20 sps:$4 sm:$0xff] (!%p288_p2)   ;;  %v8944_v13 = vld [vmem:[%s13171_s1 + $0x304] ss:$20 sps:$4 sm:$0xff] (!%p288_p2)   ;;  %v8950_v17 = vld [vmem:[%s13171_s1 + $0x32c] ss:$20 sps:$4 sm:$0xff] (!%p288_p2)  }
   0xb   : > { %4524 = vmatpush1.bf16.msra.mxu0 (!%p288_p2), %v8934_v6  ;;  %4893 = vmatpush1.bf16.msra.mxu1 (!%p288_p2), %v8935_v7  ;;  %v8948_v16 = vld [vmem:[%s13171_s1 + $0xa4] ss:$20 sps:$4 sm:$0xff] (!%p288_p2)   ;;  %v8952_v18 = vld [vmem:[%s13171_s1 + $0xa0] ss:$20 sps:$4 sm:$0xff] (!%p288_p2)   ;;  %v8953_v19 = vld [vmem:[%s13171_s1 + $0x328] ss:$20 sps:$4 sm:$0xff] (!%p288_p2)  }
   0xc   : > { %4525 = vmatprep.subr.bf16.mxu0 (!%p288_p2), %v8936_v8  ;;  %4894 = vmatprep.subr.bf16.mxu1 (!%p288_p2), %v8938_v9  ;;  %v8954_v20 = vld [vmem:[%s13171_s1 + $0xcc] ss:$20 sps:$4 sm:$0xff] (!%p288_p2)   ;;  %v8956_v21 = vld [vmem:[%s13171_s1 + $0x354] ss:$20 sps:$4 sm:$0xff] (!%p288_p2)   ;;  %v8959_v23 = vld [vmem:[%s13171_s1 + $0x350] ss:$20 sps:$4 sm:$0xff] (!%p288_p2)  }
   0xd   : > { %v8958_v22 = vld [vmem:[%s13171_s1 + $0xc8] ss:$20 sps:$4 sm:$0xff]   ;;  %v8964_v26 = vld [vmem:[%s13171_s1 + $0xf0] ss:$20 sps:$4 sm:$0xff]   ;;  %v8965_v27 = vld [vmem:[%s13171_s1 + $0x378] ss:$20 sps:$4 sm:$0xff]  }
   0xe   : > { %v8960_v24 = vld [vmem:[%s13171_s1 + $0xf4] ss:$20 sps:$4 sm:$0xff]   ;;  %v8962_v25 = vld [vmem:[%s13171_s1 + $0x37c] ss:$20 sps:$4 sm:$0xff]   ;;  %v8968_v29 = vld [vmem:[%s13171_s1 + $0x3a4] ss:$20 sps:$4 sm:$0xff]  }
   0xf   : > { %4526 = vmatpush1.bf16.msra.mxu0 %v8940_v10  ;;  %4895 = vmatpush1.bf16.msra.mxu1 %v8941_v11  ;;  %v8966_v28 = vld [vmem:[%s13171_s1 + $0x11c] ss:$20 sps:$4 sm:$0xff]   ;;  %v8970_v30 = vld [vmem:[%s13171_s1 + $0x118] ss:$20 sps:$4 sm:$0xff]   ;;  %v8971_v31 = vld [vmem:[%s13171_s1 + $0x3a0] ss:$20 sps:$4 sm:$0xff]  }
  0x10   : > { %4527 = vmatprep.subr.bf16.mxu0 %v8942_v12  ;;  %4896 = vmatprep.subr.bf16.mxu1 %v8944_v13  ;;  %v8972_v32 = vld [vmem:[%s13171_s1 + $0x144] ss:$20 sps:$4 sm:$0xff]   ;;  %v8974_v33 = vld [vmem:[%s13171_s1 + $0x3cc] ss:$20 sps:$4 sm:$0xff]   ;;  %v8977_v35 = vld [vmem:[%s13171_s1 + $0x3c8] ss:$20 sps:$4 sm:$0xff]  }
  0x11   : > { %v8976_v34 = vld [vmem:[%s13171_s1 + $0x140] ss:$20 sps:$4 sm:$0xff]   ;;  %s13181_s10 = smov (!%p323_p3, %s7684_s10), 1  ;;  %v8982_v38 = vld [vmem:[%s13171_s1 + $0x168] ss:$20 sps:$4 sm:$0xff]   ;;  %vm10217_vm0 = vmmov 0  }
  0x12   : > { %v8978_v36 = vld [vmem:[%s13171_s1 + $0x16c] ss:$20 sps:$4 sm:$0xff]   ;;  %v8980_v37 = vld [vmem:[%s13171_s1 + $0x3f4] ss:$20 sps:$4 sm:$0xff]   ;;  %v8983_v39 = vld [vmem:[%s13171_s1 + $0x3f0] ss:$20 sps:$4 sm:$0xff]  }
  0x13   : > { %4528 = vmatpush1.bf16.msra.mxu0 %v8946_v14  ;;  %4897 = vmatpush1.bf16.msra.mxu1 %v8947_v15  ;;  %v8984_v40 = vld [vmem:[%s13171_s1 + $0x194] ss:$20 sps:$4 sm:$0xff]   ;;  %s8598_s17 = sshll.u32 %s13181_s10, 6  ;;  %v8986_v41 = vld [vmem:[%s13171_s1 + $0x41c] ss:$20 sps:$4 sm:$0xff]   ;;  %vm5802_vm1 = vcmask 523264  }
  0x14   : > { %4529 = vmatprep.subr.bf16.mxu0 %v8948_v16  ;;  %4898 = vmatprep.subr.bf16.mxu1 %v8950_v17  ;;  %v8988_v42 = vld [vmem:[%s13171_s1 + $0x190] ss:$20 sps:$4 sm:$0xff]   ;;  %v8989_v43 = vld [vmem:[%s13171_s1 + $0x418] ss:$20 sps:$4 sm:$0xff]   ;;  %s10419_s26 = scalar_lea.vmem %s13170_s0, %s8598_s17  ;;  %v8995_v49 = vld [vmem:[%s13171_s1 + $0x440] ss:$20 sps:$4 sm:$0xff]  }
  0x15   : > { %v8990_v44 = vld [vmem:[%s13171_s1 + $0x1bc] ss:$20 sps:$4 sm:$0xff]   ;;  %v8992_v45 = vld [vmem:[%s13171_s1 + $0x444] ss:$20 sps:$4 sm:$0xff]   ;;  %v335_v50 = vld [vmem:[%s10419_s26 + $0x8] sm:$0xff]  ;;  %s8912_s23 = smul.u32 48, %s13181_s10 }
  0x16   : > { %v334_v46 = vld [vmem:[%s10419_s26] sm:$0xff]  ;;  %v8994_v47 = vld [vmem:[%s13171_s1 + $0x1b8] ss:$20 sps:$4 sm:$0xff]   ;;  %v10443_v53 = vcombine.high %v335_v50, %v335_v50  ;;  %v9001_v55 = vld [vmem:[%s13171_s1 + $0x468] ss:$20 sps:$4 sm:$0xff]   ;;  %v10497_v7 = vcombine.low %v335_v50, %v335_v50 }
  0x17   : > { %4530 = vmatpush1.bf16.msra.mxu0 %v8952_v18  ;;  %4899 = vmatpush1.bf16.msra.mxu1 %v8953_v19  ;;  %v10431_v48 = vcombine.high %v334_v46, %v334_v46  ;;  %v8996_v51 = vld [vmem:[%s13171_s1 + $0x1e4] ss:$20 sps:$4 sm:$0xff]   ;;  %v8998_v52 = vld [vmem:[%s13171_s1 + $0x46c] ss:$20 sps:$4 sm:$0xff]   ;;  %v9004_v57 = vld [vmem:[%s13171_s1 + $0x494] ss:$20 sps:$4 sm:$0xff]   ;;  %v10495_v6 = vcombine.low %v334_v46, %v334_v46  ;;  %s332_s27 = scalar_lea.vmem %s13179_s9, %s8912_s23 }
  0x18   : > { %4531 = vmatprep.subr.bf16.mxu0 %v8954_v20  ;;  %4900 = vmatprep.subr.bf16.mxu1 %v8956_v21  ;;  %v9000_v54 = vld [vmem:[%s13171_s1 + $0x1e0] ss:$20 sps:$4 sm:$0xff]   ;;  %v9006_v58 = vld [vmem:[%s13171_s1 + $0x208] ss:$20 sps:$4 sm:$0xff]   ;;  %v9007_v59 = vld [vmem:[%s13171_s1 + $0x490] ss:$20 sps:$4 sm:$0xff]  }
  0x19   : > { %4553 = vmatprep.mubr.bf16.mxu0 %v10431_v48  ;;  %4922 = vmatprep.mubr.bf16.mxu1 %v10443_v53  ;;  %v9002_v56 = vld [vmem:[%s13171_s1 + $0x20c] ss:$20 sps:$4 sm:$0xff]   ;;  %v9008_v60 = vld [vmem:[%s13171_s1 + $0x234] ss:$20 sps:$4 sm:$0xff]   ;;  %v9010_v61 = vld [vmem:[%s13171_s1 + $0x4bc] ss:$20 sps:$4 sm:$0xff]  }
  0x1a   : > { %v9012_v62 = vld [vmem:[%s13171_s1 + $0x230] ss:$20 sps:$4 sm:$0xff]   ;;  %v9013_v63 = vld [vmem:[%s13171_s1 + $0x4b8] ss:$20 sps:$4 sm:$0xff]   ;;  %v9019_v3 = vld [vmem:[%s13171_s1 + $0x4e0] ss:$20 sps:$4 sm:$0xff]  }
  0x1b   : > { %4532 = vmatpush1.bf16.msra.mxu0 %v8958_v22  ;;  %4901 = vmatpush1.bf16.msra.mxu1 %v8959_v23  ;;  %v9014_v0 = vld [vmem:[%s13171_s1 + $0x25c] ss:$20 sps:$4 sm:$0xff]   ;;  %v9016_v1 = vld [vmem:[%s13171_s1 + $0x4e4] ss:$20 sps:$4 sm:$0xff]   ;;  %v9027_v5 = vld [vmem:[%s13171_s1 + $0x50c] ss:$20 sps:$4 sm:$0xff]  }
  0x1c   : > { %4533 = vmatprep.subr.bf16.mxu0 %v8960_v24  ;;  %4902 = vmatprep.subr.bf16.mxu1 %v8962_v25  ;;  %v9018_v2 = vld [vmem:[%s13171_s1 + $0x258] ss:$20 sps:$4 sm:$0xff]   ;;  %v9021_v8 = vld [vmem:[%s13171_s1 + $0x280] ss:$20 sps:$4 sm:$0xff]   ;;  %v9025_v9 = vld [vmem:[%s13171_s1 + $0x508] ss:$20 sps:$4 sm:$0xff]  }
  0x1d   : > { %v9023_v4 = vld [vmem:[%s13171_s1 + $0x284] ss:$20 sps:$4 sm:$0xff]   ;;  %v9032_v10 = vld [vmem:[%s13171_s1 + $0x2ac] ss:$20 sps:$4 sm:$0xff]   ;;  %v9035_v11 = vld [vmem:[%s13171_s1 + $0x534] ss:$20 sps:$4 sm:$0xff]  }
  0x1e   : > { %v9030_v12 = vld [vmem:[%s13171_s1 + $0x2a8] ss:$20 sps:$4 sm:$0xff]   ;;  %v9033_v13 = vld [vmem:[%s13171_s1 + $0x530] ss:$20 sps:$4 sm:$0xff]   ;;  %v9039_v17 = vld [vmem:[%s13171_s1 + $0x558] ss:$20 sps:$4 sm:$0xff]  }
  0x1f   : > { %4534 = vmatpush1.bf16.msra.mxu0 %v8964_v26  ;;  %4903 = vmatpush1.bf16.msra.mxu1 %v8965_v27  ;;  %v9038_v14 = vld [vmem:[%s13171_s1 + $0x2d4] ss:$20 sps:$4 sm:$0xff]   ;;  %v9041_v15 = vld [vmem:[%s13171_s1 + $0x55c] ss:$20 sps:$4 sm:$0xff]   ;;  %v9047_v19 = vld [vmem:[%s13171_s1 + $0x584] ss:$20 sps:$4 sm:$0xff]  }
  0x20   : > { %4535 = vmatprep.subr.bf16.mxu0 %v8966_v28  ;;  %4904 = vmatprep.subr.bf16.mxu1 %v8968_v29  ;;  %v9036_v16 = vld [vmem:[%s13171_s1 + $0x2d0] ss:$20 sps:$4 sm:$0xff]   ;;  %v9042_v20 = vld [vmem:[%s13171_s1 + $0x2f8] ss:$20 sps:$4 sm:$0xff]   ;;  %v9045_v21 = vld [vmem:[%s13171_s1 + $0x580] ss:$20 sps:$4 sm:$0xff]  }
  0x21   : > { %v9044_v18 = vld [vmem:[%s13171_s1 + $0x2fc] ss:$20 sps:$4 sm:$0xff]   ;;  %v9050_v22 = vld [vmem:[%s13171_s1 + $0x324] ss:$20 sps:$4 sm:$0xff]   ;;  %v9053_v23 = vld [vmem:[%s13171_s1 + $0x5ac] ss:$20 sps:$4 sm:$0xff]  }
  0x22   : > { %v9048_v24 = vld [vmem:[%s13171_s1 + $0x320] ss:$20 sps:$4 sm:$0xff]   ;;  %v9051_v25 = vld [vmem:[%s13171_s1 + $0x5a8] ss:$20 sps:$4 sm:$0xff]   ;;  %v9057_v29 = vld [vmem:[%s13171_s1 + $0x5d0] ss:$20 sps:$4 sm:$0xff]  }
  0x23   : > { %4536 = vmatpush1.bf16.msra.mxu0 %v8970_v30  ;;  %4905 = vmatpush1.bf16.msra.mxu1 %v8971_v31  ;;  %v9056_v26 = vld [vmem:[%s13171_s1 + $0x34c] ss:$20 sps:$4 sm:$0xff]   ;;  %v9059_v27 = vld [vmem:[%s13171_s1 + $0x5d4] ss:$20 sps:$4 sm:$0xff]   ;;  %v9065_v31 = vld [vmem:[%s13171_s1 + $0x5fc] ss:$20 sps:$4 sm:$0xff]  }
  0x24   : > { %4537 = vmatprep.subr.bf16.mxu0 %v8972_v32  ;;  %4906 = vmatprep.subr.bf16.mxu1 %v8974_v33  ;;  %v9054_v28 = vld [vmem:[%s13171_s1 + $0x348] ss:$20 sps:$4 sm:$0xff]   ;;  %v9060_v32 = vld [vmem:[%s13171_s1 + $0x370] ss:$20 sps:$4 sm:$0xff]  }
  0x25   : > { %v9062_v30 = vld [vmem:[%s13171_s1 + $0x374] ss:$20 sps:$4 sm:$0xff]   ;;  %v9089_v50 = vld [vmem:[%s13171_s1 + $0x69c] ss:$20 sps:$4 sm:$0xff]  }
  0x26   : > { %v10578_v33 = vld [vmem:[%s10419_s26 + $0x10] sm:$0xff]  ;;  %v9078_v46 = vld [vmem:[%s13171_s1 + $0x3e8] ss:$20 sps:$4 sm:$0xff]  }
  0x27   : > { %4538 = vmatpush1.bf16.msra.mxu0 %v8976_v34  ;;  %4907 = vmatpush1.bf16.msra.mxu1 %v8977_v35  ;;  %v9063_v34 = vld [vmem:[%s13171_s1 + $0x5f8] ss:$20 sps:$4 sm:$0xff]   ;;  %v9068_v35 = vld [vmem:[%s13171_s1 + $0x39c] ss:$20 sps:$4 sm:$0xff]  }
  0x28   : > { %4539 = vmatprep.subr.bf16.mxu0 %v8978_v36  ;;  %4908 = vmatprep.subr.bf16.mxu1 %v8980_v37  ;;  %v10588_v36 = vcombine.high %v10578_v33, %v10578_v33  ;;  %v9071_v37 = vld [vmem:[%s13171_s1 + $0x624] ss:$20 sps:$4 sm:$0xff]  }
  0x2b   : > { %4540 = vmatpush1.bf16.msra.mxu0 %v8982_v38  ;;  %4909 = vmatpush1.bf16.msra.mxu1 %v8983_v39  ;;  %v9066_v38 = vld [vmem:[%s13171_s1 + $0x398] ss:$20 sps:$4 sm:$0xff]   ;;  %v9069_v39 = vld [vmem:[%s13171_s1 + $0x620] ss:$20 sps:$4 sm:$0xff]  }
  0x2c   : > { %4541 = vmatprep.subr.bf16.mxu0 %v8984_v40  ;;  %4910 = vmatprep.subr.bf16.mxu1 %v8986_v41  ;;  %v9074_v40 = vld [vmem:[%s13171_s1 + $0x3c4] ss:$20 sps:$4 sm:$0xff]   ;;  %v9077_v41 = vld [vmem:[%s13171_s1 + $0x64c] ss:$20 sps:$4 sm:$0xff]  }
  0x2f   : > { %4542 = vmatpush1.bf16.msra.mxu0 %v8988_v42  ;;  %4911 = vmatpush1.bf16.msra.mxu1 %v8989_v43  ;;  %v9072_v42 = vld [vmem:[%s13171_s1 + $0x3c0] ss:$20 sps:$4 sm:$0xff]   ;;  %v9075_v43 = vld [vmem:[%s13171_s1 + $0x648] ss:$20 sps:$4 sm:$0xff]  }
  0x30   : > { %4543 = vmatprep.subr.bf16.mxu0 %v8990_v44  ;;  %4912 = vmatprep.subr.bf16.mxu1 %v8992_v45  ;;  %v9080_v44 = vld [vmem:[%s13171_s1 + $0x3ec] ss:$20 sps:$4 sm:$0xff]   ;;  %v9083_v45 = vld [vmem:[%s13171_s1 + $0x674] ss:$20 sps:$4 sm:$0xff]  }
  0x33   : > { %4544 = vmatpush1.bf16.msra.mxu0 %v8994_v47  ;;  %4913 = vmatpush1.bf16.msra.mxu1 %v8995_v49  ;;  %v9081_v47 = vld [vmem:[%s13171_s1 + $0x670] ss:$20 sps:$4 sm:$0xff]   ;;  %v9086_v49 = vld [vmem:[%s13171_s1 + $0x414] ss:$20 sps:$4 sm:$0xff]  }
  0x34   : > { %4545 = vmatprep.subr.bf16.mxu0 %v8996_v51  ;;  %4914 = vmatprep.subr.bf16.mxu1 %v8998_v52  ;;  %v9084_v51 = vld [vmem:[%s13171_s1 + $0x410] ss:$20 sps:$4 sm:$0xff]   ;;  %v9087_v52 = vld [vmem:[%s13171_s1 + $0x698] ss:$20 sps:$4 sm:$0xff]  }
  0x37   : > { %4546 = vmatpush1.bf16.msra.mxu0 %v9000_v54  ;;  %4915 = vmatpush1.bf16.msra.mxu1 %v9001_v55  ;;  %v9092_v54 = vld [vmem:[%s13171_s1 + $0x43c] ss:$20 sps:$4 sm:$0xff]   ;;  %v9095_v55 = vld [vmem:[%s13171_s1 + $0x6c4] ss:$20 sps:$4 sm:$0xff]  }
  0x38   : > { %4547 = vmatprep.subr.bf16.mxu0 %v9002_v56  ;;  %4916 = vmatprep.subr.bf16.mxu1 %v9004_v57  ;;  %v9090_v56 = vld [vmem:[%s13171_s1 + $0x438] ss:$20 sps:$4 sm:$0xff]   ;;  %v9093_v57 = vld [vmem:[%s13171_s1 + $0x6c0] ss:$20 sps:$4 sm:$0xff]  }
  0x3b   : > { %4548 = vmatpush1.bf16.msra.mxu0 %v9006_v58  ;;  %4917 = vmatpush1.bf16.msra.mxu1 %v9007_v59  ;;  %v9098_v58 = vld [vmem:[%s13171_s1 + $0x464] ss:$20 sps:$4 sm:$0xff]   ;;  %v9101_v59 = vld [vmem:[%s13171_s1 + $0x6ec] ss:$20 sps:$4 sm:$0xff]  }
  0x3c   : > { %4549 = vmatprep.subr.bf16.mxu0 %v9008_v60  ;;  %4918 = vmatprep.subr.bf16.mxu1 %v9010_v61  ;;  %v9096_v60 = vld [vmem:[%s13171_s1 + $0x460] ss:$20 sps:$4 sm:$0xff]   ;;  %v9099_v61 = vld [vmem:[%s13171_s1 + $0x6e8] ss:$20 sps:$4 sm:$0xff]  }
  0x3f   : > { %4550 = vmatpush1.bf16.msra.mxu0 %v9012_v62  ;;  %4919 = vmatpush1.bf16.msra.mxu1 %v9013_v63  ;;  %v9104_v62 = vld [vmem:[%s13171_s1 + $0x48c] ss:$20 sps:$4 sm:$0xff]   ;;  %v9107_v63 = vld [vmem:[%s13171_s1 + $0x714] ss:$20 sps:$4 sm:$0xff]  }
  0x40   : > { %4551 = vmatprep.subr.bf16.mxu0 %v9014_v0  ;;  %4920 = vmatprep.subr.bf16.mxu1 %v9016_v1  ;;  %v9102_v0 = vld [vmem:[%s13171_s1 + $0x488] ss:$20 sps:$4 sm:$0xff]   ;;  %v9105_v1 = vld [vmem:[%s13171_s1 + $0x710] ss:$20 sps:$4 sm:$0xff]  }
  0x43   : > { %4552 = vmatpush1.bf16.msra.mxu0 %v9018_v2  ;;  %4921 = vmatpush1.bf16.msra.mxu1 %v9019_v3  ;;  %v9110_v2 = vld [vmem:[%s13171_s1 + $0x4b4] ss:$20 sps:$4 sm:$0xff]   ;;  %v9113_v3 = vld [vmem:[%s13171_s1 + $0x73c] ss:$20 sps:$4 sm:$0xff]  }
  0x44   : > { %4562 = vmatprep.subr.bf16.mxu0 %v9023_v4  ;;  %4931 = vmatprep.subr.bf16.mxu1 %v9027_v5  ;;  %v9108_v4 = vld [vmem:[%s13171_s1 + $0x4b0] ss:$20 sps:$4 sm:$0xff]   ;;  %v9111_v5 = vld [vmem:[%s13171_s1 + $0x738] ss:$20 sps:$4 sm:$0xff]  }
  0x46   : > { %4554 = vmatmul.mubr.bf16.vlgmr.msra.gmra.mrb[0].mxu0 %v10495_v6  ;;  %4923 = vmatmul.mubr.bf16.vlgmr.msra.gmra.mrb[0].mxu1 %v10497_v7 }
  0x47   : > { %4563 = vmatpush1.bf16.msra.mxu0 %v9021_v8  ;;  %4932 = vmatpush1.bf16.msra.mxu1 %v9025_v9  ;;  %v9116_v8 = vld [vmem:[%s13171_s1 + $0x4dc] ss:$20 sps:$4 sm:$0xff]   ;;  %v9119_v9 = vld [vmem:[%s13171_s1 + $0x764] ss:$20 sps:$4 sm:$0xff]  }
  0x48   : > { %4564 = vmatprep.subr.bf16.mxu0 %v9032_v10  ;;  %4933 = vmatprep.subr.bf16.mxu1 %v9035_v11  ;;  %v9114_v10 = vld [vmem:[%s13171_s1 + $0x4d8] ss:$20 sps:$4 sm:$0xff]   ;;  %v9117_v11 = vld [vmem:[%s13171_s1 + $0x760] ss:$20 sps:$4 sm:$0xff]  }
  0x49   : > { %4594 = vmatprep.mubr.bf16.mxu0 %v10443_v53  ;;  %4963 = vmatprep.mubr.bf16.mxu1 %v10588_v36 }
  0x4b   : > { %4565 = vmatpush1.bf16.msra.mxu0 %v9030_v12  ;;  %4934 = vmatpush1.bf16.msra.mxu1 %v9033_v13  ;;  %v9122_v12 = vld [vmem:[%s13171_s1 + $0x504] ss:$20 sps:$4 sm:$0xff]   ;;  %v9127_v13 = vld [vmem:[%s13171_s1 + $0x78c] ss:$20 sps:$4 sm:$0xff]  }
  0x4c   : > { %4566 = vmatprep.subr.bf16.mxu0 %v9038_v14  ;;  %4935 = vmatprep.subr.bf16.mxu1 %v9041_v15  ;;  %v9120_v14 = vld [vmem:[%s13171_s1 + $0x500] ss:$20 sps:$4 sm:$0xff]   ;;  %v10707_v15 = vcombine.low %v10578_v33, %v10578_v33 }
  0x4d   : > { %v9146_v33 = vld [vmem:[%s13171_s1 + $0x5a0] ss:$20 sps:$4 sm:$0xff]  }
  0x4f   : > { %4567 = vmatpush1.bf16.msra.mxu0 %v9036_v16  ;;  %4936 = vmatpush1.bf16.msra.mxu1 %v9039_v17  ;;  %v9125_v16 = vld [vmem:[%s13171_s1 + $0x788] ss:$20 sps:$4 sm:$0xff]   ;;  %v9130_v17 = vld [vmem:[%s13171_s1 + $0x52c] ss:$20 sps:$4 sm:$0xff]  }
  0x50   : > { %4568 = vmatprep.subr.bf16.mxu0 %v9044_v18  ;;  %4937 = vmatprep.subr.bf16.mxu1 %v9047_v19  ;;  %v9133_v18 = vld [vmem:[%s13171_s1 + $0x7b4] ss:$20 sps:$4 sm:$0xff]   ;;  %v10719_v19 = vld [vmem:[%s10419_s26 + $0x18] sm:$0xff] }
  0x53   : > { %4569 = vmatpush1.bf16.msra.mxu0 %v9042_v20  ;;  %4938 = vmatpush1.bf16.msra.mxu1 %v9045_v21  ;;  %v9128_v20 = vld [vmem:[%s13171_s1 + $0x528] ss:$20 sps:$4 sm:$0xff]   ;;  %v9131_v21 = vld [vmem:[%s13171_s1 + $0x7b0] ss:$20 sps:$4 sm:$0xff]  }
  0x54   : > { %4570 = vmatprep.subr.bf16.mxu0 %v9050_v22  ;;  %4939 = vmatprep.subr.bf16.mxu1 %v9053_v23  ;;  %v10731_v22 = vcombine.high %v10719_v19, %v10719_v19  ;;  %v9136_v23 = vld [vmem:[%s13171_s1 + $0x554] ss:$20 sps:$4 sm:$0xff]  }
  0x57   : > { %4571 = vmatpush1.bf16.msra.mxu0 %v9048_v24  ;;  %4940 = vmatpush1.bf16.msra.mxu1 %v9051_v25  ;;  %v9139_v24 = vld [vmem:[%s13171_s1 + $0x7dc] ss:$20 sps:$4 sm:$0xff]  }
  0x58   : > { %4572 = vmatprep.subr.bf16.mxu0 %v9056_v26  ;;  %4941 = vmatprep.subr.bf16.mxu1 %v9059_v27  ;;  %v9134_v25 = vld [vmem:[%s13171_s1 + $0x550] ss:$20 sps:$4 sm:$0xff]   ;;  %v9137_v26 = vld [vmem:[%s13171_s1 + $0x7d8] ss:$20 sps:$4 sm:$0xff]  }
  0x59   : > { %v9142_v27 = vld [vmem:[%s13171_s1 + $0x57c] ss:$20 sps:$4 sm:$0xff]  }
  0x5b   : > { %4573 = vmatpush1.bf16.msra.mxu0 %v9054_v28  ;;  %4942 = vmatpush1.bf16.msra.mxu1 %v9057_v29  ;;  %v9145_v28 = vld [vmem:[%s13171_s1 + $0x804] ss:$20 sps:$4 sm:$0xff]  }
  0x5c   : > { %4574 = vmatprep.subr.bf16.mxu0 %v9062_v30  ;;  %4943 = vmatprep.subr.bf16.mxu1 %v9065_v31  ;;  %v9140_v29 = vld [vmem:[%s13171_s1 + $0x578] ss:$20 sps:$4 sm:$0xff]   ;;  %v9143_v30 = vld [vmem:[%s13171_s1 + $0x800] ss:$20 sps:$4 sm:$0xff]  }
  0x5d   : > { %v9148_v31 = vld [vmem:[%s13171_s1 + $0x5a4] ss:$20 sps:$4 sm:$0xff]  }
  0x5f   : > { %4575 = vmatpush1.bf16.msra.mxu0 %v9060_v32  ;;  %4944 = vmatpush1.bf16.msra.mxu1 %v9063_v34  ;;  %v9151_v32 = vld [vmem:[%s13171_s1 + $0x82c] ss:$20 sps:$4 sm:$0xff]   ;;  %v9149_v34 = vld [vmem:[%s13171_s1 + $0x828] ss:$20 sps:$4 sm:$0xff]  }
  0x60   : > { %4576 = vmatprep.subr.bf16.mxu0 %v9068_v35  ;;  %4945 = vmatprep.subr.bf16.mxu1 %v9071_v37  ;;  %v9154_v35 = vld [vmem:[%s13171_s1 + $0x5cc] ss:$20 sps:$4 sm:$0xff]   ;;  %v9157_v37 = vld [vmem:[%s13171_s1 + $0x854] ss:$20 sps:$4 sm:$0xff]  }
  0x63   : > { %4577 = vmatpush1.bf16.msra.mxu0 %v9066_v38  ;;  %4946 = vmatpush1.bf16.msra.mxu1 %v9069_v39  ;;  %v9152_v38 = vld [vmem:[%s13171_s1 + $0x5c8] ss:$20 sps:$4 sm:$0xff]   ;;  %v9155_v39 = vld [vmem:[%s13171_s1 + $0x850] ss:$20 sps:$4 sm:$0xff]  }
  0x64   : > { %4578 = vmatprep.subr.bf16.mxu0 %v9074_v40  ;;  %4947 = vmatprep.subr.bf16.mxu1 %v9077_v41  ;;  %v9160_v40 = vld [vmem:[%s13171_s1 + $0x5f4] ss:$20 sps:$4 sm:$0xff]   ;;  %v9163_v41 = vld [vmem:[%s13171_s1 + $0x87c] ss:$20 sps:$4 sm:$0xff]  }
  0x67   : > { %4579 = vmatpush1.bf16.msra.mxu0 %v9072_v42  ;;  %4948 = vmatpush1.bf16.msra.mxu1 %v9075_v43  ;;  %v9158_v42 = vld [vmem:[%s13171_s1 + $0x5f0] ss:$20 sps:$4 sm:$0xff]   ;;  %v9161_v43 = vld [vmem:[%s13171_s1 + $0x878] ss:$20 sps:$4 sm:$0xff]  }
  0x68   : > { %4580 = vmatprep.subr.bf16.mxu0 %v9080_v44  ;;  %4949 = vmatprep.subr.bf16.mxu1 %v9083_v45  ;;  %v9166_v44 = vld [vmem:[%s13171_s1 + $0x61c] ss:$20 sps:$4 sm:$0xff]   ;;  %v9169_v45 = vld [vmem:[%s13171_s1 + $0x8a4] ss:$20 sps:$4 sm:$0xff]  }
  0x6b   : > { %4581 = vmatpush1.bf16.msra.mxu0 %v9078_v46  ;;  %4950 = vmatpush1.bf16.msra.mxu1 %v9081_v47  ;;  %v9164_v46 = vld [vmem:[%s13171_s1 + $0x618] ss:$20 sps:$4 sm:$0xff]   ;;  %v9167_v47 = vld [vmem:[%s13171_s1 + $0x8a0] ss:$20 sps:$4 sm:$0xff]  }
  0x6c   : > { %4582 = vmatprep.subr.bf16.mxu0 %v9086_v49  ;;  %4951 = vmatprep.subr.bf16.mxu1 %v9089_v50  ;;  %v9172_v49 = vld [vmem:[%s13171_s1 + $0x644] ss:$20 sps:$4 sm:$0xff]   ;;  %v9175_v50 = vld [vmem:[%s13171_s1 + $0x8cc] ss:$20 sps:$4 sm:$0xff]  }
  0x6f   : > { %4583 = vmatpush1.bf16.msra.mxu0 %v9084_v51  ;;  %4952 = vmatpush1.bf16.msra.mxu1 %v9087_v52  ;;  %v9170_v51 = vld [vmem:[%s13171_s1 + $0x640] ss:$20 sps:$4 sm:$0xff]   ;;  %v9173_v52 = vld [vmem:[%s13171_s1 + $0x8c8] ss:$20 sps:$4 sm:$0xff]  }
  0x70   : > { %4584 = vmatprep.subr.bf16.mxu0 %v9092_v54  ;;  %4953 = vmatprep.subr.bf16.mxu1 %v9095_v55  ;;  %v9178_v54 = vld [vmem:[%s13171_s1 + $0x66c] ss:$20 sps:$4 sm:$0xff]   ;;  %v9181_v55 = vld [vmem:[%s13171_s1 + $0x8f4] ss:$20 sps:$4 sm:$0xff]  }
  0x73   : > { %4585 = vmatpush1.bf16.msra.mxu0 %v9090_v56  ;;  %4954 = vmatpush1.bf16.msra.mxu1 %v9093_v57  ;;  %v9176_v56 = vld [vmem:[%s13171_s1 + $0x668] ss:$20 sps:$4 sm:$0xff]   ;;  %v9179_v57 = vld [vmem:[%s13171_s1 + $0x8f0] ss:$20 sps:$4 sm:$0xff]  }
  0x74   : > { %4586 = vmatprep.subr.bf16.mxu0 %v9098_v58  ;;  %4955 = vmatprep.subr.bf16.mxu1 %v9101_v59  ;;  %v9184_v58 = vld [vmem:[%s13171_s1 + $0x694] ss:$20 sps:$4 sm:$0xff]   ;;  %v9187_v59 = vld [vmem:[%s13171_s1 + $0x91c] ss:$20 sps:$4 sm:$0xff]  }
  0x77   : > { %4587 = vmatpush1.bf16.msra.mxu0 %v9096_v60  ;;  %4956 = vmatpush1.bf16.msra.mxu1 %v9099_v61  ;;  %v9182_v60 = vld [vmem:[%s13171_s1 + $0x690] ss:$20 sps:$4 sm:$0xff]   ;;  %v9185_v61 = vld [vmem:[%s13171_s1 + $0x918] ss:$20 sps:$4 sm:$0xff]  }
  0x78   : > { %4588 = vmatprep.subr.bf16.mxu0 %v9104_v62  ;;  %4957 = vmatprep.subr.bf16.mxu1 %v9107_v63  ;;  %v9190_v62 = vld [vmem:[%s13171_s1 + $0x6bc] ss:$20 sps:$4 sm:$0xff]   ;;  %v9193_v63 = vld [vmem:[%s13171_s1 + $0x944] ss:$20 sps:$4 sm:$0xff]  }
  0x7b   : > { %4589 = vmatpush1.bf16.msra.mxu0 %v9102_v0  ;;  %4958 = vmatpush1.bf16.msra.mxu1 %v9105_v1  ;;  %v9188_v0 = vld [vmem:[%s13171_s1 + $0x6b8] ss:$20 sps:$4 sm:$0xff]   ;;  %v9191_v1 = vld [vmem:[%s13171_s1 + $0x940] ss:$20 sps:$4 sm:$0xff]  }
  0x7c   : > { %4590 = vmatprep.subr.bf16.mxu0 %v9110_v2  ;;  %4959 = vmatprep.subr.bf16.mxu1 %v9113_v3  ;;  %v9196_v2 = vld [vmem:[%s13171_s1 + $0x6e4] ss:$20 sps:$4 sm:$0xff]   ;;  %v9199_v3 = vld [vmem:[%s13171_s1 + $0x96c] ss:$20 sps:$4 sm:$0xff]  }
  0x7f   : > { %4591 = vmatpush1.bf16.msra.mxu0 %v9108_v4  ;;  %4960 = vmatpush1.bf16.msra.mxu1 %v9111_v5  ;;  %v9194_v4 = vld [vmem:[%s13171_s1 + $0x6e0] ss:$20 sps:$4 sm:$0xff]   ;;  %v9197_v5 = vld [vmem:[%s13171_s1 + $0x968] ss:$20 sps:$4 sm:$0xff]  }
  0x80   : > { %4592 = vmatprep.subr.bf16.mxu0 %v9116_v8  ;;  %4961 = vmatprep.subr.bf16.mxu1 %v9119_v9  ;;  %v9202_v8 = vld [vmem:[%s13171_s1 + $0x70c] ss:$20 sps:$4 sm:$0xff]   ;;  %v9205_v9 = vld [vmem:[%s13171_s1 + $0x994] ss:$20 sps:$4 sm:$0xff]  }
  0x83   : > { %4593 = vmatpush1.bf16.msra.mxu0 %v9114_v10  ;;  %4962 = vmatpush1.bf16.msra.mxu1 %v9117_v11  ;;  %v9200_v10 = vld [vmem:[%s13171_s1 + $0x708] ss:$20 sps:$4 sm:$0xff]   ;;  %v9203_v11 = vld [vmem:[%s13171_s1 + $0x990] ss:$20 sps:$4 sm:$0xff]  }
  0x84   : > { %4603 = vmatprep.subr.bf16.mxu0 %v9122_v12  ;;  %4972 = vmatprep.subr.bf16.mxu1 %v9127_v13  ;;  %v9208_v12 = vld [vmem:[%s13171_s1 + $0x734] ss:$20 sps:$4 sm:$0xff]   ;;  %v9211_v13 = vld [vmem:[%s13171_s1 + $0x9bc] ss:$20 sps:$4 sm:$0xff]  }
  0x86   : > { %4595 = vmatmul.mubr.bf16.vlgmr.msra.gmra.mrb[0].mxu0 %v10497_v7  ;;  %4964 = vmatmul.mubr.bf16.vlgmr.msra.gmra.mrb[0].mxu1 %v10707_v15 }
  0x87   : > { %4604 = vmatpush1.bf16.msra.mxu0 %v9120_v14  ;;  %4973 = vmatpush1.bf16.msra.mxu1 %v9125_v16  ;;  %v9206_v14 = vld [vmem:[%s13171_s1 + $0x730] ss:$20 sps:$4 sm:$0xff]   ;;  %v9209_v16 = vld [vmem:[%s13171_s1 + $0x9b8] ss:$20 sps:$4 sm:$0xff]  }
  0x88   : > { %4605 = vmatprep.subr.bf16.mxu0 %v9130_v17  ;;  %4974 = vmatprep.subr.bf16.mxu1 %v9133_v18  ;;  %v9214_v17 = vld [vmem:[%s13171_s1 + $0x75c] ss:$20 sps:$4 sm:$0xff]   ;;  %v9217_v18 = vld [vmem:[%s13171_s1 + $0x9e4] ss:$20 sps:$4 sm:$0xff]  }
  0x89   : > { %4635 = vmatprep.mubr.bf16.mxu0 %v10588_v36  ;;  %5004 = vmatprep.mubr.bf16.mxu1 %v10731_v22 }
  0x8b   : > { %4606 = vmatpush1.bf16.msra.mxu0 %v9128_v20  ;;  %4975 = vmatpush1.bf16.msra.mxu1 %v9131_v21  ;;  %v9212_v20 = vld [vmem:[%s13171_s1 + $0x758] ss:$20 sps:$4 sm:$0xff]   ;;  %v9215_v21 = vld [vmem:[%s13171_s1 + $0x9e0] ss:$20 sps:$4 sm:$0xff]  }
  0x8c   : > { %4607 = vmatprep.subr.bf16.mxu0 %v9136_v23  ;;  %4976 = vmatprep.subr.bf16.mxu1 %v9139_v24  ;;  %v9220_v23 = vld [vmem:[%s13171_s1 + $0x784] ss:$20 sps:$4 sm:$0xff]   ;;  %v9225_v24 = vld [vmem:[%s13171_s1 + $0xa0c] ss:$20 sps:$4 sm:$0xff]  }
  0x8f   : > { %4608 = vmatpush1.bf16.msra.mxu0 %v9134_v25  ;;  %4977 = vmatpush1.bf16.msra.mxu1 %v9137_v26  ;;  %v9218_v25 = vld [vmem:[%s13171_s1 + $0x780] ss:$20 sps:$4 sm:$0xff]   ;;  %v10914_v26 = vcombine.low %v10719_v19, %v10719_v19 }
  0x90   : > { %4609 = vmatprep.subr.bf16.mxu0 %v9142_v27  ;;  %4978 = vmatprep.subr.bf16.mxu1 %v9145_v28  ;;  %v10917_v27 = vld [vmem:[%s10419_s26 + $0x20] sm:$0xff]  ;;  %v9223_v28 = vld [vmem:[%s13171_s1 + $0xa08] ss:$20 sps:$4 sm:$0xff]  }
  0x91   : > { %v10930_v19 = vcombine.high %v10917_v27, %v10917_v27 }
  0x93   : > { %4610 = vmatpush1.bf16.msra.mxu0 %v9140_v29  ;;  %4979 = vmatpush1.bf16.msra.mxu1 %v9143_v30  ;;  %v9228_v29 = vld [vmem:[%s13171_s1 + $0x7ac] ss:$20 sps:$4 sm:$0xff]   ;;  %v9231_v30 = vld [vmem:[%s13171_s1 + $0xa34] ss:$20 sps:$4 sm:$0xff]  }
  0x94   : > { %4611 = vmatprep.subr.bf16.mxu0 %v9148_v31  ;;  %4980 = vmatprep.subr.bf16.mxu1 %v9151_v32  ;;  %v9226_v31 = vld [vmem:[%s13171_s1 + $0x7a8] ss:$20 sps:$4 sm:$0xff]   ;;  %v9229_v32 = vld [vmem:[%s13171_s1 + $0xa30] ss:$20 sps:$4 sm:$0xff]  }
  0x97   : > { %4612 = vmatpush1.bf16.msra.mxu0 %v9146_v33  ;;  %4981 = vmatpush1.bf16.msra.mxu1 %v9149_v34  ;;  %v9234_v33 = vld [vmem:[%s13171_s1 + $0x7d4] ss:$20 sps:$4 sm:$0xff]   ;;  %v9237_v34 = vld [vmem:[%s13171_s1 + $0xa5c] ss:$20 sps:$4 sm:$0xff]  }
  0x98   : > { %4613 = vmatprep.subr.bf16.mxu0 %v9154_v35  ;;  %4982 = vmatprep.subr.bf16.mxu1 %v9157_v37  ;;  %v9232_v35 = vld [vmem:[%s13171_s1 + $0x7d0] ss:$20 sps:$4 sm:$0xff]   ;;  %v9235_v37 = vld [vmem:[%s13171_s1 + $0xa58] ss:$20 sps:$4 sm:$0xff]  }
  0x9b   : > { %4614 = vmatpush1.bf16.msra.mxu0 %v9152_v38  ;;  %4983 = vmatpush1.bf16.msra.mxu1 %v9155_v39  ;;  %v9240_v38 = vld [vmem:[%s13171_s1 + $0x7fc] ss:$20 sps:$4 sm:$0xff]   ;;  %v9243_v39 = vld [vmem:[%s13171_s1 + $0xa84] ss:$20 sps:$4 sm:$0xff]  }
  0x9c   : > { %4615 = vmatprep.subr.bf16.mxu0 %v9160_v40  ;;  %4984 = vmatprep.subr.bf16.mxu1 %v9163_v41  ;;  %v9238_v40 = vld [vmem:[%s13171_s1 + $0x7f8] ss:$20 sps:$4 sm:$0xff]   ;;  %v9241_v41 = vld [vmem:[%s13171_s1 + $0xa80] ss:$20 sps:$4 sm:$0xff]  }
  0x9f   : > { %4616 = vmatpush1.bf16.msra.mxu0 %v9158_v42  ;;  %4985 = vmatpush1.bf16.msra.mxu1 %v9161_v43  ;;  %v9246_v42 = vld [vmem:[%s13171_s1 + $0x824] ss:$20 sps:$4 sm:$0xff]   ;;  %v9249_v43 = vld [vmem:[%s13171_s1 + $0xaac] ss:$20 sps:$4 sm:$0xff]  }
  0xa0   : > { %4617 = vmatprep.subr.bf16.mxu0 %v9166_v44  ;;  %4986 = vmatprep.subr.bf16.mxu1 %v9169_v45  ;;  %v9244_v44 = vld [vmem:[%s13171_s1 + $0x820] ss:$20 sps:$4 sm:$0xff]   ;;  %v9247_v45 = vld [vmem:[%s13171_s1 + $0xaa8] ss:$20 sps:$4 sm:$0xff]  }
  0xa3   : > { %4618 = vmatpush1.bf16.msra.mxu0 %v9164_v46  ;;  %4987 = vmatpush1.bf16.msra.mxu1 %v9167_v47  ;;  %v9252_v46 = vld [vmem:[%s13171_s1 + $0x84c] ss:$20 sps:$4 sm:$0xff]   ;;  %v9255_v47 = vld [vmem:[%s13171_s1 + $0xad4] ss:$20 sps:$4 sm:$0xff]  }
  0xa4   : > { %4619 = vmatprep.subr.bf16.mxu0 %v9172_v49  ;;  %4988 = vmatprep.subr.bf16.mxu1 %v9175_v50  ;;  %v9250_v49 = vld [vmem:[%s13171_s1 + $0x848] ss:$20 sps:$4 sm:$0xff]   ;;  %v9253_v50 = vld [vmem:[%s13171_s1 + $0xad0] ss:$20 sps:$4 sm:$0xff]  }
  0xa7   : > { %4620 = vmatpush1.bf16.msra.mxu0 %v9170_v51  ;;  %4989 = vmatpush1.bf16.msra.mxu1 %v9173_v52  ;;  %v9258_v51 = vld [vmem:[%s13171_s1 + $0x874] ss:$20 sps:$4 sm:$0xff]   ;;  %v9261_v52 = vld [vmem:[%s13171_s1 + $0xafc] ss:$20 sps:$4 sm:$0xff]  }
  0xa8   : > { %4621 = vmatprep.subr.bf16.mxu0 %v9178_v54  ;;  %4990 = vmatprep.subr.bf16.mxu1 %v9181_v55  ;;  %v9256_v54 = vld [vmem:[%s13171_s1 + $0x870] ss:$20 sps:$4 sm:$0xff]   ;;  %v9259_v55 = vld [vmem:[%s13171_s1 + $0xaf8] ss:$20 sps:$4 sm:$0xff]  }
  0xab   : > { %4622 = vmatpush1.bf16.msra.mxu0 %v9176_v56  ;;  %4991 = vmatpush1.bf16.msra.mxu1 %v9179_v57  ;;  %v9264_v56 = vld [vmem:[%s13171_s1 + $0x89c] ss:$20 sps:$4 sm:$0xff]   ;;  %v9267_v57 = vld [vmem:[%s13171_s1 + $0xb24] ss:$20 sps:$4 sm:$0xff]  }
  0xac   : > { %4623 = vmatprep.subr.bf16.mxu0 %v9184_v58  ;;  %4992 = vmatprep.subr.bf16.mxu1 %v9187_v59  ;;  %v9262_v58 = vld [vmem:[%s13171_s1 + $0x898] ss:$20 sps:$4 sm:$0xff]   ;;  %v9265_v59 = vld [vmem:[%s13171_s1 + $0xb20] ss:$20 sps:$4 sm:$0xff]  }
  0xaf   : > { %4624 = vmatpush1.bf16.msra.mxu0 %v9182_v60  ;;  %4993 = vmatpush1.bf16.msra.mxu1 %v9185_v61  ;;  %v9270_v60 = vld [vmem:[%s13171_s1 + $0x8c4] ss:$20 sps:$4 sm:$0xff]   ;;  %v9273_v61 = vld [vmem:[%s13171_s1 + $0xb4c] ss:$20 sps:$4 sm:$0xff]  }
  0xb0   : > { %4625 = vmatprep.subr.bf16.mxu0 %v9190_v62  ;;  %4994 = vmatprep.subr.bf16.mxu1 %v9193_v63  ;;  %v9268_v62 = vld [vmem:[%s13171_s1 + $0x8c0] ss:$20 sps:$4 sm:$0xff]   ;;  %v9271_v63 = vld [vmem:[%s13171_s1 + $0xb48] ss:$20 sps:$4 sm:$0xff]  }
  0xb3   : > { %4626 = vmatpush1.bf16.msra.mxu0 %v9188_v0  ;;  %4995 = vmatpush1.bf16.msra.mxu1 %v9191_v1  ;;  %v9276_v0 = vld [vmem:[%s13171_s1 + $0x8ec] ss:$20 sps:$4 sm:$0xff]   ;;  %v9279_v1 = vld [vmem:[%s13171_s1 + $0xb74] ss:$20 sps:$4 sm:$0xff]  }
  0xb4   : > { %4627 = vmatprep.subr.bf16.mxu0 %v9196_v2  ;;  %4996 = vmatprep.subr.bf16.mxu1 %v9199_v3  ;;  %v9274_v2 = vld [vmem:[%s13171_s1 + $0x8e8] ss:$20 sps:$4 sm:$0xff]   ;;  %v9277_v3 = vld [vmem:[%s13171_s1 + $0xb70] ss:$20 sps:$4 sm:$0xff]  }
  0xb7   : > { %4628 = vmatpush1.bf16.msra.mxu0 %v9194_v4  ;;  %4997 = vmatpush1.bf16.msra.mxu1 %v9197_v5  ;;  %v9282_v4 = vld [vmem:[%s13171_s1 + $0x914] ss:$20 sps:$4 sm:$0xff]   ;;  %v9285_v5 = vld [vmem:[%s13171_s1 + $0xb9c] ss:$20 sps:$4 sm:$0xff]  }
  0xb8   : > { %4629 = vmatprep.subr.bf16.mxu0 %v9202_v8  ;;  %4998 = vmatprep.subr.bf16.mxu1 %v9205_v9  ;;  %v9280_v8 = vld [vmem:[%s13171_s1 + $0x910] ss:$20 sps:$4 sm:$0xff]   ;;  %v9283_v9 = vld [vmem:[%s13171_s1 + $0xb98] ss:$20 sps:$4 sm:$0xff]  }
  0xbb   : > { %4630 = vmatpush1.bf16.msra.mxu0 %v9200_v10  ;;  %4999 = vmatpush1.bf16.msra.mxu1 %v9203_v11  ;;  %v9288_v10 = vld [vmem:[%s13171_s1 + $0x93c] ss:$20 sps:$4 sm:$0xff]   ;;  %v9291_v11 = vld [vmem:[%s13171_s1 + $0xbc4] ss:$20 sps:$4 sm:$0xff]  }
  0xbc   : > { %4631 = vmatprep.subr.bf16.mxu0 %v9208_v12  ;;  %5000 = vmatprep.subr.bf16.mxu1 %v9211_v13  ;;  %v9286_v12 = vld [vmem:[%s13171_s1 + $0x938] ss:$20 sps:$4 sm:$0xff]   ;;  %v9289_v13 = vld [vmem:[%s13171_s1 + $0xbc0] ss:$20 sps:$4 sm:$0xff]  }
  0xbf   : > { %4632 = vmatpush1.bf16.msra.mxu0 %v9206_v14  ;;  %5001 = vmatpush1.bf16.msra.mxu1 %v9209_v16  ;;  %v9294_v14 = vld [vmem:[%s13171_s1 + $0x964] ss:$20 sps:$4 sm:$0xff]   ;;  %v9297_v16 = vld [vmem:[%s13171_s1 + $0xbec] ss:$20 sps:$4 sm:$0xff]  }
  0xc0   : > { %4633 = vmatprep.subr.bf16.mxu0 %v9214_v17  ;;  %5002 = vmatprep.subr.bf16.mxu1 %v9217_v18  ;;  %v9292_v17 = vld [vmem:[%s13171_s1 + $0x960] ss:$20 sps:$4 sm:$0xff]   ;;  %v9295_v18 = vld [vmem:[%s13171_s1 + $0xbe8] ss:$20 sps:$4 sm:$0xff]  }
  0xc3   : > { %4634 = vmatpush1.bf16.msra.mxu0 %v9212_v20  ;;  %5003 = vmatpush1.bf16.msra.mxu1 %v9215_v21  ;;  %v9300_v20 = vld [vmem:[%s13171_s1 + $0x98c] ss:$20 sps:$4 sm:$0xff]   ;;  %v9303_v21 = vld [vmem:[%s13171_s1 + $0xc14] ss:$20 sps:$4 sm:$0xff]  }
  0xc4   : > { %4644 = vmatprep.subr.bf16.mxu0 %v9220_v23  ;;  %5013 = vmatprep.subr.bf16.mxu1 %v9225_v24  ;;  %v9298_v23 = vld [vmem:[%s13171_s1 + $0x988] ss:$20 sps:$4 sm:$0xff]   ;;  %v9301_v24 = vld [vmem:[%s13171_s1 + $0xc10] ss:$20 sps:$4 sm:$0xff]  }
  0xc6   : > { %4636 = vmatmul.mubr.bf16.vlgmr.msra.gmra.mrb[0].mxu0 %v10707_v15  ;;  %5005 = vmatmul.mubr.bf16.vlgmr.msra.gmra.mrb[0].mxu1 %v10914_v26 }
  0xc7   : > { %4645 = vmatpush1.bf16.msra.mxu0 %v9218_v25  ;;  %5014 = vmatpush1.bf16.msra.mxu1 %v9223_v28  ;;  %v9306_v25 = vld [vmem:[%s13171_s1 + $0x9b4] ss:$20 sps:$4 sm:$0xff]   ;;  %v9309_v28 = vld [vmem:[%s13171_s1 + $0xc3c] ss:$20 sps:$4 sm:$0xff]  }
  0xc8   : > { %4646 = vmatprep.subr.bf16.mxu0 %v9228_v29  ;;  %5015 = vmatprep.subr.bf16.mxu1 %v9231_v30  ;;  %v9304_v29 = vld [vmem:[%s13171_s1 + $0x9b0] ss:$20 sps:$4 sm:$0xff]   ;;  %v9307_v30 = vld [vmem:[%s13171_s1 + $0xc38] ss:$20 sps:$4 sm:$0xff]  }
  0xc9   : > { %4676 = vmatprep.mubr.bf16.mxu0 %v10731_v22  ;;  %5045 = vmatprep.mubr.bf16.mxu1 %v10930_v19 }
  0xcb   : > { %4647 = vmatpush1.bf16.msra.mxu0 %v9226_v31  ;;  %5016 = vmatpush1.bf16.msra.mxu1 %v9229_v32  ;;  %v9312_v31 = vld [vmem:[%s13171_s1 + $0x9dc] ss:$20 sps:$4 sm:$0xff]   ;;  %v9315_v32 = vld [vmem:[%s13171_s1 + $0xc64] ss:$20 sps:$4 sm:$0xff]  }
  0xcc   : > { %4648 = vmatprep.subr.bf16.mxu0 %v9234_v33  ;;  %5017 = vmatprep.subr.bf16.mxu1 %v9237_v34  ;;  %v9310_v33 = vld [vmem:[%s13171_s1 + $0x9d8] ss:$20 sps:$4 sm:$0xff]   ;;  %v9313_v34 = vld [vmem:[%s13171_s1 + $0xc60] ss:$20 sps:$4 sm:$0xff]  }
  0xcf   : > { %4649 = vmatpush1.bf16.msra.mxu0 %v9232_v35  ;;  %5018 = vmatpush1.bf16.msra.mxu1 %v9235_v37  ;;  %v9318_v35 = vld [vmem:[%s13171_s1 + $0xa04] ss:$20 sps:$4 sm:$0xff]   ;;  %v9323_v37 = vld [vmem:[%s13171_s1 + $0xc8c] ss:$20 sps:$4 sm:$0xff]  }
  0xd0   : > { %4650 = vmatprep.subr.bf16.mxu0 %v9240_v38  ;;  %5019 = vmatprep.subr.bf16.mxu1 %v9243_v39  ;;  %v11118_v38 = vcombine.low %v10917_v27, %v10917_v27  ;;  %v11121_v39 = vld [vmem:[%s10419_s26 + $0x28] sm:$0xff] }
  0xd1   : > { %v9329_v27 = vld [vmem:[%s13171_s1 + $0xcb4] ss:$20 sps:$4 sm:$0xff]  }
  0xd3   : > { %4651 = vmatpush1.bf16.msra.mxu0 %v9238_v40  ;;  %5020 = vmatpush1.bf16.msra.mxu1 %v9241_v41  ;;  %v9316_v40 = vld [vmem:[%s13171_s1 + $0xa00] ss:$20 sps:$4 sm:$0xff]   ;;  %v9321_v41 = vld [vmem:[%s13171_s1 + $0xc88] ss:$20 sps:$4 sm:$0xff]  }
  0xd4   : > { %4652 = vmatprep.subr.bf16.mxu0 %v9246_v42  ;;  %5021 = vmatprep.subr.bf16.mxu1 %v9249_v43  ;;  %v9326_v42 = vld [vmem:[%s13171_s1 + $0xa2c] ss:$20 sps:$4 sm:$0xff]   ;;  %v11137_v43 = vcombine.high %v11121_v39, %v11121_v39 }
  0xd7   : > { %4653 = vmatpush1.bf16.msra.mxu0 %v9244_v44  ;;  %5022 = vmatpush1.bf16.msra.mxu1 %v9247_v45  ;;  %v9324_v44 = vld [vmem:[%s13171_s1 + $0xa28] ss:$20 sps:$4 sm:$0xff]   ;;  %v9327_v45 = vld [vmem:[%s13171_s1 + $0xcb0] ss:$20 sps:$4 sm:$0xff]  }
  0xd8   : > { %4654 = vmatprep.subr.bf16.mxu0 %v9252_v46  ;;  %5023 = vmatprep.subr.bf16.mxu1 %v9255_v47  ;;  %v9332_v46 = vld [vmem:[%s13171_s1 + $0xa54] ss:$20 sps:$4 sm:$0xff]   ;;  %v9335_v47 = vld [vmem:[%s13171_s1 + $0xcdc] ss:$20 sps:$4 sm:$0xff]  }
  0xdb   : > { %4655 = vmatpush1.bf16.msra.mxu0 %v9250_v49  ;;  %5024 = vmatpush1.bf16.msra.mxu1 %v9253_v50  ;;  %v9330_v49 = vld [vmem:[%s13171_s1 + $0xa50] ss:$20 sps:$4 sm:$0xff]   ;;  %v9333_v50 = vld [vmem:[%s13171_s1 + $0xcd8] ss:$20 sps:$4 sm:$0xff]  }
  0xdc   : > { %4656 = vmatprep.subr.bf16.mxu0 %v9258_v51  ;;  %5025 = vmatprep.subr.bf16.mxu1 %v9261_v52  ;;  %v9338_v51 = vld [vmem:[%s13171_s1 + $0xa7c] ss:$20 sps:$4 sm:$0xff]   ;;  %v9341_v52 = vld [vmem:[%s13171_s1 + $0xd04] ss:$20 sps:$4 sm:$0xff]  }
  0xdf   : > { %4657 = vmatpush1.bf16.msra.mxu0 %v9256_v54  ;;  %5026 = vmatpush1.bf16.msra.mxu1 %v9259_v55  ;;  %v9336_v54 = vld [vmem:[%s13171_s1 + $0xa78] ss:$20 sps:$4 sm:$0xff]   ;;  %v9339_v55 = vld [vmem:[%s13171_s1 + $0xd00] ss:$20 sps:$4 sm:$0xff]  }
  0xe0   : > { %4658 = vmatprep.subr.bf16.mxu0 %v9264_v56  ;;  %5027 = vmatprep.subr.bf16.mxu1 %v9267_v57  ;;  %v9344_v56 = vld [vmem:[%s13171_s1 + $0xaa4] ss:$20 sps:$4 sm:$0xff]   ;;  %v9347_v57 = vld [vmem:[%s13171_s1 + $0xd2c] ss:$20 sps:$4 sm:$0xff]  }
  0xe3   : > { %4659 = vmatpush1.bf16.msra.mxu0 %v9262_v58  ;;  %5028 = vmatpush1.bf16.msra.mxu1 %v9265_v59  ;;  %v9342_v58 = vld [vmem:[%s13171_s1 + $0xaa0] ss:$20 sps:$4 sm:$0xff]   ;;  %v9345_v59 = vld [vmem:[%s13171_s1 + $0xd28] ss:$20 sps:$4 sm:$0xff]  }
  0xe4   : > { %4660 = vmatprep.subr.bf16.mxu0 %v9270_v60  ;;  %5029 = vmatprep.subr.bf16.mxu1 %v9273_v61  ;;  %v9350_v60 = vld [vmem:[%s13171_s1 + $0xacc] ss:$20 sps:$4 sm:$0xff]   ;;  %v9353_v61 = vld [vmem:[%s13171_s1 + $0xd54] ss:$20 sps:$4 sm:$0xff]  }
  0xe7   : > { %4661 = vmatpush1.bf16.msra.mxu0 %v9268_v62  ;;  %5030 = vmatpush1.bf16.msra.mxu1 %v9271_v63  ;;  %v9348_v62 = vld [vmem:[%s13171_s1 + $0xac8] ss:$20 sps:$4 sm:$0xff]   ;;  %v9351_v63 = vld [vmem:[%s13171_s1 + $0xd50] ss:$20 sps:$4 sm:$0xff]  }
  0xe8   : > { %4662 = vmatprep.subr.bf16.mxu0 %v9276_v0  ;;  %5031 = vmatprep.subr.bf16.mxu1 %v9279_v1  ;;  %v9356_v0 = vld [vmem:[%s13171_s1 + $0xaf4] ss:$20 sps:$4 sm:$0xff]   ;;  %v9359_v1 = vld [vmem:[%s13171_s1 + $0xd7c] ss:$20 sps:$4 sm:$0xff]  }
  0xeb   : > { %4663 = vmatpush1.bf16.msra.mxu0 %v9274_v2  ;;  %5032 = vmatpush1.bf16.msra.mxu1 %v9277_v3  ;;  %v9354_v2 = vld [vmem:[%s13171_s1 + $0xaf0] ss:$20 sps:$4 sm:$0xff]   ;;  %v9357_v3 = vld [vmem:[%s13171_s1 + $0xd78] ss:$20 sps:$4 sm:$0xff]  }
  0xec   : > { %4664 = vmatprep.subr.bf16.mxu0 %v9282_v4  ;;  %5033 = vmatprep.subr.bf16.mxu1 %v9285_v5  ;;  %v9362_v4 = vld [vmem:[%s13171_s1 + $0xb1c] ss:$20 sps:$4 sm:$0xff]   ;;  %v9365_v5 = vld [vmem:[%s13171_s1 + $0xda4] ss:$20 sps:$4 sm:$0xff]  }
  0xef   : > { %4665 = vmatpush1.bf16.msra.mxu0 %v9280_v8  ;;  %5034 = vmatpush1.bf16.msra.mxu1 %v9283_v9  ;;  %v9360_v8 = vld [vmem:[%s13171_s1 + $0xb18] ss:$20 sps:$4 sm:$0xff]   ;;  %v9363_v9 = vld [vmem:[%s13171_s1 + $0xda0] ss:$20 sps:$4 sm:$0xff]  }
  0xf0   : > { %4666 = vmatprep.subr.bf16.mxu0 %v9288_v10  ;;  %5035 = vmatprep.subr.bf16.mxu1 %v9291_v11  ;;  %v9368_v10 = vld [vmem:[%s13171_s1 + $0xb44] ss:$20 sps:$4 sm:$0xff]   ;;  %v9371_v11 = vld [vmem:[%s13171_s1 + $0xdcc] ss:$20 sps:$4 sm:$0xff]  }
  0xf3   : > { %4667 = vmatpush1.bf16.msra.mxu0 %v9286_v12  ;;  %5036 = vmatpush1.bf16.msra.mxu1 %v9289_v13  ;;  %v9366_v12 = vld [vmem:[%s13171_s1 + $0xb40] ss:$20 sps:$4 sm:$0xff]   ;;  %v9369_v13 = vld [vmem:[%s13171_s1 + $0xdc8] ss:$20 sps:$4 sm:$0xff]  }
  0xf4   : > { %4668 = vmatprep.subr.bf16.mxu0 %v9294_v14  ;;  %5037 = vmatprep.subr.bf16.mxu1 %v9297_v16  ;;  %v9374_v14 = vld [vmem:[%s13171_s1 + $0xb6c] ss:$20 sps:$4 sm:$0xff]   ;;  %v9377_v16 = vld [vmem:[%s13171_s1 + $0xdf4] ss:$20 sps:$4 sm:$0xff]  }
  0xf7   : > { %4669 = vmatpush1.bf16.msra.mxu0 %v9292_v17  ;;  %5038 = vmatpush1.bf16.msra.mxu1 %v9295_v18  ;;  %v9372_v17 = vld [vmem:[%s13171_s1 + $0xb68] ss:$20 sps:$4 sm:$0xff]   ;;  %v9375_v18 = vld [vmem:[%s13171_s1 + $0xdf0] ss:$20 sps:$4 sm:$0xff]  }
  0xf8   : > { %4670 = vmatprep.subr.bf16.mxu0 %v9300_v20  ;;  %5039 = vmatprep.subr.bf16.mxu1 %v9303_v21  ;;  %v9380_v20 = vld [vmem:[%s13171_s1 + $0xb94] ss:$20 sps:$4 sm:$0xff]   ;;  %v9383_v21 = vld [vmem:[%s13171_s1 + $0xe1c] ss:$20 sps:$4 sm:$0xff]  }
  0xfb   : > { %4671 = vmatpush1.bf16.msra.mxu0 %v9298_v23  ;;  %5040 = vmatpush1.bf16.msra.mxu1 %v9301_v24  ;;  %v9378_v23 = vld [vmem:[%s13171_s1 + $0xb90] ss:$20 sps:$4 sm:$0xff]   ;;  %v9381_v24 = vld [vmem:[%s13171_s1 + $0xe18] ss:$20 sps:$4 sm:$0xff]  }
  0xfc   : > { %4672 = vmatprep.subr.bf16.mxu0 %v9306_v25  ;;  %5041 = vmatprep.subr.bf16.mxu1 %v9309_v28  ;;  %v9386_v25 = vld [vmem:[%s13171_s1 + $0xbbc] ss:$20 sps:$4 sm:$0xff]   ;;  %v9389_v28 = vld [vmem:[%s13171_s1 + $0xe44] ss:$20 sps:$4 sm:$0xff]  }
  0xff   : > { %4673 = vmatpush1.bf16.msra.mxu0 %v9304_v29  ;;  %5042 = vmatpush1.bf16.msra.mxu1 %v9307_v30  ;;  %v9384_v29 = vld [vmem:[%s13171_s1 + $0xbb8] ss:$20 sps:$4 sm:$0xff]   ;;  %v9387_v30 = vld [vmem:[%s13171_s1 + $0xe40] ss:$20 sps:$4 sm:$0xff]  }
 0x100   : > { %4674 = vmatprep.subr.bf16.mxu0 %v9312_v31  ;;  %5043 = vmatprep.subr.bf16.mxu1 %v9315_v32  ;;  %v9392_v31 = vld [vmem:[%s13171_s1 + $0xbe4] ss:$20 sps:$4 sm:$0xff]   ;;  %v9395_v32 = vld [vmem:[%s13171_s1 + $0xe6c] ss:$20 sps:$4 sm:$0xff]  }
 0x103   : > { %4675 = vmatpush1.bf16.msra.mxu0 %v9310_v33  ;;  %5044 = vmatpush1.bf16.msra.mxu1 %v9313_v34  ;;  %v9390_v33 = vld [vmem:[%s13171_s1 + $0xbe0] ss:$20 sps:$4 sm:$0xff]   ;;  %v9393_v34 = vld [vmem:[%s13171_s1 + $0xe68] ss:$20 sps:$4 sm:$0xff]  }
 0x104   : > { %4685 = vmatprep.subr.bf16.mxu0 %v9318_v35  ;;  %5054 = vmatprep.subr.bf16.mxu1 %v9323_v37  ;;  %v9398_v35 = vld [vmem:[%s13171_s1 + $0xc0c] ss:$20 sps:$4 sm:$0xff]   ;;  %v9401_v37 = vld [vmem:[%s13171_s1 + $0xe94] ss:$20 sps:$4 sm:$0xff]  }
 0x106   : > { %4677 = vmatmul.mubr.bf16.vlgmr.msra.gmra.mrb[0].mxu0 %v10914_v26  ;;  %5046 = vmatmul.mubr.bf16.vlgmr.msra.gmra.mrb[0].mxu1 %v11118_v38 }
 0x107   : > { %4686 = vmatpush1.bf16.msra.mxu0 %v9316_v40  ;;  %5055 = vmatpush1.bf16.msra.mxu1 %v9321_v41  ;;  %v9396_v40 = vld [vmem:[%s13171_s1 + $0xc08] ss:$20 sps:$4 sm:$0xff]   ;;  %v9399_v41 = vld [vmem:[%s13171_s1 + $0xe90] ss:$20 sps:$4 sm:$0xff]  }
 0x108   : > { %4687 = vmatprep.subr.bf16.mxu0 %v9326_v42  ;;  %5056 = vmatprep.subr.bf16.mxu1 %v9329_v27  ;;  %v9404_v42 = vld [vmem:[%s13171_s1 + $0xc34] ss:$20 sps:$4 sm:$0xff]   ;;  %v9407_v27 = vld [vmem:[%s13171_s1 + $0xebc] ss:$20 sps:$4 sm:$0xff]  }
 0x109   : > { %4717 = vmatprep.mubr.bf16.mxu0 %v10930_v19  ;;  %5086 = vmatprep.mubr.bf16.mxu1 %v11137_v43 }
 0x10b   : > { %4688 = vmatpush1.bf16.msra.mxu0 %v9324_v44  ;;  %5057 = vmatpush1.bf16.msra.mxu1 %v9327_v45  ;;  %v9402_v44 = vld [vmem:[%s13171_s1 + $0xc30] ss:$20 sps:$4 sm:$0xff]   ;;  %v9405_v45 = vld [vmem:[%s13171_s1 + $0xeb8] ss:$20 sps:$4 sm:$0xff]  }
 0x10c   : > { %4689 = vmatprep.subr.bf16.mxu0 %v9332_v46  ;;  %5058 = vmatprep.subr.bf16.mxu1 %v9335_v47  ;;  %v9410_v46 = vld [vmem:[%s13171_s1 + $0xc5c] ss:$20 sps:$4 sm:$0xff]   ;;  %v9413_v47 = vld [vmem:[%s13171_s1 + $0xee4] ss:$20 sps:$4 sm:$0xff]  }
 0x10f   : > { %4690 = vmatpush1.bf16.msra.mxu0 %v9330_v49  ;;  %5059 = vmatpush1.bf16.msra.mxu1 %v9333_v50  ;;  %v9408_v49 = vld [vmem:[%s13171_s1 + $0xc58] ss:$20 sps:$4 sm:$0xff]   ;;  %v9411_v50 = vld [vmem:[%s13171_s1 + $0xee0] ss:$20 sps:$4 sm:$0xff]  }
 0x110   : > { %4691 = vmatprep.subr.bf16.mxu0 %v9338_v51  ;;  %5060 = vmatprep.subr.bf16.mxu1 %v9341_v52  ;;  %v9416_v51 = vld [vmem:[%s13171_s1 + $0xc84] ss:$20 sps:$4 sm:$0xff]   ;;  %v9421_v52 = vld [vmem:[%s13171_s1 + $0xf0c] ss:$20 sps:$4 sm:$0xff]  }
 0x113   : > { %4692 = vmatpush1.bf16.msra.mxu0 %v9336_v54  ;;  %5061 = vmatpush1.bf16.msra.mxu1 %v9339_v55  ;;  %v9414_v54 = vld [vmem:[%s13171_s1 + $0xc80] ss:$20 sps:$4 sm:$0xff]   ;;  %v9419_v55 = vld [vmem:[%s13171_s1 + $0xf08] ss:$20 sps:$4 sm:$0xff]  }
 0x114   : > { %4693 = vmatprep.subr.bf16.mxu0 %v9344_v56  ;;  %5062 = vmatprep.subr.bf16.mxu1 %v9347_v57  ;;  %v11331_v56 = vcombine.low %v11121_v39, %v11121_v39  ;;  %v11334_v57 = vld [vmem:[%s10419_s26 + $0x30] sm:$0xff] }
 0x115   : > { %v9425_v39 = vld [vmem:[%s13171_s1 + $0xf30] ss:$20 sps:$4 sm:$0xff]  }
 0x117   : > { %4694 = vmatpush1.bf16.msra.mxu0 %v9342_v58  ;;  %5063 = vmatpush1.bf16.msra.mxu1 %v9345_v59  ;;  %v9424_v58 = vld [vmem:[%s13171_s1 + $0xcac] ss:$20 sps:$4 sm:$0xff]   ;;  %v9427_v59 = vld [vmem:[%s13171_s1 + $0xf34] ss:$20 sps:$4 sm:$0xff]  }
 0x118   : > { %4695 = vmatprep.subr.bf16.mxu0 %v9350_v60  ;;  %5064 = vmatprep.subr.bf16.mxu1 %v9353_v61  ;;  %v9422_v60 = vld [vmem:[%s13171_s1 + $0xca8] ss:$20 sps:$4 sm:$0xff]   ;;  %v11350_v61 = vcombine.high %v11334_v57, %v11334_v57 }
 0x11b   : > { %4696 = vmatpush1.bf16.msra.mxu0 %v9348_v62  ;;  %5065 = vmatpush1.bf16.msra.mxu1 %v9351_v63  ;;  %v9430_v62 = vld [vmem:[%s13171_s1 + $0xcd4] ss:$20 sps:$4 sm:$0xff]   ;;  %v9433_v63 = vld [vmem:[%s13171_s1 + $0xf5c] ss:$20 sps:$4 sm:$0xff]  }
 0x11c   : > { %4697 = vmatprep.subr.bf16.mxu0 %v9356_v0  ;;  %5066 = vmatprep.subr.bf16.mxu1 %v9359_v1  ;;  %v9428_v0 = vld [vmem:[%s13171_s1 + $0xcd0] ss:$20 sps:$4 sm:$0xff]   ;;  %v9431_v1 = vld [vmem:[%s13171_s1 + $0xf58] ss:$20 sps:$4 sm:$0xff]  }
 0x11f   : > { %4698 = vmatpush1.bf16.msra.mxu0 %v9354_v2  ;;  %5067 = vmatpush1.bf16.msra.mxu1 %v9357_v3  ;;  %v9436_v2 = vld [vmem:[%s13171_s1 + $0xcfc] ss:$20 sps:$4 sm:$0xff]   ;;  %v9439_v3 = vld [vmem:[%s13171_s1 + $0xf84] ss:$20 sps:$4 sm:$0xff]  }
 0x120   : > { %4699 = vmatprep.subr.bf16.mxu0 %v9362_v4  ;;  %5068 = vmatprep.subr.bf16.mxu1 %v9365_v5  ;;  %v9434_v4 = vld [vmem:[%s13171_s1 + $0xcf8] ss:$20 sps:$4 sm:$0xff]   ;;  %v9437_v5 = vld [vmem:[%s13171_s1 + $0xf80] ss:$20 sps:$4 sm:$0xff]  }
 0x123   : > { %4700 = vmatpush1.bf16.msra.mxu0 %v9360_v8  ;;  %5069 = vmatpush1.bf16.msra.mxu1 %v9363_v9  ;;  %v9442_v8 = vld [vmem:[%s13171_s1 + $0xd24] ss:$20 sps:$4 sm:$0xff]   ;;  %v9445_v9 = vld [vmem:[%s13171_s1 + $0xfac] ss:$20 sps:$4 sm:$0xff]  }
 0x124   : > { %4701 = vmatprep.subr.bf16.mxu0 %v9368_v10  ;;  %5070 = vmatprep.subr.bf16.mxu1 %v9371_v11  ;;  %v9440_v10 = vld [vmem:[%s13171_s1 + $0xd20] ss:$20 sps:$4 sm:$0xff]   ;;  %v9443_v11 = vld [vmem:[%s13171_s1 + $0xfa8] ss:$20 sps:$4 sm:$0xff]  }
 0x127   : > { %4702 = vmatpush1.bf16.msra.mxu0 %v9366_v12  ;;  %5071 = vmatpush1.bf16.msra.mxu1 %v9369_v13  ;;  %v9448_v12 = vld [vmem:[%s13171_s1 + $0xd4c] ss:$20 sps:$4 sm:$0xff]   ;;  %v9451_v13 = vld [vmem:[%s13171_s1 + $0xfd4] ss:$20 sps:$4 sm:$0xff]  }
 0x128   : > { %4703 = vmatprep.subr.bf16.mxu0 %v9374_v14  ;;  %5072 = vmatprep.subr.bf16.mxu1 %v9377_v16  ;;  %v9446_v14 = vld [vmem:[%s13171_s1 + $0xd48] ss:$20 sps:$4 sm:$0xff]   ;;  %v9449_v16 = vld [vmem:[%s13171_s1 + $0xfd0] ss:$20 sps:$4 sm:$0xff]  }
 0x12b   : > { %4704 = vmatpush1.bf16.msra.mxu0 %v9372_v17  ;;  %5073 = vmatpush1.bf16.msra.mxu1 %v9375_v18  ;;  %v9454_v17 = vld [vmem:[%s13171_s1 + $0xd74] ss:$20 sps:$4 sm:$0xff]   ;;  %v9457_v18 = vld [vmem:[%s13171_s1 + $0xffc] ss:$20 sps:$4 sm:$0xff]  }
 0x12c   : > { %4705 = vmatprep.subr.bf16.mxu0 %v9380_v20  ;;  %5074 = vmatprep.subr.bf16.mxu1 %v9383_v21  ;;  %v9452_v20 = vld [vmem:[%s13171_s1 + $0xd70] ss:$20 sps:$4 sm:$0xff]   ;;  %v9455_v21 = vld [vmem:[%s13171_s1 + $0xff8] ss:$20 sps:$4 sm:$0xff]  }
 0x12f   : > { %4706 = vmatpush1.bf16.msra.mxu0 %v9378_v23  ;;  %5075 = vmatpush1.bf16.msra.mxu1 %v9381_v24  ;;  %v9460_v23 = vld [vmem:[%s13171_s1 + $0xd9c] ss:$20 sps:$4 sm:$0xff]   ;;  %v9463_v24 = vld [vmem:[%s13171_s1 + $0x1024] ss:$20 sps:$4 sm:$0xff]  }
 0x130   : > { %4707 = vmatprep.subr.bf16.mxu0 %v9386_v25  ;;  %5076 = vmatprep.subr.bf16.mxu1 %v9389_v28  ;;  %v9458_v25 = vld [vmem:[%s13171_s1 + $0xd98] ss:$20 sps:$4 sm:$0xff]   ;;  %v9461_v28 = vld [vmem:[%s13171_s1 + $0x1020] ss:$20 sps:$4 sm:$0xff]  }
 0x133   : > { %4708 = vmatpush1.bf16.msra.mxu0 %v9384_v29  ;;  %5077 = vmatpush1.bf16.msra.mxu1 %v9387_v30  ;;  %v9466_v29 = vld [vmem:[%s13171_s1 + $0xdc4] ss:$20 sps:$4 sm:$0xff]   ;;  %v9469_v30 = vld [vmem:[%s13171_s1 + $0x104c] ss:$20 sps:$4 sm:$0xff]  }
 0x134   : > { %4709 = vmatprep.subr.bf16.mxu0 %v9392_v31  ;;  %5078 = vmatprep.subr.bf16.mxu1 %v9395_v32  ;;  %v9464_v31 = vld [vmem:[%s13171_s1 + $0xdc0] ss:$20 sps:$4 sm:$0xff]   ;;  %v9467_v32 = vld [vmem:[%s13171_s1 + $0x1048] ss:$20 sps:$4 sm:$0xff]  }
 0x137   : > { %4710 = vmatpush1.bf16.msra.mxu0 %v9390_v33  ;;  %5079 = vmatpush1.bf16.msra.mxu1 %v9393_v34  ;;  %v9472_v33 = vld [vmem:[%s13171_s1 + $0xdec] ss:$20 sps:$4 sm:$0xff]   ;;  %v9475_v34 = vld [vmem:[%s13171_s1 + $0x1074] ss:$20 sps:$4 sm:$0xff]  }
 0x138   : > { %4711 = vmatprep.subr.bf16.mxu0 %v9398_v35  ;;  %5080 = vmatprep.subr.bf16.mxu1 %v9401_v37  ;;  %v9470_v35 = vld [vmem:[%s13171_s1 + $0xde8] ss:$20 sps:$4 sm:$0xff]   ;;  %v9473_v37 = vld [vmem:[%s13171_s1 + $0x1070] ss:$20 sps:$4 sm:$0xff]  }
 0x13b   : > { %4712 = vmatpush1.bf16.msra.mxu0 %v9396_v40  ;;  %5081 = vmatpush1.bf16.msra.mxu1 %v9399_v41  ;;  %v9478_v40 = vld [vmem:[%s13171_s1 + $0xe14] ss:$20 sps:$4 sm:$0xff]   ;;  %v9481_v41 = vld [vmem:[%s13171_s1 + $0x109c] ss:$20 sps:$4 sm:$0xff]  }
 0x13c   : > { %4713 = vmatprep.subr.bf16.mxu0 %v9404_v42  ;;  %5082 = vmatprep.subr.bf16.mxu1 %v9407_v27  ;;  %v9476_v42 = vld [vmem:[%s13171_s1 + $0xe10] ss:$20 sps:$4 sm:$0xff]   ;;  %v9479_v27 = vld [vmem:[%s13171_s1 + $0x1098] ss:$20 sps:$4 sm:$0xff]  }
 0x13f   : > { %4714 = vmatpush1.bf16.msra.mxu0 %v9402_v44  ;;  %5083 = vmatpush1.bf16.msra.mxu1 %v9405_v45  ;;  %v9484_v44 = vld [vmem:[%s13171_s1 + $0xe3c] ss:$20 sps:$4 sm:$0xff]   ;;  %v9487_v45 = vld [vmem:[%s13171_s1 + $0x10c4] ss:$20 sps:$4 sm:$0xff]  }
 0x140   : > { %4715 = vmatprep.subr.bf16.mxu0 %v9410_v46  ;;  %5084 = vmatprep.subr.bf16.mxu1 %v9413_v47  ;;  %v9482_v46 = vld [vmem:[%s13171_s1 + $0xe38] ss:$20 sps:$4 sm:$0xff]   ;;  %v9485_v47 = vld [vmem:[%s13171_s1 + $0x10c0] ss:$20 sps:$4 sm:$0xff]  }
 0x143   : > { %4716 = vmatpush1.bf16.msra.mxu0 %v9408_v49  ;;  %5085 = vmatpush1.bf16.msra.mxu1 %v9411_v50  ;;  %v9490_v49 = vld [vmem:[%s13171_s1 + $0xe64] ss:$20 sps:$4 sm:$0xff]   ;;  %v9493_v50 = vld [vmem:[%s13171_s1 + $0x10ec] ss:$20 sps:$4 sm:$0xff]  }
 0x144   : > { %4726 = vmatprep.subr.bf16.mxu0 %v9416_v51  ;;  %5095 = vmatprep.subr.bf16.mxu1 %v9421_v52  ;;  %v9488_v51 = vld [vmem:[%s13171_s1 + $0xe60] ss:$20 sps:$4 sm:$0xff]   ;;  %v9491_v52 = vld [vmem:[%s13171_s1 + $0x10e8] ss:$20 sps:$4 sm:$0xff]  }
 0x146   : > { %4718 = vmatmul.mubr.bf16.vlgmr.msra.gmra.mrb[0].mxu0 %v11118_v38  ;;  %5087 = vmatmul.mubr.bf16.vlgmr.msra.gmra.mrb[0].mxu1 %v11331_v56 }
 0x147   : > { %4727 = vmatpush1.bf16.msra.mxu0 %v9414_v54  ;;  %5096 = vmatpush1.bf16.msra.mxu1 %v9419_v55  ;;  %v9496_v54 = vld [vmem:[%s13171_s1 + $0xe8c] ss:$20 sps:$4 sm:$0xff]   ;;  %v9499_v55 = vld [vmem:[%s13171_s1 + $0x1114] ss:$20 sps:$4 sm:$0xff]  }
 0x148   : > { %4728 = vmatprep.subr.bf16.mxu0 %v9424_v58  ;;  %5097 = vmatprep.subr.bf16.mxu1 %v9427_v59  ;;  %v9494_v58 = vld [vmem:[%s13171_s1 + $0xe88] ss:$20 sps:$4 sm:$0xff]   ;;  %v9497_v59 = vld [vmem:[%s13171_s1 + $0x1110] ss:$20 sps:$4 sm:$0xff]  }
 0x149   : > { %4758 = vmatprep.mubr.bf16.mxu0 %v11137_v43  ;;  %5127 = vmatprep.mubr.bf16.mxu1 %v11350_v61 }
 0x14b   : > { %4729 = vmatpush1.bf16.msra.mxu0 %v9422_v60  ;;  %5098 = vmatpush1.bf16.msra.mxu1 %v9425_v39  ;;  %v9502_v60 = vld [vmem:[%s13171_s1 + $0xeb4] ss:$20 sps:$4 sm:$0xff]   ;;  %v9505_v39 = vld [vmem:[%s13171_s1 + $0x113c] ss:$20 sps:$4 sm:$0xff]  }
 0x14c   : > { %4730 = vmatprep.subr.bf16.mxu0 %v9430_v62  ;;  %5099 = vmatprep.subr.bf16.mxu1 %v9433_v63  ;;  %v9500_v62 = vld [vmem:[%s13171_s1 + $0xeb0] ss:$20 sps:$4 sm:$0xff]   ;;  %v9503_v63 = vld [vmem:[%s13171_s1 + $0x1138] ss:$20 sps:$4 sm:$0xff]  }
 0x14f   : > { %4731 = vmatpush1.bf16.msra.mxu0 %v9428_v0  ;;  %5100 = vmatpush1.bf16.msra.mxu1 %v9431_v1  ;;  %v9508_v0 = vld [vmem:[%s13171_s1 + $0xedc] ss:$20 sps:$4 sm:$0xff]   ;;  %v9511_v1 = vld [vmem:[%s13171_s1 + $0x1164] ss:$20 sps:$4 sm:$0xff]  }
 0x150   : > { %4732 = vmatprep.subr.bf16.mxu0 %v9436_v2  ;;  %5101 = vmatprep.subr.bf16.mxu1 %v9439_v3  ;;  %v9506_v2 = vld [vmem:[%s13171_s1 + $0xed8] ss:$20 sps:$4 sm:$0xff]   ;;  %v9509_v3 = vld [vmem:[%s13171_s1 + $0x1160] ss:$20 sps:$4 sm:$0xff]  }
 0x153   : > { %4733 = vmatpush1.bf16.msra.mxu0 %v9434_v4  ;;  %5102 = vmatpush1.bf16.msra.mxu1 %v9437_v5  ;;  %v9514_v4 = vld [vmem:[%s13171_s1 + $0xf04] ss:$20 sps:$4 sm:$0xff]   ;;  %v9519_v5 = vld [vmem:[%s13171_s1 + $0x118c] ss:$20 sps:$4 sm:$0xff]  }
 0x154   : > { %4734 = vmatprep.subr.bf16.mxu0 %v9442_v8  ;;  %5103 = vmatprep.subr.bf16.mxu1 %v9445_v9  ;;  %v11531_v8 = vld [vmem:[%s10419_s26 + $0x38] sm:$0xff]  ;;  %v9512_v9 = vld [vmem:[%s13171_s1 + $0xf00] ss:$20 sps:$4 sm:$0xff]  }
 0x157   : > { %4735 = vmatpush1.bf16.msra.mxu0 %v9440_v10  ;;  %5104 = vmatpush1.bf16.msra.mxu1 %v9443_v11  ;;  %v9517_v10 = vld [vmem:[%s13171_s1 + $0x1188] ss:$20 sps:$4 sm:$0xff]   ;;  %v11541_v11 = vcombine.low %v11334_v57, %v11334_v57  ;;  %v9523_v57 = vld [vmem:[%s13171_s1 + $0x11b0] ss:$20 sps:$4 sm:$0xff]  }
 0x158   : > { %4736 = vmatprep.subr.bf16.mxu0 %v9448_v12  ;;  %5105 = vmatprep.subr.bf16.mxu1 %v9451_v13  ;;  %v9522_v12 = vld [vmem:[%s13171_s1 + $0xf2c] ss:$20 sps:$4 sm:$0xff]   ;;  %v9525_v13 = vld [vmem:[%s13171_s1 + $0x11b4] ss:$20 sps:$4 sm:$0xff]  }
 0x15b   : > { %4737 = vmatpush1.bf16.msra.mxu0 %v9446_v14  ;;  %5106 = vmatpush1.bf16.msra.mxu1 %v9449_v16  ;;  %v9520_v14 = vld [vmem:[%s13171_s1 + $0xf28] ss:$20 sps:$4 sm:$0xff]   ;;  %v11557_v16 = vcombine.high %v11531_v8, %v11531_v8 }
 0x15c   : > { %4738 = vmatprep.subr.bf16.mxu0 %v9454_v17  ;;  %5107 = vmatprep.subr.bf16.mxu1 %v9457_v18  ;;  %v9528_v17 = vld [vmem:[%s13171_s1 + $0xf54] ss:$20 sps:$4 sm:$0xff]   ;;  %v9531_v18 = vld [vmem:[%s13171_s1 + $0x11dc] ss:$20 sps:$4 sm:$0xff]  }
 0x15f   : > { %4739 = vmatpush1.bf16.msra.mxu0 %v9452_v20  ;;  %5108 = vmatpush1.bf16.msra.mxu1 %v9455_v21  ;;  %v9526_v20 = vld [vmem:[%s13171_s1 + $0xf50] ss:$20 sps:$4 sm:$0xff]   ;;  %v9529_v21 = vld [vmem:[%s13171_s1 + $0x11d8] ss:$20 sps:$4 sm:$0xff]  }
 0x160   : > { %4740 = vmatprep.subr.bf16.mxu0 %v9460_v23  ;;  %5109 = vmatprep.subr.bf16.mxu1 %v9463_v24  ;;  %v9534_v23 = vld [vmem:[%s13171_s1 + $0xf7c] ss:$20 sps:$4 sm:$0xff]   ;;  %v9537_v24 = vld [vmem:[%s13171_s1 + $0x1204] ss:$20 sps:$4 sm:$0xff]  }
 0x163   : > { %4741 = vmatpush1.bf16.msra.mxu0 %v9458_v25  ;;  %5110 = vmatpush1.bf16.msra.mxu1 %v9461_v28  ;;  %v9532_v25 = vld [vmem:[%s13171_s1 + $0xf78] ss:$20 sps:$4 sm:$0xff]   ;;  %v9535_v28 = vld [vmem:[%s13171_s1 + $0x1200] ss:$20 sps:$4 sm:$0xff]  }
 0x164   : > { %4742 = vmatprep.subr.bf16.mxu0 %v9466_v29  ;;  %5111 = vmatprep.subr.bf16.mxu1 %v9469_v30  ;;  %v9540_v29 = vld [vmem:[%s13171_s1 + $0xfa4] ss:$20 sps:$4 sm:$0xff]   ;;  %v9543_v30 = vld [vmem:[%s13171_s1 + $0x122c] ss:$20 sps:$4 sm:$0xff]  }
 0x167   : > { %4743 = vmatpush1.bf16.msra.mxu0 %v9464_v31  ;;  %5112 = vmatpush1.bf16.msra.mxu1 %v9467_v32  ;;  %v9538_v31 = vld [vmem:[%s13171_s1 + $0xfa0] ss:$20 sps:$4 sm:$0xff]   ;;  %v9541_v32 = vld [vmem:[%s13171_s1 + $0x1228] ss:$20 sps:$4 sm:$0xff]  }
 0x168   : > { %4744 = vmatprep.subr.bf16.mxu0 %v9472_v33  ;;  %5113 = vmatprep.subr.bf16.mxu1 %v9475_v34  ;;  %v9546_v33 = vld [vmem:[%s13171_s1 + $0xfcc] ss:$20 sps:$4 sm:$0xff]   ;;  %v9549_v34 = vld [vmem:[%s13171_s1 + $0x1254] ss:$20 sps:$4 sm:$0xff]  }
 0x16b   : > { %4745 = vmatpush1.bf16.msra.mxu0 %v9470_v35  ;;  %5114 = vmatpush1.bf16.msra.mxu1 %v9473_v37  ;;  %v9544_v35 = vld [vmem:[%s13171_s1 + $0xfc8] ss:$20 sps:$4 sm:$0xff]   ;;  %v9547_v37 = vld [vmem:[%s13171_s1 + $0x1250] ss:$20 sps:$4 sm:$0xff]  }
 0x16c   : > { %4746 = vmatprep.subr.bf16.mxu0 %v9478_v40  ;;  %5115 = vmatprep.subr.bf16.mxu1 %v9481_v41  ;;  %v9552_v40 = vld [vmem:[%s13171_s1 + $0xff4] ss:$20 sps:$4 sm:$0xff]   ;;  %v9555_v41 = vld [vmem:[%s13171_s1 + $0x127c] ss:$20 sps:$4 sm:$0xff]  }
 0x16f   : > { %4747 = vmatpush1.bf16.msra.mxu0 %v9476_v42  ;;  %5116 = vmatpush1.bf16.msra.mxu1 %v9479_v27  ;;  %v9550_v42 = vld [vmem:[%s13171_s1 + $0xff0] ss:$20 sps:$4 sm:$0xff]   ;;  %v9553_v27 = vld [vmem:[%s13171_s1 + $0x1278] ss:$20 sps:$4 sm:$0xff]  }
 0x170   : > { %4748 = vmatprep.subr.bf16.mxu0 %v9484_v44  ;;  %5117 = vmatprep.subr.bf16.mxu1 %v9487_v45  ;;  %v9558_v44 = vld [vmem:[%s13171_s1 + $0x101c] ss:$20 sps:$4 sm:$0xff]   ;;  %v9561_v45 = vld [vmem:[%s13171_s1 + $0x12a4] ss:$20 sps:$4 sm:$0xff]  }
 0x173   : > { %4749 = vmatpush1.bf16.msra.mxu0 %v9482_v46  ;;  %5118 = vmatpush1.bf16.msra.mxu1 %v9485_v47  ;;  %v9556_v46 = vld [vmem:[%s13171_s1 + $0x1018] ss:$20 sps:$4 sm:$0xff]   ;;  %v9559_v47 = vld [vmem:[%s13171_s1 + $0x12a0] ss:$20 sps:$4 sm:$0xff]  }
 0x174   : > { %4750 = vmatprep.subr.bf16.mxu0 %v9490_v49  ;;  %5119 = vmatprep.subr.bf16.mxu1 %v9493_v50  ;;  %v9564_v49 = vld [vmem:[%s13171_s1 + $0x1044] ss:$20 sps:$4 sm:$0xff]   ;;  %v9567_v50 = vld [vmem:[%s13171_s1 + $0x12cc] ss:$20 sps:$4 sm:$0xff]  }
 0x177   : > { %4751 = vmatpush1.bf16.msra.mxu0 %v9488_v51  ;;  %5120 = vmatpush1.bf16.msra.mxu1 %v9491_v52  ;;  %v9562_v51 = vld [vmem:[%s13171_s1 + $0x1040] ss:$20 sps:$4 sm:$0xff]   ;;  %v9565_v52 = vld [vmem:[%s13171_s1 + $0x12c8] ss:$20 sps:$4 sm:$0xff]  }
 0x178   : > { %4752 = vmatprep.subr.bf16.mxu0 %v9496_v54  ;;  %5121 = vmatprep.subr.bf16.mxu1 %v9499_v55  ;;  %v9570_v54 = vld [vmem:[%s13171_s1 + $0x106c] ss:$20 sps:$4 sm:$0xff]   ;;  %v9573_v55 = vld [vmem:[%s13171_s1 + $0x12f4] ss:$20 sps:$4 sm:$0xff]  }
 0x17b   : > { %4753 = vmatpush1.bf16.msra.mxu0 %v9494_v58  ;;  %5122 = vmatpush1.bf16.msra.mxu1 %v9497_v59  ;;  %v9568_v58 = vld [vmem:[%s13171_s1 + $0x1068] ss:$20 sps:$4 sm:$0xff]   ;;  %v9571_v59 = vld [vmem:[%s13171_s1 + $0x12f0] ss:$20 sps:$4 sm:$0xff]  }
 0x17c   : > { %4754 = vmatprep.subr.bf16.mxu0 %v9502_v60  ;;  %5123 = vmatprep.subr.bf16.mxu1 %v9505_v39  ;;  %v9576_v60 = vld [vmem:[%s13171_s1 + $0x1094] ss:$20 sps:$4 sm:$0xff]   ;;  %v9579_v39 = vld [vmem:[%s13171_s1 + $0x131c] ss:$20 sps:$4 sm:$0xff]  }
 0x17f   : > { %4755 = vmatpush1.bf16.msra.mxu0 %v9500_v62  ;;  %5124 = vmatpush1.bf16.msra.mxu1 %v9503_v63  ;;  %v9574_v62 = vld [vmem:[%s13171_s1 + $0x1090] ss:$20 sps:$4 sm:$0xff]   ;;  %v9577_v63 = vld [vmem:[%s13171_s1 + $0x1318] ss:$20 sps:$4 sm:$0xff]  }
 0x180   : > { %4756 = vmatprep.subr.bf16.mxu0 %v9508_v0  ;;  %5125 = vmatprep.subr.bf16.mxu1 %v9511_v1  ;;  %v9582_v0 = vld [vmem:[%s13171_s1 + $0x10bc] ss:$20 sps:$4 sm:$0xff]   ;;  %v9585_v1 = vld [vmem:[%s13171_s1 + $0x1344] ss:$20 sps:$4 sm:$0xff]  }
 0x183   : > { %4757 = vmatpush1.bf16.msra.mxu0 %v9506_v2  ;;  %5126 = vmatpush1.bf16.msra.mxu1 %v9509_v3  ;;  %v9580_v2 = vld [vmem:[%s13171_s1 + $0x10b8] ss:$20 sps:$4 sm:$0xff]   ;;  %v9583_v3 = vld [vmem:[%s13171_s1 + $0x1340] ss:$20 sps:$4 sm:$0xff]  }
 0x184   : > { %4767 = vmatprep.subr.bf16.mxu0 %v9514_v4  ;;  %5136 = vmatprep.subr.bf16.mxu1 %v9519_v5  ;;  %v9588_v4 = vld [vmem:[%s13171_s1 + $0x10e4] ss:$20 sps:$4 sm:$0xff]   ;;  %v9591_v5 = vld [vmem:[%s13171_s1 + $0x136c] ss:$20 sps:$4 sm:$0xff]  }
 0x186   : > { %4759 = vmatmul.mubr.bf16.vlgmr.msra.gmra.mrb[0].mxu0 %v11331_v56  ;;  %5128 = vmatmul.mubr.bf16.vlgmr.msra.gmra.mrb[0].mxu1 %v11541_v11 }
 0x187   : > { %4768 = vmatpush1.bf16.msra.mxu0 %v9512_v9  ;;  %5137 = vmatpush1.bf16.msra.mxu1 %v9517_v10  ;;  %v9586_v9 = vld [vmem:[%s13171_s1 + $0x10e0] ss:$20 sps:$4 sm:$0xff]   ;;  %v9589_v10 = vld [vmem:[%s13171_s1 + $0x1368] ss:$20 sps:$4 sm:$0xff]  }
 0x188   : > { %4769 = vmatprep.subr.bf16.mxu0 %v9522_v12  ;;  %5138 = vmatprep.subr.bf16.mxu1 %v9525_v13  ;;  %v9594_v12 = vld [vmem:[%s13171_s1 + $0x110c] ss:$20 sps:$4 sm:$0xff]   ;;  %v9597_v13 = vld [vmem:[%s13171_s1 + $0x1394] ss:$20 sps:$4 sm:$0xff]  }
 0x189   : > { %5168 = vmatprep.mubr.bf16.mxu1 %v11557_v16  ;;  %4799 = vmatprep.mubr.bf16.mxu0 %v11350_v61 }
 0x18b   : > { %4770 = vmatpush1.bf16.msra.mxu0 %v9520_v14  ;;  %5139 = vmatpush1.bf16.msra.mxu1 %v9523_v57  ;;  %v9592_v14 = vld [vmem:[%s13171_s1 + $0x1108] ss:$20 sps:$4 sm:$0xff]   ;;  %v9595_v57 = vld [vmem:[%s13171_s1 + $0x1390] ss:$20 sps:$4 sm:$0xff]  }
 0x18c   : > { %4771 = vmatprep.subr.bf16.mxu0 %v9528_v17  ;;  %5140 = vmatprep.subr.bf16.mxu1 %v9531_v18  ;;  %v9600_v17 = vld [vmem:[%s13171_s1 + $0x1134] ss:$20 sps:$4 sm:$0xff]   ;;  %v9603_v18 = vld [vmem:[%s13171_s1 + $0x13bc] ss:$20 sps:$4 sm:$0xff]  }
 0x18f   : > { %4772 = vmatpush1.bf16.msra.mxu0 %v9526_v20  ;;  %5141 = vmatpush1.bf16.msra.mxu1 %v9529_v21  ;;  %v9598_v20 = vld [vmem:[%s13171_s1 + $0x1130] ss:$20 sps:$4 sm:$0xff]   ;;  %v9601_v21 = vld [vmem:[%s13171_s1 + $0x13b8] ss:$20 sps:$4 sm:$0xff]  }
 0x190   : > { %4773 = vmatprep.subr.bf16.mxu0 %v9534_v23  ;;  %5142 = vmatprep.subr.bf16.mxu1 %v9537_v24  ;;  %v9606_v23 = vld [vmem:[%s13171_s1 + $0x115c] ss:$20 sps:$4 sm:$0xff]   ;;  %v9609_v24 = vld [vmem:[%s13171_s1 + $0x13e4] ss:$20 sps:$4 sm:$0xff]  }
 0x193   : > { %4774 = vmatpush1.bf16.msra.mxu0 %v9532_v25  ;;  %5143 = vmatpush1.bf16.msra.mxu1 %v9535_v28  ;;  %v9604_v25 = vld [vmem:[%s13171_s1 + $0x1158] ss:$20 sps:$4 sm:$0xff]   ;;  %v9607_v28 = vld [vmem:[%s13171_s1 + $0x13e0] ss:$20 sps:$4 sm:$0xff]  }
 0x194   : > { %4775 = vmatprep.subr.bf16.mxu0 %v9540_v29  ;;  %5144 = vmatprep.subr.bf16.mxu1 %v9543_v30  ;;  %v9614_v29 = vld [vmem:[%s13171_s1 + $0x1184] ss:$20 sps:$4 sm:$0xff]   ;;  %v9612_v30 = vld [vmem:[%s13171_s1 + $0x1180] ss:$20 sps:$4 sm:$0xff]  }
 0x197   : > { %4776 = vmatpush1.bf16.msra.mxu0 %v9538_v31  ;;  %5145 = vmatpush1.bf16.msra.mxu1 %v9541_v32  ;;  %v11739_v31 = vcombine.low %v11531_v8, %v11531_v8  ;;  %v9708_v32 = vld [vmem:[%s13171_s1 + $0x3d0] ss:$20 sps:$4 sm:$0xff]   ;;  %v9615_v8 = vld [vmem:[%s13171_s1 + $0x11a8] ss:$20 sps:$4 sm:$0xff]  }
 0x198   : > { %4777 = vmatprep.subr.bf16.mxu0 %v9546_v33  ;;  %5146 = vmatprep.subr.bf16.mxu1 %v9549_v34  ;;  %v9617_v33 = vld [vmem:[%s13171_s1 + $0x11ac] ss:$20 sps:$4 sm:$0xff]   ;;  %v9710_v34 = vld [vmem:[%s13171_s1 + $0x290] ss:$20 sps:$4 sm:$0xff]  }
 0x19b   : > { %4778 = vmatpush1.bf16.msra.mxu0 %v9544_v35  ;;  %5147 = vmatpush1.bf16.msra.mxu1 %v9547_v37  ;;  %v9712_v35 = vld [vmem:[%s13171_s1 + $0x3f8] ss:$20 sps:$4 sm:$0xff]   ;;  %v9620_v37 = vld [vmem:[%s13171_s1 + $0x11d4] ss:$20 sps:$4 sm:$0xff]  }
 0x19c   : > { %4779 = vmatprep.subr.bf16.mxu0 %v9552_v40  ;;  %5148 = vmatprep.subr.bf16.mxu1 %v9555_v41  ;;  %v9714_v40 = vld [vmem:[%s13171_s1 + $0x2b8] ss:$20 sps:$4 sm:$0xff]   ;;  %v9618_v41 = vld [vmem:[%s13171_s1 + $0x11d0] ss:$20 sps:$4 sm:$0xff]  }
 0x19f   : > { %4780 = vmatpush1.bf16.msra.mxu0 %v9550_v42  ;;  %5149 = vmatpush1.bf16.msra.mxu1 %v9553_v27  ;;  %v9716_v42 = vld [vmem:[%s13171_s1 + $0x420] ss:$20 sps:$4 sm:$0xff]   ;;  %v9623_v27 = vld [vmem:[%s13171_s1 + $0x11fc] ss:$20 sps:$4 sm:$0xff]  }
 0x1a0   : > { %4781 = vmatprep.subr.bf16.mxu0 %v9558_v44  ;;  %5150 = vmatprep.subr.bf16.mxu1 %v9561_v45  ;;  %v9718_v44 = vld [vmem:[%s13171_s1 + $0x2e0] ss:$20 sps:$4 sm:$0xff]   ;;  %v9720_v45 = vld [vmem:[%s13171_s1 + $0x448] ss:$20 sps:$4 sm:$0xff]  }
 0x1a3   : > { %4782 = vmatpush1.bf16.msra.mxu0 %v9556_v46  ;;  %5151 = vmatpush1.bf16.msra.mxu1 %v9559_v47  ;;  %v9626_v46 = vld [vmem:[%s13171_s1 + $0x1224] ss:$20 sps:$4 sm:$0xff]   ;;  %v9722_v47 = vld [vmem:[%s13171_s1 + $0x308] ss:$20 sps:$4 sm:$0xff]  }
 0x1a4   : > { %4783 = vmatprep.subr.bf16.mxu0 %v9564_v49  ;;  %5152 = vmatprep.subr.bf16.mxu1 %v9567_v50  ;;  %v9624_v49 = vld [vmem:[%s13171_s1 + $0x1220] ss:$20 sps:$4 sm:$0xff]   ;;  %v9724_v50 = vld [vmem:[%s13171_s1 + $0x470] ss:$20 sps:$4 sm:$0xff]  }
 0x1a7   : > { %4784 = vmatpush1.bf16.msra.mxu0 %v9562_v51  ;;  %5153 = vmatpush1.bf16.msra.mxu1 %v9565_v52  ;;  %v9629_v51 = vld [vmem:[%s13171_s1 + $0x124c] ss:$20 sps:$4 sm:$0xff]   ;;  %v9726_v52 = vld [vmem:[%s13171_s1 + $0x330] ss:$20 sps:$4 sm:$0xff]  }
 0x1a8   : > { %4785 = vmatprep.subr.bf16.mxu0 %v9570_v54  ;;  %5154 = vmatprep.subr.bf16.mxu1 %v9573_v55  ;;  %v9627_v54 = vld [vmem:[%s13171_s1 + $0x1248] ss:$20 sps:$4 sm:$0xff]   ;;  %v9728_v55 = vld [vmem:[%s13171_s1 + $0x498] ss:$20 sps:$4 sm:$0xff]  }
 0x1ab   : > { %4786 = vmatpush1.bf16.msra.mxu0 %v9568_v58  ;;  %5155 = vmatpush1.bf16.msra.mxu1 %v9571_v59  ;;  %v9632_v58 = vld [vmem:[%s13171_s1 + $0x1274] ss:$20 sps:$4 sm:$0xff]   ;;  %v9730_v59 = vld [vmem:[%s13171_s1 + $0x358] ss:$20 sps:$4 sm:$0xff]  }
 0x1ac   : > { %4787 = vmatprep.subr.bf16.mxu0 %v9576_v60  ;;  %5156 = vmatprep.subr.bf16.mxu1 %v9579_v39  ;;  %v9630_v60 = vld [vmem:[%s13171_s1 + $0x1270] ss:$20 sps:$4 sm:$0xff]   ;;  %v9732_v39 = vld [vmem:[%s13171_s1 + $0x4c0] ss:$20 sps:$4 sm:$0xff]  }
 0x1af   : > { %4788 = vmatpush1.bf16.msra.mxu0 %v9574_v62  ;;  %5157 = vmatpush1.bf16.msra.mxu1 %v9577_v63  ;;  %v9635_v62 = vld [vmem:[%s13171_s1 + $0x129c] ss:$20 sps:$4 sm:$0xff]   ;;  %v9734_v63 = vld [vmem:[%s13171_s1 + $0x380] ss:$20 sps:$4 sm:$0xff]  }
 0x1b0   : > { %4789 = vmatprep.subr.bf16.mxu0 %v9582_v0  ;;  %5158 = vmatprep.subr.bf16.mxu1 %v9585_v1  ;;  %v9633_v0 = vld [vmem:[%s13171_s1 + $0x1298] ss:$20 sps:$4 sm:$0xff]   ;;  %v9736_v1 = vld [vmem:[%s13171_s1 + $0x4e8] ss:$20 sps:$4 sm:$0xff]  }
 0x1b3   : > { %4790 = vmatpush1.bf16.msra.mxu0 %v9580_v2  ;;  %5159 = vmatpush1.bf16.msra.mxu1 %v9583_v3  ;;  %v9638_v2 = vld [vmem:[%s13171_s1 + $0x12c4] ss:$20 sps:$4 sm:$0xff]   ;;  %v9738_v3 = vld [vmem:[%s13171_s1 + $0x3a8] ss:$20 sps:$4 sm:$0xff]  }
 0x1b4   : > { %4791 = vmatprep.subr.bf16.mxu0 %v9588_v4  ;;  %5160 = vmatprep.subr.bf16.mxu1 %v9591_v5  ;;  %v9636_v4 = vld [vmem:[%s13171_s1 + $0x12c0] ss:$20 sps:$4 sm:$0xff]   ;;  %v9740_v5 = vld [vmem:[%s13171_s1 + $0x8d0] ss:$20 sps:$4 sm:$0xff]  }
 0x1b7   : > { %4792 = vmatpush1.bf16.msra.mxu0 %v9586_v9  ;;  %5161 = vmatpush1.bf16.msra.mxu1 %v9589_v10  ;;  %v9641_v9 = vld [vmem:[%s13171_s1 + $0x12ec] ss:$20 sps:$4 sm:$0xff]   ;;  %v9742_v10 = vld [vmem:[%s13171_s1 + $0x790] ss:$20 sps:$4 sm:$0xff]  }
 0x1b8   : > { %4793 = vmatprep.subr.bf16.mxu0 %v9594_v12  ;;  %5162 = vmatprep.subr.bf16.mxu1 %v9597_v13  ;;  %v9639_v12 = vld [vmem:[%s13171_s1 + $0x12e8] ss:$20 sps:$4 sm:$0xff]   ;;  %v9744_v13 = vld [vmem:[%s13171_s1 + $0x8f8] ss:$20 sps:$4 sm:$0xff]  }
 0x1bb   : > { %4794 = vmatpush1.bf16.msra.mxu0 %v9592_v14  ;;  %5163 = vmatpush1.bf16.msra.mxu1 %v9595_v57  ;;  %v9644_v14 = vld [vmem:[%s13171_s1 + $0x1314] ss:$20 sps:$4 sm:$0xff]   ;;  %v9746_v57 = vld [vmem:[%s13171_s1 + $0x7b8] ss:$20 sps:$4 sm:$0xff]  }
 0x1bc   : > { %4795 = vmatprep.subr.bf16.mxu0 %v9600_v17  ;;  %5164 = vmatprep.subr.bf16.mxu1 %v9603_v18  ;;  %v9748_v17 = vld [vmem:[%s13171_s1 + $0x920] ss:$20 sps:$4 sm:$0xff]   ;;  %v9647_v18 = vld [vmem:[%s13171_s1 + $0x133c] ss:$20 sps:$4 sm:$0xff]  }
 0x1bf   : > { %4796 = vmatpush1.bf16.msra.mxu0 %v9598_v20  ;;  %5165 = vmatpush1.bf16.msra.mxu1 %v9601_v21  ;;  %v9750_v20 = vld [vmem:[%s13171_s1 + $0x7e0] ss:$20 sps:$4 sm:$0xff]   ;;  %v9752_v21 = vld [vmem:[%s13171_s1 + $0x948] ss:$20 sps:$4 sm:$0xff]  }
 0x1c0   : > { %4797 = vmatprep.subr.bf16.mxu0 %v9606_v23  ;;  %5166 = vmatprep.subr.bf16.mxu1 %v9609_v24  ;;  %v9650_v23 = vld [vmem:[%s13171_s1 + $0x1364] ss:$20 sps:$4 sm:$0xff]   ;;  %v9754_v24 = vld [vmem:[%s13171_s1 + $0x808] ss:$20 sps:$4 sm:$0xff]  }
 0x1c3   : > { %4798 = vmatpush1.bf16.msra.mxu0 %v9604_v25  ;;  %5167 = vmatpush1.bf16.msra.mxu1 %v9607_v28  ;;  %v9648_v25 = vld [vmem:[%s13171_s1 + $0x1360] ss:$20 sps:$4 sm:$0xff]   ;;  %v9756_v28 = vld [vmem:[%s13171_s1 + $0x970] ss:$20 sps:$4 sm:$0xff]  }
 0x1c4   : > { %4808 = vmatprep.subr.bf16.mxu0 %v9614_v29  ;;  %8621 = vmatprep.subr.bf16.mxu1 %v9708_v32  ;;  %v9653_v29 = vld [vmem:[%s13171_s1 + $0x138c] ss:$20 sps:$4 sm:$0xff]   ;;  %v9651_v32 = vld [vmem:[%s13171_s1 + $0x1388] ss:$20 sps:$4 sm:$0xff]  }
 0x1c6   : > { %5169 = vmatmul.mubr.bf16.vlgmr.msra.gmra.mrb[0].mxu1 %v11739_v31  ;;  %4800 = vmatmul.mubr.bf16.vlgmr.msra.gmra.mrb[0].mxu0 %v11541_v11 }
 0x1c7   : > { %4809 = vmatpush1.bf16.msra.mxu0 %v9612_v30  ;;  %4840 = vmatprep.mubr.bf16.mxu0 %v11557_v16  ;;  %v9758_v30 = vld [vmem:[%s13171_s1 + $0x830] ss:$20 sps:$4 sm:$0xff]  }
 0x1c8   : > { %4810 = vmatprep.subr.bf16.mxu0 %v9617_v33  ;;  %8622 = vmatpush3.bf16.msra.mxu1 %v9710_v34  ;;  %v9760_v33 = vld [vmem:[%s13171_s1 + $0x998] ss:$20 sps:$4 sm:$0xff]   ;;  %v9656_v34 = vld [vmem:[%s13171_s1 + $0x13b4] ss:$20 sps:$4 sm:$0xff]  }
 0x1c9   : > { %8623 = vmatprep.subr.bf16.mxu1 %v9712_v35  ;;  %5249 = vmatprep.mubr.bf16.mxu1 %v10443_v53  ;;  %v9621_v53 = vld [vmem:[%s13171_s1 + $0x11f8] ss:$20 sps:$4 sm:$0xff]   ;;  %v9654_v35 = vld [vmem:[%s13171_s1 + $0x13b0] ss:$20 sps:$4 sm:$0xff]  }
 0x1cb   : > { %4811 = vmatpush1.bf16.msra.mxu0 %v9615_v8  ;;  %v9762_v8 = vld [vmem:[%s13171_s1 + $0x858] ss:$20 sps:$4 sm:$0xff]  }
 0x1cc   : > { %4812 = vmatprep.subr.bf16.mxu0 %v9620_v37  ;;  %8624 = vmatpush3.bf16.msra.mxu1 %v9714_v40  ;;  %v9764_v37 = vld [vmem:[%s13171_s1 + $0x9c0] ss:$20 sps:$4 sm:$0xff]   ;;  %v9659_v40 = vld [vmem:[%s13171_s1 + $0x13dc] ss:$20 sps:$4 sm:$0xff]  }
 0x1cd   : > { %8625 = vmatprep.subr.bf16.mxu1 %v9716_v42  ;;  %v9657_v42 = vld [vmem:[%s13171_s1 + $0x13d8] ss:$20 sps:$4 sm:$0xff]  }
 0x1cf   : > { %4813 = vmatpush1.bf16.msra.mxu0 %v9618_v41  ;;  %v9766_v41 = vld [vmem:[%s13171_s1 + $0x880] ss:$20 sps:$4 sm:$0xff]  }
 0x1d0   : > { %4814 = vmatprep.subr.bf16.mxu0 %v9623_v27  ;;  %8626 = vmatpush3.bf16.msra.mxu1 %v9718_v44  ;;  %v9768_v27 = vld [vmem:[%s13171_s1 + $0x9e8] ss:$20 sps:$4 sm:$0xff]   ;;  %v9662_v44 = vld [vmem:[%s13171_s1 + $0xc] ss:$20 sps:$4 sm:$0xff]  }
 0x1d1   : > { %8627 = vmatprep.subr.bf16.mxu1 %v9720_v45  ;;  %v9660_v45 = vld [vmem:[%s13171_s1 + $0x8] ss:$20 sps:$4 sm:$0xff]  }
 0x1d3   : > { %4815 = vmatpush1.bf16.msra.mxu0 %v9621_v53  ;;  %v9770_v53 = vld [vmem:[%s13171_s1 + $0x8a8] ss:$20 sps:$4 sm:$0xff]  }
 0x1d4   : > { %4816 = vmatprep.subr.bf16.mxu0 %v9626_v46  ;;  %8628 = vmatpush3.bf16.msra.mxu1 %v9722_v47  ;;  %v9772_v46 = vld [vmem:[%s13171_s1 + $0xdd0] ss:$20 sps:$4 sm:$0xff]   ;;  %v9665_v47 = vld [vmem:[%s13171_s1 + $0x34] ss:$20 sps:$4 sm:$0xff]  }
 0x1d5   : > { %8629 = vmatprep.subr.bf16.mxu1 %v9724_v50  ;;  %v9663_v50 = vld [vmem:[%s13171_s1 + $0x30] ss:$20 sps:$4 sm:$0xff]  }
 0x1d7   : > { %4817 = vmatpush1.bf16.msra.mxu0 %v9624_v49  ;;  %v9774_v49 = vld [vmem:[%s13171_s1 + $0xc90] ss:$20 sps:$4 sm:$0xff]  }
 0x1d8   : > { %4818 = vmatprep.subr.bf16.mxu0 %v9629_v51  ;;  %8630 = vmatpush3.bf16.msra.mxu1 %v9726_v52  ;;  %v9776_v51 = vld [vmem:[%s13171_s1 + $0xdf8] ss:$20 sps:$4 sm:$0xff]   ;;  %v9668_v52 = vld [vmem:[%s13171_s1 + $0x5c] ss:$20 sps:$4 sm:$0xff]  }
 0x1d9   : > { %8631 = vmatprep.subr.bf16.mxu1 %v9728_v55  ;;  %v9666_v55 = vld [vmem:[%s13171_s1 + $0x58] ss:$20 sps:$4 sm:$0xff]  }
 0x1db   : > { %4819 = vmatpush1.bf16.msra.mxu0 %v9627_v54  ;;  %v9778_v54 = vld [vmem:[%s13171_s1 + $0xcb8] ss:$20 sps:$4 sm:$0xff]  }
 0x1dc   : > { %4820 = vmatprep.subr.bf16.mxu0 %v9632_v58  ;;  %8632 = vmatpush3.bf16.msra.mxu1 %v9730_v59  ;;  %v9780_v58 = vld [vmem:[%s13171_s1 + $0xe20] ss:$20 sps:$4 sm:$0xff]  }
 0x1dd   : > { %8633 = vmatprep.subr.bf16.mxu1 %v9732_v39  ;;  %v9782_v59 = vld [vmem:[%s13171_s1 + $0xce0] ss:$20 sps:$4 sm:$0xff]  }
 0x1de   : > { %v9674_v39 = vld [vmem:[%s13171_s1 + $0xac] ss:$20 sps:$4 sm:$0xff]  }
 0x1df   : > { %4821 = vmatpush1.bf16.msra.mxu0 %v9630_v60  ;;  %v9784_v60 = vld [vmem:[%s13171_s1 + $0xe48] ss:$20 sps:$4 sm:$0xff]  }
 0x1e0   : > { %4822 = vmatprep.subr.bf16.mxu0 %v9635_v62  ;;  %8634 = vmatpush3.bf16.msra.mxu1 %v9734_v63  ;;  %v9786_v62 = vld [vmem:[%s13171_s1 + $0xd08] ss:$20 sps:$4 sm:$0xff]  }
 0x1e1   : > { %8635 = vmatprep.subr.bf16.mxu1 %v9736_v1  ;;  %v9672_v63 = vld [vmem:[%s13171_s1 + $0xa8] ss:$20 sps:$4 sm:$0xff]  }
 0x1e2   : > { %v9677_v1 = vld [vmem:[%s13171_s1 + $0xd4] ss:$20 sps:$4 sm:$0xff]  }
 0x1e3   : > { %4823 = vmatpush1.bf16.msra.mxu0 %v9633_v0  ;;  %v9788_v0 = vld [vmem:[%s13171_s1 + $0xe70] ss:$20 sps:$4 sm:$0xff]  }
 0x1e4   : > { %4824 = vmatprep.subr.bf16.mxu0 %v9638_v2  ;;  %8636 = vmatpush3.bf16.msra.mxu1 %v9738_v3  ;;  %v9790_v2 = vld [vmem:[%s13171_s1 + $0xd30] ss:$20 sps:$4 sm:$0xff]  }
 0x1e5   : > { %8665 = vmatprep.subr.bf16.mxu1 %v9740_v5  ;;  %v9675_v3 = vld [vmem:[%s13171_s1 + $0xd0] ss:$20 sps:$4 sm:$0xff]  }
 0x1e6   : > { %v9680_v5 = vld [vmem:[%s13171_s1 + $0xfc] ss:$20 sps:$4 sm:$0xff]  }
 0x1e7   : > { %4825 = vmatpush1.bf16.msra.mxu0 %v9636_v4  ;;  %5250 = vmatmul.mubr.bf16.vlgmr.msra.gmra.mrb[4].mxu1 %v10497_v7  ;;  %v9642_v7 = vld [vmem:[%s13171_s1 + $0x1310] ss:$20 sps:$4 sm:$0xff]   ;;  %v9792_v4 = vld [vmem:[%s13171_s1 + $0xe98] ss:$20 sps:$4 sm:$0xff]  }
 0x1e8   : > { %4826 = vmatprep.subr.bf16.mxu0 %v9641_v9  ;;  %8666 = vmatpush3.bf16.msra.mxu1 %v9742_v10  ;;  %v9678_v9 = vld [vmem:[%s13171_s1 + $0xf8] ss:$20 sps:$4 sm:$0xff]  }
 0x1e9   : > { %8667 = vmatprep.subr.bf16.mxu1 %v9744_v13  ;;  %5329 = vmatprep.mubr.bf16.mxu1 %v10731_v22  ;;  %v9645_v22 = vld [vmem:[%s13171_s1 + $0x1338] ss:$20 sps:$4 sm:$0xff]  }
 0x1ea   : > { %v9794_v10 = vld [vmem:[%s13171_s1 + $0xd58] ss:$20 sps:$4 sm:$0xff]  }
 0x1eb   : > { %4827 = vmatpush1.bf16.msra.mxu0 %v9639_v12  ;;  %v9796_v12 = vld [vmem:[%s13171_s1 + $0xec0] ss:$20 sps:$4 sm:$0xff]   ;;  %v9683_v13 = vld [vmem:[%s13171_s1 + $0x124] ss:$20 sps:$4 sm:$0xff]  }
 0x1ec   : > { %4828 = vmatprep.subr.bf16.mxu0 %v9644_v14  ;;  %8668 = vmatpush3.bf16.msra.mxu1 %v9746_v57  ;;  %v9798_v14 = vld [vmem:[%s13171_s1 + $0xd80] ss:$20 sps:$4 sm:$0xff]  }
 0x1ed   : > { %8669 = vmatprep.subr.bf16.mxu1 %v9748_v17  ;;  %v9681_v57 = vld [vmem:[%s13171_s1 + $0x120] ss:$20 sps:$4 sm:$0xff]  }
 0x1ee   : > { %v9686_v17 = vld [vmem:[%s13171_s1 + $0x14c] ss:$20 sps:$4 sm:$0xff]  }
 0x1ef   : > { %4829 = vmatpush1.bf16.msra.mxu0 %v9642_v7  ;;  %v9800_v7 = vld [vmem:[%s13171_s1 + $0xee8] ss:$20 sps:$4 sm:$0xff]  }
 0x1f0   : > { %4830 = vmatprep.subr.bf16.mxu0 %v9647_v18  ;;  %8670 = vmatpush3.bf16.msra.mxu1 %v9750_v20  ;;  %v9802_v18 = vld [vmem:[%s13171_s1 + $0xda8] ss:$20 sps:$4 sm:$0xff]  }
 0x1f1   : > { %8671 = vmatprep.subr.bf16.mxu1 %v9752_v21  ;;  %v9684_v20 = vld [vmem:[%s13171_s1 + $0x148] ss:$20 sps:$4 sm:$0xff]  }
 0x1f2   : > { %v9689_v21 = vld [vmem:[%s13171_s1 + $0x174] ss:$20 sps:$4 sm:$0xff]  }
 0x1f3   : > { %4831 = vmatpush1.bf16.msra.mxu0 %v9645_v22  ;;  %v9804_v22 = vld [vmem:[%s13171_s1 + $0x12d0] ss:$20 sps:$4 sm:$0xff]  }
 0x1f4   : > { %4832 = vmatprep.subr.bf16.mxu0 %v9650_v23  ;;  %8672 = vmatpush3.bf16.msra.mxu1 %v9754_v24  ;;  %v9806_v23 = vld [vmem:[%s13171_s1 + $0x1190] ss:$20 sps:$4 sm:$0xff]  }
 0x1f5   : > { %8673 = vmatprep.subr.bf16.mxu1 %v9756_v28  ;;  %v9687_v24 = vld [vmem:[%s13171_s1 + $0x170] ss:$20 sps:$4 sm:$0xff]  }
 0x1f6   : > { %v9692_v28 = vld [vmem:[%s13171_s1 + $0x19c] ss:$20 sps:$4 sm:$0xff]  }
 0x1f7   : > { %4833 = vmatpush1.bf16.msra.mxu0 %v9648_v25  ;;  %v9808_v25 = vld [vmem:[%s13171_s1 + $0x12f8] ss:$20 sps:$4 sm:$0xff]  }
 0x1f8   : > { %4834 = vmatprep.subr.bf16.mxu0 %v9653_v29  ;;  %8674 = vmatpush3.bf16.msra.mxu1 %v9758_v30  ;;  %v9810_v29 = vld [vmem:[%s13171_s1 + $0x11b8] ss:$20 sps:$4 sm:$0xff]  }
 0x1f9   : > { %8675 = vmatprep.subr.bf16.mxu1 %v9760_v33  ;;  %v9690_v30 = vld [vmem:[%s13171_s1 + $0x198] ss:$20 sps:$4 sm:$0xff]   ;;  %v9814_v33 = vld [vmem:[%s13171_s1 + $0x11e0] ss:$20 sps:$4 sm:$0xff]  }
 0x1fb   : > { %4835 = vmatpush1.bf16.msra.mxu0 %v9651_v32  ;;  %v9812_v32 = vld [vmem:[%s13171_s1 + $0x1320] ss:$20 sps:$4 sm:$0xff]  }
 0x1fc   : > { %4836 = vmatprep.subr.bf16.mxu0 %v9656_v34  ;;  %8676 = vmatpush3.bf16.msra.mxu1 %v9762_v8  ;;  %v9816_v34 = vld [vmem:[%s13171_s1 + $0x1348] ss:$20 sps:$4 sm:$0xff]   ;;  %v9698_v8 = vld [vmem:[%s13171_s1 + $0x1ec] ss:$20 sps:$4 sm:$0xff]  }
 0x1fd   : > { %8677 = vmatprep.subr.bf16.mxu1 %v9764_v37  ;;  %v9696_v37 = vld [vmem:[%s13171_s1 + $0x1e8] ss:$20 sps:$4 sm:$0xff]  }
 0x1ff   : > { %4837 = vmatpush1.bf16.msra.mxu0 %v9654_v35  ;;  %v9818_v35 = vld [vmem:[%s13171_s1 + $0x1208] ss:$20 sps:$4 sm:$0xff]  }
 0x200   : > { %4838 = vmatprep.subr.bf16.mxu0 %v9659_v40  ;;  %8678 = vmatpush3.bf16.msra.mxu1 %v9766_v41  ;;  %v9820_v40 = vld [vmem:[%s13171_s1 + $0x1370] ss:$20 sps:$4 sm:$0xff]   ;;  %v9701_v41 = vld [vmem:[%s13171_s1 + $0x214] ss:$20 sps:$4 sm:$0xff]  }
 0x201   : > { %8679 = vmatprep.subr.bf16.mxu1 %v9768_v27  ;;  %v9699_v27 = vld [vmem:[%s13171_s1 + $0x210] ss:$20 sps:$4 sm:$0xff]  }
 0x203   : > { %4839 = vmatpush1.bf16.msra.mxu0 %v9657_v42  ;;  %v9822_v42 = vld [vmem:[%s13171_s1 + $0x1230] ss:$20 sps:$4 sm:$0xff]  }
 0x204   : > { %4849 = vmatprep.subr.bf16.mxu0 %v9662_v44  ;;  %8680 = vmatpush3.bf16.msra.mxu1 %v9770_v53  ;;  %v9824_v44 = vld [vmem:[%s13171_s1 + $0x1398] ss:$20 sps:$4 sm:$0xff]   ;;  %v9704_v53 = vld [vmem:[%s13171_s1 + $0x23c] ss:$20 sps:$4 sm:$0xff]  }
 0x205   : > { %8709 = vmatprep.subr.bf16.mxu1 %v9772_v46  ;;  %v9702_v46 = vld [vmem:[%s13171_s1 + $0x238] ss:$20 sps:$4 sm:$0xff]  }
 0x206   : > { %4841 = vmatmul.mubr.bf16.vlgmr.msra.gmra.mrb[0].mxu0 %v11739_v31 }
 0x207   : > { %4850 = vmatpush1.bf16.msra.mxu0 %v9660_v45  ;;  %4881 = vmatprep.mubr.bf16.mxu0 %v10431_v48  ;;  %v9826_v45 = vld [vmem:[%s13171_s1 + $0x1258] ss:$20 sps:$4 sm:$0xff]  }
 0x208   : > { %4851 = vmatprep.subr.bf16.mxu0 %v9665_v47  ;;  %5330 = vmatmul.mubr.bf16.vlgmr.msra.gmra.mrb[8].mxu1 %v10914_v26  ;;  %v9671_v26 = vld [vmem:[%s13171_s1 + $0x84] ss:$20 sps:$4 sm:$0xff]   ;;  %v9828_v47 = vld [vmem:[%s13171_s1 + $0x13c0] ss:$20 sps:$4 sm:$0xff]  }
 0x209   : > { %8710 = vmatpush3.bf16.msra.mxu1 %v9774_v49  ;;  %5409 = vmatprep.mubr.bf16.mxu1 %v11137_v43  ;;  %v9669_v43 = vld [vmem:[%s13171_s1 + $0x80] ss:$20 sps:$4 sm:$0xff]   ;;  %v9707_v49 = vld [vmem:[%s13171_s1 + $0x264] ss:$20 sps:$4 sm:$0xff]  }
 0x20a   : > { %8711 = vmatprep.subr.bf16.mxu1 %v9776_v51  ;;  %v9705_v51 = vld [vmem:[%s13171_s1 + $0x260] ss:$20 sps:$4 sm:$0xff]  }
 0x20b   : > { %4852 = vmatpush1.bf16.msra.mxu0 %v9663_v50  ;;  %v9830_v50 = vld [vmem:[%s13171_s1 + $0x1280] ss:$20 sps:$4 sm:$0xff]  }
 0x20c   : > { %4853 = vmatprep.subr.bf16.mxu0 %v9668_v52  ;;  %v9832_v52 = vld [vmem:[%s13171_s1 + $0x13e8] ss:$20 sps:$4 sm:$0xff]  }
 0x20d   : > { %8712 = vmatpush3.bf16.msra.mxu1 %v9778_v54  ;;  %v9709_v54 = vld [vmem:[%s13171_s1 + $0x150] ss:$20 sps:$4 sm:$0xff]  }
 0x20e   : > { %8713 = vmatprep.subr.bf16.mxu1 %v9780_v58  ;;  %v9711_v58 = vld [vmem:[%s13171_s1 + $0x10] ss:$20 sps:$4 sm:$0xff]  }
 0x20f   : > { %4854 = vmatpush1.bf16.msra.mxu0 %v9666_v55  ;;  %v9834_v55 = vld [vmem:[%s13171_s1 + $0x12a8] ss:$20 sps:$4 sm:$0xff]  }
 0x210   : > { %4855 = vmatprep.subr.bf16.mxu0 %v9671_v26  ;;  %v9713_v26 = vld [vmem:[%s13171_s1 + $0x178] ss:$20 sps:$4 sm:$0xff]  }
 0x211   : > { %8714 = vmatpush3.bf16.msra.mxu1 %v9782_v59  ;;  %v9715_v59 = vld [vmem:[%s13171_s1 + $0x38] ss:$20 sps:$4 sm:$0xff]  }
 0x212   : > { %8715 = vmatprep.subr.bf16.mxu1 %v9784_v60  ;;  %v9719_v60 = vld [vmem:[%s13171_s1 + $0x60] ss:$20 sps:$4 sm:$0xff]  }
 0x213   : > { %4856 = vmatpush1.bf16.msra.mxu0 %v9669_v43  ;;  %v9717_v43 = vld [vmem:[%s13171_s1 + $0x1a0] ss:$20 sps:$4 sm:$0xff]  }
 0x214   : > { %4857 = vmatprep.subr.bf16.mxu0 %v9674_v39  ;;  %v9721_v39 = vld [vmem:[%s13171_s1 + $0x1c8] ss:$20 sps:$4 sm:$0xff]  }
 0x215   : > { %8716 = vmatpush3.bf16.msra.mxu1 %v9786_v62  ;;  %v9727_v62 = vld [vmem:[%s13171_s1 + $0xb0] ss:$20 sps:$4 sm:$0xff]  }
 0x216   : > { %8717 = vmatprep.subr.bf16.mxu1 %v9788_v0  ;;  %v9731_v0 = vld [vmem:[%s13171_s1 + $0xd8] ss:$20 sps:$4 sm:$0xff]  }
 0x217   : > { %4858 = vmatpush1.bf16.msra.mxu0 %v9672_v63  ;;  %v9729_v63 = vld [vmem:[%s13171_s1 + $0x218] ss:$20 sps:$4 sm:$0xff]  }
 0x218   : > { %4859 = vmatprep.subr.bf16.mxu0 %v9677_v1  ;;  %v9733_v1 = vld [vmem:[%s13171_s1 + $0x240] ss:$20 sps:$4 sm:$0xff]  }
 0x219   : > { %8718 = vmatpush3.bf16.msra.mxu1 %v9790_v2  ;;  %v9735_v2 = vld [vmem:[%s13171_s1 + $0x100] ss:$20 sps:$4 sm:$0xff]  }
 0x21a   : > { %8719 = vmatprep.subr.bf16.mxu1 %v9792_v4  ;;  %v9739_v4 = vld [vmem:[%s13171_s1 + $0x128] ss:$20 sps:$4 sm:$0xff]  }
 0x21b   : > { %4860 = vmatpush1.bf16.msra.mxu0 %v9675_v3  ;;  %v9737_v3 = vld [vmem:[%s13171_s1 + $0x268] ss:$20 sps:$4 sm:$0xff]  }
 0x21c   : > { %4861 = vmatprep.subr.bf16.mxu0 %v9680_v5  ;;  %v9741_v5 = vld [vmem:[%s13171_s1 + $0x650] ss:$20 sps:$4 sm:$0xff]  }
 0x21d   : > { %8720 = vmatpush3.bf16.msra.mxu1 %v9794_v10  ;;  %v9745_v10 = vld [vmem:[%s13171_s1 + $0x678] ss:$20 sps:$4 sm:$0xff]  }
 0x21e   : > { %8721 = vmatprep.subr.bf16.mxu1 %v9796_v12  ;;  %v9852_v12 = vld [vmem:[%s13173_s3 + $0xc0] sm:$0xff]  }
 0x21f   : > { %4862 = vmatpush1.bf16.msra.mxu0 %v9678_v9  ;;  %v9743_v9 = vld [vmem:[%s13171_s1 + $0x510] ss:$20 sps:$4 sm:$0xff]  }
 0x220   : > { %4863 = vmatprep.subr.bf16.mxu0 %v9683_v13  ;;  %v9853_v13 = vld [vmem:[%s13173_s3 + $0x80] sm:$0xff]  }
 0x221   : > { %8722 = vmatpush3.bf16.msra.mxu1 %v9798_v14  ;;  %v9854_v14 = vld [vmem:[%s13173_s3 + $0xc8] sm:$0xff]  }
 0x222   : > { %8723 = vmatprep.subr.bf16.mxu1 %v9800_v7  ;;  %v9855_v7 = vld [vmem:[%s13173_s3 + $0x88] sm:$0xff]  }
 0x223   : > { %4864 = vmatpush1.bf16.msra.mxu0 %v9681_v57  ;;  %v9747_v57 = vld [vmem:[%s13171_s1 + $0x538] ss:$20 sps:$4 sm:$0xff]  }
 0x224   : > { %4865 = vmatprep.subr.bf16.mxu0 %v9686_v17  ;;  %v9856_v17 = vld [vmem:[%s13173_s3 + $0xd0] sm:$0xff]  }
 0x225   : > { %8724 = vmatpush3.bf16.msra.mxu1 %v9802_v18  ;;  %v9753_v18 = vld [vmem:[%s13171_s1 + $0x6c8] ss:$20 sps:$4 sm:$0xff]  }
 0x226   : > { %8753 = vmatprep.subr.bf16.mxu1 %v9804_v22  ;;  %v9858_v22 = vld [vmem:[%s13173_s3 + $0xd8] sm:$0xff]  }
 0x227   : > { %4866 = vmatpush1.bf16.msra.mxu0 %v9684_v20  ;;  %v9857_v20 = vld [vmem:[%s13173_s3 + $0x90] sm:$0xff]  }
 0x228   : > { %4867 = vmatprep.subr.bf16.mxu0 %v9689_v21  ;;  %5410 = vmatmul.mubr.bf16.vlgmr.msra.gmra.mrb[12].mxu1 %v11331_v56  ;;  %v9695_v56 = vld [vmem:[%s13171_s1 + $0x1c4] ss:$20 sps:$4 sm:$0xff]   ;;  %v9755_v21 = vld [vmem:[%s13171_s1 + $0x588] ss:$20 sps:$4 sm:$0xff]  }
 0x229   : > { %8754 = vmatpush3.bf16.msra.mxu1 %v9806_v23  ;;  %5489 = vmatprep.mubr.bf16.mxu1 %v11557_v16  ;;  %v9693_v16 = vld [vmem:[%s13171_s1 + $0x1c0] ss:$20 sps:$4 sm:$0xff]   ;;  %v9757_v23 = vld [vmem:[%s13171_s1 + $0x6f0] ss:$20 sps:$4 sm:$0xff]  }
 0x22a   : > { %8755 = vmatprep.subr.bf16.mxu1 %v9808_v25  ;;  %v9860_v25 = vld [vmem:[%s13173_s3 + $0xe0] sm:$0xff]  }
 0x22b   : > { %4868 = vmatpush1.bf16.msra.mxu0 %v9687_v24  ;;  %v9859_v24 = vld [vmem:[%s13173_s3 + $0x98] sm:$0xff]  }
 0x22c   : > { %4869 = vmatprep.subr.bf16.mxu0 %v9692_v28  ;;  %v9759_v28 = vld [vmem:[%s13171_s1 + $0x5b0] ss:$20 sps:$4 sm:$0xff]  }
 0x22d   : > { %8756 = vmatpush3.bf16.msra.mxu1 %v9810_v29  ;;  %v9761_v29 = vld [vmem:[%s13171_s1 + $0x718] ss:$20 sps:$4 sm:$0xff]  }
 0x22e   : > { %8757 = vmatprep.subr.bf16.mxu1 %v9812_v32  ;;  %v9862_v32 = vld [vmem:[%s13173_s3 + $0xe8] sm:$0xff]  }
 0x22f   : > { %4870 = vmatpush1.bf16.msra.mxu0 %v9690_v30  ;;  %v9861_v30 = vld [vmem:[%s13173_s3 + $0xa0] sm:$0xff]  }
 0x230   : > { %4871 = vmatprep.subr.bf16.mxu0 %v9695_v56  ;;  %v9763_v56 = vld [vmem:[%s13171_s1 + $0x5d8] ss:$20 sps:$4 sm:$0xff]  }
 0x231   : > { %8758 = vmatpush3.bf16.msra.mxu1 %v9814_v33  ;;  %v9765_v33 = vld [vmem:[%s13171_s1 + $0x740] ss:$20 sps:$4 sm:$0xff]  }
 0x232   : > { %8759 = vmatprep.subr.bf16.mxu1 %v9816_v34  ;;  %v9769_v34 = vld [vmem:[%s13171_s1 + $0x768] ss:$20 sps:$4 sm:$0xff]  }
 0x233   : > { %4872 = vmatpush1.bf16.msra.mxu0 %v9693_v16  ;;  %v9767_v16 = vld [vmem:[%s13171_s1 + $0x600] ss:$20 sps:$4 sm:$0xff]  }
 0x234   : > { %4873 = vmatprep.subr.bf16.mxu0 %v9698_v8  ;;  %v9771_v8 = vld [vmem:[%s13171_s1 + $0x628] ss:$20 sps:$4 sm:$0xff]  }
 0x235   : > { %8760 = vmatpush3.bf16.msra.mxu1 %v9818_v35  ;;  %v9773_v35 = vld [vmem:[%s13171_s1 + $0xb50] ss:$20 sps:$4 sm:$0xff]  }
 0x236   : > { %8761 = vmatprep.subr.bf16.mxu1 %v9820_v40  ;;  %v9777_v40 = vld [vmem:[%s13171_s1 + $0xb78] ss:$20 sps:$4 sm:$0xff]  }
 0x237   : > { %4874 = vmatpush1.bf16.msra.mxu0 %v9696_v37  ;;  %v9775_v37 = vld [vmem:[%s13171_s1 + $0xa10] ss:$20 sps:$4 sm:$0xff]  }
 0x238   : > { %4875 = vmatprep.subr.bf16.mxu0 %v9701_v41  ;;  %v9779_v41 = vld [vmem:[%s13171_s1 + $0xa38] ss:$20 sps:$4 sm:$0xff]  }
 0x239   : > { %8762 = vmatpush3.bf16.msra.mxu1 %v9822_v42  ;;  %v9781_v42 = vld [vmem:[%s13171_s1 + $0xba0] ss:$20 sps:$4 sm:$0xff]  }
 0x23a   : > { %8763 = vmatprep.subr.bf16.mxu1 %v9824_v44  ;;  %v9789_v44 = vld [vmem:[%s13171_s1 + $0xbf0] ss:$20 sps:$4 sm:$0xff]  }
 0x23b   : > { %4876 = vmatpush1.bf16.msra.mxu0 %v9699_v27  ;;  %v9783_v27 = vld [vmem:[%s13171_s1 + $0xa60] ss:$20 sps:$4 sm:$0xff]  }
 0x23c   : > { %4877 = vmatprep.subr.bf16.mxu0 %v9704_v53  ;;  %v9791_v53 = vld [vmem:[%s13171_s1 + $0xab0] ss:$20 sps:$4 sm:$0xff]  }
 0x23d   : > { %8764 = vmatpush3.bf16.msra.mxu1 %v9826_v45  ;;  %v9793_v45 = vld [vmem:[%s13171_s1 + $0xc18] ss:$20 sps:$4 sm:$0xff]  }
 0x23e   : > { %8765 = vmatprep.subr.bf16.mxu1 %v9828_v47  ;;  %v9863_v47 = vld [vmem:[%s13173_s3 + $0xa8] sm:$0xff]  }
 0x23f   : > { %4878 = vmatpush1.bf16.msra.mxu0 %v9702_v46  ;;  %v9795_v46 = vld [vmem:[%s13171_s1 + $0xad8] ss:$20 sps:$4 sm:$0xff]  }
 0x240   : > { %4879 = vmatprep.subr.bf16.mxu0 %v9707_v49  ;;  %v9797_v49 = vld [vmem:[%s13171_s1 + $0xc40] ss:$20 sps:$4 sm:$0xff]  }
 0x241   : > { %8766 = vmatpush3.bf16.msra.mxu1 %v9830_v50 }
 0x242   : > { %8767 = vmatprep.subr.bf16.mxu1 %v9832_v52  ;;  %v9864_v52 = vld [vmem:[%s13173_s3 + $0xf0] sm:$0xff]  }
 0x243   : > { %4880 = vmatpush1.bf16.msra.mxu0 %v9705_v51 }
 0x244   : > { %8599 = vmatprep.subr.bf16.mxu0 %v9709_v54 }
 0x245   : > { %8768 = vmatpush3.bf16.msra.mxu1 %v9834_v55  ;;  %v9799_v55 = vld [vmem:[%s13171_s1 + $0xb00] ss:$20 sps:$4 sm:$0xff]  }
 0x246   : > { %4882 = vmatmul.mubr.bf16.vlgmr.msra.gmra.mrb[4].mxu0 %v10495_v6  ;;  %8797 = vmatprep.subr.bf16.mxu1 %v9852_v12  ;;  %v9831_v12 = vld [vmem:[%s13171_s1 + $0x1000] ss:$20 sps:$4 sm:$0xff]  }
 0x247   : > { %8600 = vmatpush3.bf16.msra.mxu0 %v9711_v58  ;;  %5209 = vmatprep.mubr.bf16.mxu0 %v10431_v48  ;;  %v9723_v48 = vld [vmem:[%s13171_s1 + $0x88] ss:$20 sps:$4 sm:$0xff]   ;;  %v9865_v58 = vld [vmem:[%s13173_s3 + $0xb0] sm:$0xff]  }
 0x248   : > { %8601 = vmatprep.subr.bf16.mxu0 %v9713_v26  ;;  %5490 = vmatmul.mubr.bf16.vlgmr.msra.gmra.mrb[16].mxu1 %v11739_v31  ;;  %v9725_v31 = vld [vmem:[%s13171_s1 + $0x1f0] ss:$20 sps:$4 sm:$0xff]  }
 0x249   : > { %8798 = vmatpush3.bf16.msra.mxu1 %v9853_v13 }
 0x24a   : > { %8799 = vmatprep.subr.bf16.mxu1 %v9854_v14  ;;  %v9833_v14 = vld [vmem:[%s13171_s1 + $0x1168] ss:$20 sps:$4 sm:$0xff]  }
 0x24b   : > { %8602 = vmatpush3.bf16.msra.mxu0 %v9715_v59  ;;  %v9801_v59 = vld [vmem:[%s13171_s1 + $0xc68] ss:$20 sps:$4 sm:$0xff]  }
 0x24c   : > { %8603 = vmatprep.subr.bf16.mxu0 %v9717_v43  ;;  %v9866_v43 = vld [vmem:[%s13173_s3 + $0xf8] sm:$0xff]  }
 0x24d   : > { %8800 = vmatpush3.bf16.msra.mxu1 %v9855_v7 }
 0x24e   : > { %8801 = vmatprep.subr.bf16.mxu1 %v9856_v17  ;;  %v9835_v17 = vld [vmem:[%s13171_s1 + $0x1028] ss:$20 sps:$4 sm:$0xff]  }
 0x24f   : > { %8604 = vmatpush3.bf16.msra.mxu0 %v9719_v60  ;;  %v9803_v60 = vld [vmem:[%s13171_s1 + $0xb28] ss:$20 sps:$4 sm:$0xff]  }
 0x250   : > { %8605 = vmatprep.subr.bf16.mxu0 %v9721_v39  ;;  %v9867_v39 = vld [vmem:[%s13173_s3 + $0xb8] sm:$0xff]  }
 0x251   : > { %8802 = vmatpush3.bf16.msra.mxu1 %v9857_v20  ;;  %v9838_v20 = vld [vmem:[%s13173_s3 + $0x48] sm:$0xff]  }
 0x252   : > { %8803 = vmatprep.subr.bf16.mxu1 %v9858_v22  ;;  %v9839_v22 = vld [vmem:[%s13173_s3 + $0x8] sm:$0xff]  }
 0x253   : > { %8606 = vmatpush3.bf16.msra.mxu0 %v9723_v48  ;;  %v9805_v48 = vld [vmem:[%s13171_s1 + $0x1050] ss:$20 sps:$4 sm:$0xff]  }
 0x254   : > { %8607 = vmatprep.subr.bf16.mxu0 %v9725_v31  ;;  %v9807_v31 = vld [vmem:[%s13171_s1 + $0xf10] ss:$20 sps:$4 sm:$0xff]  }
 0x255   : > { %8804 = vmatpush3.bf16.msra.mxu1 %v9859_v24  ;;  %v1112_v24 = vlaneseq }
 0x256   : > { %8805 = vmatprep.subr.bf16.mxu1 %v9860_v25  ;;  %v9843_v25 = vld [vmem:[%s13173_s3 + $0x18] sm:$0xff]  }
 0x257   : > { %8608 = vmatpush3.bf16.msra.mxu0 %v9727_v62  ;;  %v9809_v62 = vld [vmem:[%s13171_s1 + $0x1078] ss:$20 sps:$4 sm:$0xff]  }
 0x258   : > { %8609 = vmatprep.subr.bf16.mxu0 %v9729_v63  ;;  %v9811_v63 = vld [vmem:[%s13171_s1 + $0xf38] ss:$20 sps:$4 sm:$0xff]  }
 0x259   : > { %8806 = vmatpush3.bf16.msra.mxu1 %v9861_v30  ;;  %v9845_v30 = vld [vmem:[%s13173_s3 + $0x20] sm:$0xff]  }
 0x25a   : > { %8807 = vmatprep.subr.bf16.mxu1 %v9862_v32 }
 0x25b   : > { %8610 = vmatpush3.bf16.msra.mxu0 %v9731_v0  ;;  %v9813_v0 = vld [vmem:[%s13171_s1 + $0x10a0] ss:$20 sps:$4 sm:$0xff]  }
 0x25c   : > { %8611 = vmatprep.subr.bf16.mxu0 %v9733_v1  ;;  %v9815_v1 = vld [vmem:[%s13171_s1 + $0xf60] ss:$20 sps:$4 sm:$0xff]  }
 0x25d   : > { %8808 = vmatpush3.bf16.msra.mxu1 %v9863_v47 }
 0x25e   : > { %8809 = vmatprep.subr.bf16.mxu1 %v9864_v52 }
 0x25f   : > { %8612 = vmatpush3.bf16.msra.mxu0 %v9735_v2  ;;  %v9821_v2 = vld [vmem:[%s13171_s1 + $0x10f0] ss:$20 sps:$4 sm:$0xff]  }
 0x260   : > { %8613 = vmatprep.subr.bf16.mxu0 %v9737_v3  ;;  %v9823_v3 = vld [vmem:[%s13171_s1 + $0xfb0] ss:$20 sps:$4 sm:$0xff]  }
 0x261   : > { %8810 = vmatpush3.bf16.msra.mxu1 %v9865_v58  ;;  %v9851_v58 = vld [vmem:[%s13173_s3 + $0x38] sm:$0xff]  }
 0x262   : > { %8811 = vmatprep.subr.bf16.mxu1 %v9866_v43 }
 0x263   : > { %8614 = vmatpush3.bf16.msra.mxu0 %v9739_v4  ;;  %v9825_v4 = vld [vmem:[%s13171_s1 + $0x1118] ss:$20 sps:$4 sm:$0xff]  }
 0x264   : > { %8643 = vmatprep.subr.bf16.mxu0 %v9741_v5  ;;  %v9827_v5 = vld [vmem:[%s13171_s1 + $0xfd8] ss:$20 sps:$4 sm:$0xff]  }
 0x265   : > { %8812 = vmatpush3.bf16.msra.mxu1 %v9867_v39 }
 0x266   : > { %5210 = vmatmul.mubr.bf16.vlgmr.msra.gmra.mrb[8].mxu0 %v10495_v6  ;;  %v9749_v6 = vld [vmem:[%s13171_s1 + $0x6a0] ss:$20 sps:$4 sm:$0xff]  }
 0x267   : > { %8644 = vmatpush3.bf16.msra.mxu0 %v9743_v9  ;;  %5289 = vmatprep.mubr.bf16.mxu0 %v10588_v36  ;;  %v9751_v36 = vld [vmem:[%s13171_s1 + $0x560] ss:$20 sps:$4 sm:$0xff]  }
 0x268   : > { %8645 = vmatprep.subr.bf16.mxu0 %v9745_v10  ;;  %v9829_v9 = vld [vmem:[%s13171_s1 + $0x1140] ss:$20 sps:$4 sm:$0xff]  }
 0x26b   : > { %8646 = vmatpush3.bf16.msra.mxu0 %v9747_v57 }
 0x26c   : > { %8647 = vmatprep.subr.bf16.mxu0 %v9749_v6 }
 0x26f   : > { %8648 = vmatpush3.bf16.msra.mxu0 %v9751_v36  ;;  %v9836_v36 = vld [vmem:[%s13173_s3 + $0x40] sm:$0xff]  }
 0x270   : > { %8649 = vmatprep.subr.bf16.mxu0 %v9753_v18  ;;  %v9837_v18 = vld [vmem:[%s13173_s3] sm:$0xff]  }
 0x273   : > { %8650 = vmatpush3.bf16.msra.mxu0 %v9755_v21  ;;  %v9840_v21 = vld [vmem:[%s13173_s3 + $0x50] sm:$0xff]  }
 0x274   : > { %8651 = vmatprep.subr.bf16.mxu0 %v9757_v23  ;;  %v9841_v23 = vld [vmem:[%s13173_s3 + $0x10] sm:$0xff]  }
 0x277   : > { %8652 = vmatpush3.bf16.msra.mxu0 %v9759_v28  ;;  %v12411_v28 = vshrl.u32 %v1112_v24, 7 }
 0x278   : > { %8653 = vmatprep.subr.bf16.mxu0 %v9761_v29  ;;  %v9844_v29 = vld [vmem:[%s13173_s3 + $0x60] sm:$0xff]  }
 0x279   : > { %v12420_v32 = vsub.s32 1, %v12411_v28 }
 0x27b   : > { %8654 = vmatpush3.bf16.msra.mxu0 %v9763_v56  ;;  %v12425_v56 = vld [vmem:[%s13172_s2] sm:$0x1f] }
 0x27c   : > { %8655 = vmatprep.subr.bf16.mxu0 %v9765_v33  ;;  %v12428_v33 = vsub.s32 0, %v12411_v28 }
 0x27f   : > { %8656 = vmatpush3.bf16.msra.mxu0 %v9767_v16  ;;  %v9846_v16 = vld [vmem:[%s13173_s3 + $0x68] sm:$0xff]  }
 0x280   : > { %8657 = vmatprep.subr.bf16.mxu0 %v9769_v34  ;;  %v1119_v34 = vrot.slane %v12425_v56, %v12420_v32 }
 0x283   : > { %8658 = vmatpush3.bf16.msra.mxu0 %v9771_v8  ;;  %v9847_v8 = vld [vmem:[%s13173_s3 + $0x28] sm:$0xff]  }
 0x284   : > { %8687 = vmatprep.subr.bf16.mxu0 %v9773_v35  ;;  %v1115_v35 = vrot.slane %v12425_v56, %v12428_v33 }
 0x286   : > { %5290 = vmatmul.mubr.bf16.vlgmr.msra.gmra.mrb[12].mxu0 %v10707_v15  ;;  %v9785_v15 = vld [vmem:[%s13171_s1 + $0xbc8] ss:$20 sps:$4 sm:$0xff]  }
 0x287   : > { %8688 = vmatpush3.bf16.msra.mxu0 %v9775_v37  ;;  %5369 = vmatprep.mubr.bf16.mxu0 %v10930_v19  ;;  %v9787_v19 = vld [vmem:[%s13171_s1 + $0xa88] ss:$20 sps:$4 sm:$0xff]   ;;  %v9848_v37 = vld [vmem:[%s13173_s3 + $0x70] sm:$0xff]  }
 0x288   : > { %8689 = vmatprep.subr.bf16.mxu0 %v9777_v40 }
 0x28b   : > { %8690 = vmatpush3.bf16.msra.mxu0 %v9779_v41 }
 0x28c   : > { %8691 = vmatprep.subr.bf16.mxu0 %v9781_v42 }
 0x28f   : > { %8692 = vmatpush3.bf16.msra.mxu0 %v9783_v27 }
 0x290   : > { %8693 = vmatprep.subr.bf16.mxu0 %v9785_v15  ;;  %v9849_v15 = vld [vmem:[%s13173_s3 + $0x30] sm:$0xff]  }
 0x293   : > { %8694 = vmatpush3.bf16.msra.mxu0 %v9787_v19 }
 0x294   : > { %8695 = vmatprep.subr.bf16.mxu0 %v9789_v44 }
 0x297   : > { %8696 = vmatpush3.bf16.msra.mxu0 %v9791_v53 }
 0x298   : > { %8697 = vmatprep.subr.bf16.mxu0 %v9793_v45  ;;  %v9850_v45 = vld [vmem:[%s13173_s3 + $0x78] sm:$0xff]  }
 0x299   : > { %v12309_v50 = vpop.f32.mrb[0].mxu1 }
 0x29a   : > { %v12311_v51 = vpop.f32.mrb[1].mxu1 }
 0x29b   : > { %v5174_v54 = vpop.f32.mrb[2].mxu1  ;;  %8698 = vmatpush3.bf16.msra.mxu0 %v9795_v46 }
 0x29c   : > { %v5175_v26 = vpop.f32.mrb[3].mxu1  ;;  %8699 = vmatprep.subr.bf16.mxu0 %v9797_v49 }
 0x29f   : > { %8700 = vmatpush3.bf16.msra.mxu0 %v9799_v55 }
 0x2a0   : > { %8701 = vmatprep.subr.bf16.mxu0 %v9801_v59 }
 0x2a3   : > { %8702 = vmatpush3.bf16.msra.mxu0 %v9803_v60 }
 0x2a4   : > { %8731 = vmatprep.subr.bf16.mxu0 %v9805_v48 }
 0x2a6   : > { %5370 = vmatmul.mubr.bf16.vlgmr.msra.gmra.mrb[16].mxu0 %v11118_v38  ;;  %v9817_v38 = vld [vmem:[%s13171_s1 + $0x10c8] ss:$20 sps:$4 sm:$0xff]  }
 0x2a7   : > { %8732 = vmatpush3.bf16.msra.mxu0 %v9807_v31  ;;  %5449 = vmatprep.mubr.bf16.mxu0 %v11350_v61  ;;  %v9819_v61 = vld [vmem:[%s13171_s1 + $0xf88] ss:$20 sps:$4 sm:$0xff]  }
 0x2a8   : > { %8733 = vmatprep.subr.bf16.mxu0 %v9809_v62  ;;  %v9868_v62 = vld [vmem:[%s13173_s3 + $0x100] sm:$0xff]  }
 0x2ab   : > { %8734 = vmatpush3.bf16.msra.mxu0 %v9811_v63  ;;  %v10216_v63 = vmov 0.0  }
 0x2ac   : > { %8735 = vmatprep.subr.bf16.mxu0 %v9813_v0  ;;  %v12460_v0 = vsub.s32 2, %v12411_v28 }
 0x2af   : > { %8736 = vmatpush3.bf16.msra.mxu0 %v9815_v1  ;;  %v12463_v1 = vsub.s32 3, %v12411_v28 }
 0x2b0   : > { %8737 = vmatprep.subr.bf16.mxu0 %v9817_v38  ;;  %v1123_v38 = vrot.slane %v12425_v56, %v12460_v0 }
 0x2b3   : > { %8738 = vmatpush3.bf16.msra.mxu0 %v9819_v61  ;;  %v1127_v61 = vrot.slane %v12425_v56, %v12463_v1 }
 0x2b4   : > { %8739 = vmatprep.subr.bf16.mxu0 %v9821_v2  ;;  %v9869_v2 = vld [vmem:[%s13173_s3 + $0x108] sm:$0xff]  }
 0x2b7   : > { %8740 = vmatpush3.bf16.msra.mxu0 %v9823_v3 }
 0x2b8   : > { %8741 = vmatprep.subr.bf16.mxu0 %v9825_v4 }
 0x2ba   : > { %v8637_v10 = vpop.f32.mrb[4].mxu1 }
 0x2bb   : > { %8742 = vmatpush3.bf16.msra.mxu0 %v9827_v5  ;;  %v8638_v13 = vpop.f32.mrb[5].mxu1 }
 0x2bc   : > { %8743 = vmatprep.subr.bf16.mxu0 %v9829_v9  ;;  %v8640_v57 = vpop.f32.mrb[6].mxu1  ;;  %v12381_v6 = vadd.f32 %v8638_v13, %v8637_v10 }
 0x2bd   : > { %v8641_v7 = vpop.f32.mrb[7].mxu1 }
 0x2be   : > { %v9870_v7 = vld [vmem:[%s13173_s3 + $0x110] sm:$0xff]  }
 0x2bf   : > { %8744 = vmatpush3.bf16.msra.mxu0 %v9831_v12 }
 0x2c0   : > { %8745 = vmatprep.subr.bf16.mxu0 %v9833_v14 }
 0x2c3   : > { %8746 = vmatpush3.bf16.msra.mxu0 %v9835_v17 }
 0x2c4   : > { %8775 = vmatprep.subr.bf16.mxu0 %v9836_v36 }
 0x2c6   : > { %5450 = vmatmul.mubr.bf16.vlgmr.msra.gmra.mrb[20].mxu0 %v11541_v11  ;;  %v9842_v11 = vld [vmem:[%s13173_s3 + $0x58] sm:$0xff]  }
 0x2c7   : > { %8776 = vmatpush3.bf16.msra.mxu0 %v9837_v18 }
 0x2c8   : > { %8777 = vmatprep.subr.bf16.mxu0 %v9838_v20 }
 0x2cb   : > { %8778 = vmatpush3.bf16.msra.mxu0 %v9839_v22 }
 0x2cc   : > { %8779 = vmatprep.subr.bf16.mxu0 %v9840_v21 }
 0x2cf   : > { %8780 = vmatpush3.bf16.msra.mxu0 %v9841_v23  ;;  %v9871_v23 = vld [vmem:[%s13173_s3 + $0x118] sm:$0xff]  }
 0x2d0   : > { %8781 = vmatprep.subr.bf16.mxu0 %v9842_v11 }
 0x2d3   : > { %8782 = vmatpush3.bf16.msra.mxu0 %v9843_v25 }
 0x2d4   : > { %8783 = vmatprep.subr.bf16.mxu0 %v9844_v29 }
 0x2d7   : > { %8784 = vmatpush3.bf16.msra.mxu0 %v9845_v30 }
 0x2d8   : > { %8785 = vmatprep.subr.bf16.mxu0 %v9846_v16 }
 0x2d9   : > { %v4842_v40 = vpop.f32.mrb[0].mxu0 }
 0x2da   : > { %v4844_v41 = vpop.f32.mrb[1].mxu0  ;;  %v8836_v44 = vadd.f32 %v4842_v40, %v1115_v35 }
 0x2db   : > { %v8837_v42 = vadd.f32 %v4844_v41, %v1119_v34  ;;  %v4846_v27 = vpop.f32.mrb[2].mxu0  ;;  %8786 = vmatpush3.bf16.msra.mxu0 %v9847_v8  ;;  %v8681_v19 = vpop.f32.mrb[8].mxu1 }
 0x2dc   : > { %v4847_v53 = vpop.f32.mrb[3].mxu0  ;;  %8787 = vmatprep.subr.bf16.mxu0 %v9848_v37  ;;  %v8682_v46 = vpop.f32.mrb[9].mxu1  ;;  %v5497_v26 = vmax.f32 %v8836_v44, 0.0 }
 0x2dd   : > { %v5498_v47 = vmax.f32 %v8837_v42, 0.0  ;;  %v12449_v49 = vadd.f32 %v8682_v46, %v8681_v19  ;;  %v8684_v52 = vpop.f32.mrb[10].mxu1 }
 0x2de   : > { %v8685_v54 = vpop.f32.mrb[11].mxu1  ;;  %v5502_v59 = vpack.c.bf16 %v5497_v26, %v5497_v26 }
 0x2df   : > { %v5503_v55 = vpack.c.bf16 %v5498_v47, %v5498_v47  ;;  %8788 = vmatpush3.bf16.msra.mxu0 %v9849_v15  ;;  %v9877_v47 = vld [vmem:[%s13175_s5 + $0xc] ss:$16 sps:$4 sm:$0xff]  }
 0x2e0   : > { %8789 = vmatprep.subr.bf16.mxu0 %v9850_v45  ;;  %v9874_v45 = vld [vmem:[%s13175_s5 + $0x4] ss:$16 sps:$4 sm:$0xff]  }
 0x2e1   : > { %5838 = vmatprep.mubr.bf16.mxu0 %v5503_v55  ;;  %6049 = vmatprep.subr.bf16.mxu1 %v9874_v45  ;;  %v9878_v55 = vld [vmem:[%s13175_s5 + $0x20] ss:$16 sps:$4 sm:$0xff]   ;;  %v9910_v45 = vld [vmem:[%s13177_s7 + $0x64] ss:$24 sps:$4 sm:$0xff]  }
 0x2e3   : > { %8790 = vmatpush3.bf16.msra.mxu0 %v9851_v58  ;;  %v9886_v58 = vld [vmem:[%s13175_s5 + $0x44] ss:$16 sps:$4 sm:$0xff]  }
 0x2e4   : > { %8824 = vmatprep.subr.bf16.mxu0 %v10216_v63 }
 0x2e6   : > { %5839 = vmatmul.mubr.bf16.vlgmr.msra.gmra.mrb[24].mxu0 %v5502_v59  ;;  %v9884_v59 = vld [vmem:[%s13175_s5 + $0x40] ss:$16 sps:$4 sm:$0xff]  }
 0x2e7   : > { %8825 = vmatpush3.bf16.msra.mxu0 %v9868_v62  ;;  %8832 = vmatprep.mubr.msk.bf16.mxu0 %vm10217_vm0, %v10216_v63 }
 0x2e8   : > { %8826 = vmatprep.subr.bf16.mxu0 %v10216_v63 }
 0x2eb   : > { %8827 = vmatpush3.bf16.msra.mxu0 %v9869_v2 }
 0x2ec   : > { %8828 = vmatprep.subr.bf16.mxu0 %v10216_v63 }
 0x2ef   : > { %8829 = vmatpush3.bf16.msra.mxu0 %v9870_v7  ;;  %v8348_v7 = vld [vmem:[%s13174_s4] ss:$0 sm:$0xff] }
 0x2f0   : > { %8830 = vmatprep.subr.bf16.mxu0 %v10216_v63 }
 0x2f3   : > { %8831 = vmatpush3.bf16.msra.mxu0 %v9871_v23  ;;  %v9895_v23 = vld [vmem:[%s13175_s5 + $0x6c] ss:$16 sps:$4 sm:$0xff]  }
 0x2f4   : > { %6090 = vmatprep.subr.bf16.mxu0 %v9877_v47  ;;  %v9911_v47 = vld [vmem:[%s13177_s7 + $0x68] ss:$24 sps:$4 sm:$0xff]  }
 0x2fb   : > { %v8725_v43 = vpop.f32.mrb[12].mxu1 }
 0x2fc   : > { %v8726_v60 = vpop.f32.mrb[13].mxu1 }
 0x2fd   : > { %v12454_v39 = vadd.f32 %v8726_v60, %v8725_v43  ;;  %v8728_v48 = vpop.f32.mrb[14].mxu1 }
 0x2fe   : > { %v8729_v31 = vpop.f32.mrb[15].mxu1 }
 0x319   : > { %v4883_v3 = vpop.f32.mrb[4].mxu0 }
 0x31a   : > { %v4884_v4 = vadd.f32 %v4883_v3, %v1123_v38  ;;  %v4885_v5 = vpop.f32.mrb[5].mxu0  ;;  %v9883_v3 = vld [vmem:[%s13175_s5 + $0x2c] ss:$16 sps:$4 sm:$0xff]  }
 0x31b   : > { %v4886_v9 = vadd.f32 %v4885_v5, %v1127_v61  ;;  %v4887_v10 = vpop.f32.mrb[6].mxu0  ;;  %v8769_v12 = vpop.f32.mrb[16].mxu1  ;;  %v9889_v5 = vld [vmem:[%s13175_s5 + $0x4c] ss:$16 sps:$4 sm:$0xff]  }
 0x31c   : > { %v8839_v13 = vadd.f32 %v12309_v50, %v4884_v4  ;;  %v4888_v14 = vpop.f32.mrb[7].mxu0  ;;  %v8770_v57 = vpop.f32.mrb[17].mxu1  ;;  %v9881_v4 = vld [vmem:[%s13175_s5 + $0x28] ss:$16 sps:$4 sm:$0xff]  }
 0x31d   : > { %v8841_v17 = vadd.f32 %v12311_v51, %v4886_v9  ;;  %v8771_v36 = vadd.f32 %v8770_v57, %v8769_v12  ;;  %v8772_v18 = vpop.f32.mrb[18].mxu1  ;;  %v1130_v51 = vsub.s32 4, %v12411_v28  ;;  %v9887_v9 = vld [vmem:[%s13175_s5 + $0x48] ss:$16 sps:$4 sm:$0xff]  }
 0x31e   : > { %v5499_v20 = vmax.f32 %v8839_v13, 0.0  ;;  %v8773_v22 = vpop.f32.mrb[19].mxu1 }
 0x31f   : > { %v5500_v21 = vmax.f32 %v8841_v17, 0.0  ;;  %v1131_v25 = vrot.slane %v12425_v56, %v1130_v51  ;;  %v9872_v56 = vld [vmem:[%s13175_s5] ss:$16 sps:$4 sm:$0xff]  }
 0x320   : > { %v5504_v24 = vpack.c.bf16 %v5499_v20, %v5499_v20 }
 0x321   : > { %v5505_v50 = vpack.c.bf16 %v5500_v21, %v5500_v21  ;;  %v9892_v21 = vld [vmem:[%s13175_s5 + $0x64] ss:$16 sps:$4 sm:$0xff]  }
 0x323   : > { %5878 = vmatprep.mubr.bf16.mxu1 %v5505_v50 }
 0x324   : > { %5879 = vmatmul.mubr.bf16.vlgmr.msra.gmra.mrb[20].mxu1 %v5504_v24  ;;  %v9890_v24 = vld [vmem:[%s13175_s5 + $0x60] ss:$16 sps:$4 sm:$0xff]  }
 0x325   : > { %6050 = vmatpush1.bf16.msra.mxu1 %v9872_v56  ;;  %v9905_v56 = vld [vmem:[%s13177_s7 + $0x38] ss:$24 sps:$4 sm:$0xff]  }
 0x339   : > { %v8615_v11 = vpop.f32.mrb[8].mxu0 }
 0x33a   : > { %v8616_v29 = vpop.f32.mrb[9].mxu0 }
 0x33b   : > { %v8617_v30 = vadd.f32 %v8616_v29, %v8615_v11  ;;  %v8618_v16 = vpop.f32.mrb[10].mxu0  ;;  %v9893_v11 = vld [vmem:[%s13175_s5 + $0x68] ss:$16 sps:$4 sm:$0xff]   ;;  %v10218_v29 = vmov 0  }
 0x33c   : > { %v8619_v34 = vpop.f32.mrb[11].mxu0  ;;  %6081 = vmatprep.mubr.bf16.mxu1 %v10218_v29  ;;  %v9901_v16 = vld [vmem:[%s13177_s7 + $0xc] ss:$24 sps:$4 sm:$0xff]  }
 0x33d   : > { %v5212_v8 = vadd.f32 %v8617_v30, %v1131_v25  ;;  %v9898_v30 = vld [vmem:[%s13177_s7 + $0x4] ss:$24 sps:$4 sm:$0xff]  }
 0x33f   : > { %v5252_v35 = vadd.f32 %v12381_v6, %v5212_v8 }
 0x359   : > { %v8659_v37 = vpop.f32.mrb[12].mxu0 }
 0x35a   : > { %v8660_v40 = vpop.f32.mrb[13].mxu0 }
 0x35b   : > { %v8661_v41 = vadd.f32 %v8660_v40, %v8659_v37  ;;  %v8662_v42 = vpop.f32.mrb[14].mxu0 }
 0x35c   : > { %v8663_v27 = vpop.f32.mrb[15].mxu0  ;;  %v9896_v42 = vld [vmem:[%s13177_s7] ss:$24 sps:$4 sm:$0xff]  }
 0x35d   : > { %v5292_v15 = vadd.f32 %v8661_v41, %v5252_v35  ;;  %v9899_v27 = vld [vmem:[%s13177_s7 + $0x8] ss:$24 sps:$4 sm:$0xff]  }
 0x35f   : > { %v5332_v19 = vadd.f32 %v12449_v49, %v5292_v15  ;;  %v9880_v49 = vld [vmem:[%s13175_s5 + $0x24] ss:$16 sps:$4 sm:$0xff]  }
 0x360   : > { %6051 = vmatprep.subr.bf16.mxu1 %v9880_v49  ;;  %v9919_v49 = vld [vmem:[%s13177_s7 + $0x9c] ss:$24 sps:$4 sm:$0xff]  }
 0x361   : > { %6052 = vmatpush1.bf16.msra.mxu1 %v9878_v55  ;;  %v9917_v55 = vld [vmem:[%s13177_s7 + $0x98] ss:$24 sps:$4 sm:$0xff]  }
 0x362   : > { %6053 = vmatprep.subr.bf16.mxu1 %v9886_v58  ;;  %v9922_v58 = vld [vmem:[%s13177_s7 + $0xc4] ss:$24 sps:$4 sm:$0xff]  }
 0x365   : > { %6054 = vmatpush1.bf16.msra.mxu1 %v9884_v59  ;;  %v9920_v59 = vld [vmem:[%s13177_s7 + $0xc0] ss:$24 sps:$4 sm:$0xff]  }
 0x366   : > { %6055 = vmatprep.subr.bf16.mxu1 %v9892_v21  ;;  %v9964_v21 = vld [vmem:[%s13177_s7 + $0x214] ss:$24 sps:$4 sm:$0xff]  }
 0x369   : > { %6056 = vmatpush1.bf16.msra.mxu1 %v9890_v24  ;;  %v9965_v24 = vld [vmem:[%s13177_s7 + $0x218] ss:$24 sps:$4 sm:$0xff]  }
 0x36a   : > { %7323 = vmatprep.subr.bf16.mxu1 %v9898_v30  ;;  %v9971_v30 = vld [vmem:[%s13177_s7 + $0x248] ss:$24 sps:$4 sm:$0xff]  }
 0x379   : > { %v8703_v44 = vpop.f32.mrb[16].mxu0 }
 0x37a   : > { %v8704_v53 = vpop.f32.mrb[17].mxu0 }
 0x37b   : > { %v8705_v46 = vadd.f32 %v8704_v53, %v8703_v44  ;;  %v8706_v6 = vpop.f32.mrb[18].mxu0  ;;  %v9907_v44 = vld [vmem:[%s13177_s7 + $0x3c] ss:$24 sps:$4 sm:$0xff]   ;;  %v9902_v53 = vld [vmem:[%s13177_s7 + $0x30] ss:$24 sps:$4 sm:$0xff]  }
 0x37c   : > { %v8707_v52 = vpop.f32.mrb[19].mxu0  ;;  %v9908_v6 = vld [vmem:[%s13177_s7 + $0x60] ss:$24 sps:$4 sm:$0xff]  }
 0x37d   : > { %v5372_v54 = vadd.f32 %v8705_v46, %v5332_v19  ;;  %v9904_v19 = vld [vmem:[%s13177_s7 + $0x34] ss:$24 sps:$4 sm:$0xff]  }
 0x37e   : > { %v9913_v46 = vld [vmem:[%s13177_s7 + $0x6c] ss:$24 sps:$4 sm:$0xff]  }
 0x37f   : > { %v5412_v26 = vadd.f32 %v12454_v39, %v5372_v54  ;;  %v9875_v39 = vld [vmem:[%s13175_s5 + $0x8] ss:$16 sps:$4 sm:$0xff]   ;;  %v9916_v52 = vld [vmem:[%s13177_s7 + $0x94] ss:$24 sps:$4 sm:$0xff]  }
 0x380   : > { %v9914_v54 = vld [vmem:[%s13177_s7 + $0x90] ss:$24 sps:$4 sm:$0xff]  }
 0x399   : > { %v8747_v43 = vpop.f32.mrb[20].mxu0 }
 0x39a   : > { %v8748_v60 = vpop.f32.mrb[21].mxu0 }
 0x39b   : > { %v8749_v48 = vadd.f32 %v8748_v60, %v8747_v43  ;;  %v8750_v31 = vpop.f32.mrb[22].mxu0  ;;  %v9923_v43 = vld [vmem:[%s13177_s7 + $0xc8] ss:$24 sps:$4 sm:$0xff]   ;;  %v9928_v60 = vld [vmem:[%s13177_s7 + $0xf4] ss:$24 sps:$4 sm:$0xff]  }
 0x39c   : > { %v8751_v62 = vpop.f32.mrb[23].mxu0  ;;  %v9926_v31 = vld [vmem:[%s13177_s7 + $0xf0] ss:$24 sps:$4 sm:$0xff]  }
 0x39d   : > { %v5452_v63 = vadd.f32 %v8749_v48, %v5412_v26  ;;  %v9925_v26 = vld [vmem:[%s13177_s7 + $0xcc] ss:$24 sps:$4 sm:$0xff]   ;;  %v9931_v48 = vld [vmem:[%s13177_s7 + $0xfc] ss:$24 sps:$4 sm:$0xff]   ;;  %v9929_v62 = vld [vmem:[%s13177_s7 + $0xf8] ss:$24 sps:$4 sm:$0xff]  }
 0x39f   : > { %v5492_v38 = vadd.f32 %v8771_v36, %v5452_v63  ;;  %v9934_v63 = vld [vmem:[%s13177_s7 + $0x124] ss:$24 sps:$4 sm:$0xff]  }
 0x3a1   : > { %v5501_v61 = vmax.f32 %v5492_v38, 0.0  ;;  %v9937_v38 = vld [vmem:[%s13177_s7 + $0x12c] ss:$24 sps:$4 sm:$0xff]  }
 0x3a3   : > { %v5506_v2 = vpack.c.bf16 %v5501_v61, %v5501_v61  ;;  %v9932_v61 = vld [vmem:[%s13177_s7 + $0x120] ss:$24 sps:$4 sm:$0xff]  }
 0x3a5   : > { %8833 = vmatmul.mubr.msk.bf16.vlgmr.msra.gmra.mrb[28].mxu0 %vm5802_vm1, %v5506_v2  ;;  %v9940_v2 = vld [vmem:[%s13177_s7 + $0x154] ss:$24 sps:$4 sm:$0xff]  }
 0x3a6   : > { %6091 = vmatpush1.bf16.msra.mxu0 %v9875_v39  ;;  %6122 = vmatprep.mubr.bf16.mxu0 %v10218_v29  ;;  %v9935_v39 = vld [vmem:[%s13177_s7 + $0x128] ss:$24 sps:$4 sm:$0xff]  }
 0x3a7   : > { %6092 = vmatprep.subr.bf16.mxu0 %v9883_v3  ;;  %v9943_v3 = vld [vmem:[%s13177_s7 + $0x15c] ss:$24 sps:$4 sm:$0xff]   ;;  %v9968_v29 = vld [vmem:[%s13177_s7 + $0x240] ss:$24 sps:$4 sm:$0xff]  }
 0x3aa   : > { %6093 = vmatpush1.bf16.msra.mxu0 %v9881_v4  ;;  %v9938_v4 = vld [vmem:[%s13177_s7 + $0x150] ss:$24 sps:$4 sm:$0xff]  }
 0x3ab   : > { %6094 = vmatprep.subr.bf16.mxu0 %v9889_v5  ;;  %v9941_v5 = vld [vmem:[%s13177_s7 + $0x158] ss:$24 sps:$4 sm:$0xff]  }
 0x3ae   : > { %6095 = vmatpush1.bf16.msra.mxu0 %v9887_v9  ;;  %v9946_v9 = vld [vmem:[%s13177_s7 + $0x184] ss:$24 sps:$4 sm:$0xff]  }
 0x3af   : > { %6096 = vmatprep.subr.bf16.mxu0 %v9895_v23  ;;  %v9967_v23 = vld [vmem:[%s13177_s7 + $0x21c] ss:$24 sps:$4 sm:$0xff]  }
 0x3b2   : > { %6097 = vmatpush1.bf16.msra.mxu0 %v9893_v11  ;;  %v9970_v11 = vld [vmem:[%s13177_s7 + $0x244] ss:$24 sps:$4 sm:$0xff]  }
 0x3b3   : > { %7405 = vmatprep.subr.bf16.mxu0 %v9901_v16  ;;  %v9976_v16 = vld [vmem:[%s13177_s7 + $0x274] ss:$24 sps:$4 sm:$0xff]  }
 0x3b9   : > { %v8791_v10 = vpop.f32.mrb[24].mxu0 }
 0x3ba   : > { %v8792_v12 = vpop.f32.mrb[25].mxu0 }
 0x3bb   : > { %v8793_v13 = vadd.f32 %v8792_v12, %v8791_v10  ;;  %v8794_v14 = vpop.f32.mrb[26].mxu0  ;;  %v9949_v10 = vld [vmem:[%s13177_s7 + $0x18c] ss:$24 sps:$4 sm:$0xff]   ;;  %v9944_v12 = vld [vmem:[%s13177_s7 + $0x180] ss:$24 sps:$4 sm:$0xff]  }
 0x3bc   : > { %v8795_v57 = vpop.f32.mrb[27].mxu0  ;;  %v9952_v14 = vld [vmem:[%s13177_s7 + $0x1b4] ss:$24 sps:$4 sm:$0xff]  }
 0x3bd   : > { %v5841_v18 = vadd.f32 %v8793_v13, %v8348_v7  ;;  %v9947_v13 = vld [vmem:[%s13177_s7 + $0x188] ss:$24 sps:$4 sm:$0xff]   ;;  %v9955_v57 = vld [vmem:[%s13177_s7 + $0x1bc] ss:$24 sps:$4 sm:$0xff]  }
 0x3be   : > { %v9950_v7 = vld [vmem:[%s13177_s7 + $0x1b0] ss:$24 sps:$4 sm:$0xff]  }
 0x3f7   : > { %v8813_v17 = vpop.f32.mrb[20].mxu1 }
 0x3f8   : > { %v8814_v36 = vpop.f32.mrb[21].mxu1 }
 0x3f9   : > { %v8815_v20 = vadd.f32 %v8814_v36, %v8813_v17  ;;  %v8816_v22 = vpop.f32.mrb[22].mxu1  ;;  %v9953_v17 = vld [vmem:[%s13177_s7 + $0x1b8] ss:$24 sps:$4 sm:$0xff]   ;;  %v9958_v36 = vld [vmem:[%s13177_s7 + $0x1e4] ss:$24 sps:$4 sm:$0xff]  }
 0x3fa   : > { %v8817_v50 = vpop.f32.mrb[23].mxu1  ;;  %v9959_v22 = vld [vmem:[%s13177_s7 + $0x1e8] ss:$24 sps:$4 sm:$0xff]  }
 0x3fb   : > { %v5881_v25 = vadd.f32 %v8815_v20, %v5841_v18  ;;  %v9961_v18 = vld [vmem:[%s13177_s7 + $0x1ec] ss:$24 sps:$4 sm:$0xff]   ;;  %v9956_v20 = vld [vmem:[%s13177_s7 + $0x1e0] ss:$24 sps:$4 sm:$0xff]   ;;  %v9962_v50 = vld [vmem:[%s13177_s7 + $0x210] ss:$24 sps:$4 sm:$0xff]  }
 0x478   : > { %v5920_v34 = vpop.f32.mrb[28].mxu0 }
 0x479   : > { %v5921_v8 = vadd.f32 %v5920_v34, %v5881_v25  ;;  %v8834_v35 = vpop.f32.mrb[29].mxu0  ;;  %v9973_v25 = vld [vmem:[%s13177_s7 + $0x24c] ss:$24 sps:$4 sm:$0xff]   ;;  %v9979_v34 = vld [vmem:[%s13177_s7 + $0x27c] ss:$24 sps:$4 sm:$0xff]  }
 0x47a   : > { %v5923_v37 = vpop.f32.mrb[30].mxu0  ;;  %v9977_v35 = vld [vmem:[%s13177_s7 + $0x278] ss:$24 sps:$4 sm:$0xff]  }
 0x47b   : > { %v5926_v40 = vmax.f32 %v5921_v8, 0.0  ;;  %v8835_v41 = vpop.f32.mrb[31].mxu0  ;;  %v9974_v8 = vld [vmem:[%s13177_s7 + $0x270] ss:$24 sps:$4 sm:$0xff]   ;;  %v9982_v37 = vld [vmem:[%s13177_s7 + $0x2a4] ss:$24 sps:$4 sm:$0xff]  }
 0x47c   : > { %v9980_v41 = vld [vmem:[%s13177_s7 + $0x2a0] ss:$24 sps:$4 sm:$0xff]  }
 0x47d   : > { %v5927_v15 = vpack.c.bf16 %v5926_v40, %v5926_v40  ;;  %v9985_v40 = vld [vmem:[%s13177_s7 + $0x2ac] ss:$24 sps:$4 sm:$0xff]  }
 0x47f   : > { %8402 = vmatmul.mubr.msk.bf16.vlgmr.msra.gmra.mrb[24].mxu1 %vm5802_vm1, %v5927_v15  ;;  %8403 = vmatmul.mubr.msk.bf16.vlgmr.msra.gmra.mrb[32].mxu0 %vm5802_vm1, %v5927_v15  ;;  %v9991_v15 = vld [vmem:[%s13177_s7 + $0x2dc] ss:$24 sps:$4 sm:$0xff]  }
 0x480   : > { %7324 = vmatpush1.bf16.msra.mxu1 %v9896_v42  ;;  %7406 = vmatpush1.bf16.msra.mxu0 %v9899_v27  ;;  %v9983_v42 = vld [vmem:[%s13177_s7 + $0x2a8] ss:$24 sps:$4 sm:$0xff]   ;;  %v9988_v27 = vld [vmem:[%s13177_s7 + $0x2d4] ss:$24 sps:$4 sm:$0xff]  }
 0x481   : > { %7325 = vmatprep.subr.bf16.mxu1 %v9904_v19  ;;  %7407 = vmatprep.subr.bf16.mxu0 %v9907_v44  ;;  %v9986_v19 = vld [vmem:[%s13177_s7 + $0x2d0] ss:$24 sps:$4 sm:$0xff]  }
 0x482   : > { %v9989_v44 = vld [vmem:[%s13177_s7 + $0x2d8] ss:$24 sps:$4 sm:$0xff]  }
 0x484   : > { %7326 = vmatpush1.bf16.msra.mxu1 %v9902_v53  ;;  %7408 = vmatpush1.bf16.msra.mxu0 %v9905_v56  ;;  %v9994_v53 = vld [vmem:[%s13177_s7 + $0x304] ss:$24 sps:$4 sm:$0xff]  }
 0x485   : > { %7327 = vmatprep.subr.bf16.mxu1 %v9910_v45  ;;  %7409 = vmatprep.subr.bf16.mxu0 %v9913_v46  ;;  %v9997_v56 = vld [vmem:[%s13177_s7 + $0x30c] ss:$24 sps:$4 sm:$0xff]   ;;  %v12742_v45 = vld [vmem:[%s13176_s6] sm:$0xf] }
 0x486   : > { %v5949_v46 = vrot.slane %v12742_v45, %v12428_v33 }
 0x488   : > { %7328 = vmatpush1.bf16.msra.mxu1 %v9908_v6  ;;  %7410 = vmatpush1.bf16.msra.mxu0 %v9911_v47  ;;  %v5953_v6 = vrot.slane %v12742_v45, %v12420_v32  ;;  %v5961_v47 = vrot.slane %v12742_v45, %v12463_v1 }
 0x489   : > { %7329 = vmatprep.subr.bf16.mxu1 %v9916_v52  ;;  %7411 = vmatprep.subr.bf16.mxu0 %v9919_v49 }
 0x48c   : > { %7330 = vmatpush1.bf16.msra.mxu1 %v9914_v54  ;;  %7412 = vmatpush1.bf16.msra.mxu0 %v9917_v55 }
 0x48d   : > { %7331 = vmatprep.subr.bf16.mxu1 %v9922_v58  ;;  %7413 = vmatprep.subr.bf16.mxu0 %v9925_v26 }
 0x490   : > { %7332 = vmatpush1.bf16.msra.mxu1 %v9920_v59  ;;  %7414 = vmatpush1.bf16.msra.mxu0 %v9923_v43 }
 0x491   : > { %7333 = vmatprep.subr.bf16.mxu1 %v9928_v60  ;;  %7415 = vmatprep.subr.bf16.mxu0 %v9931_v48 }
 0x494   : > { %7334 = vmatpush1.bf16.msra.mxu1 %v9926_v31  ;;  %7416 = vmatpush1.bf16.msra.mxu0 %v9929_v62 }
 0x495   : > { %7335 = vmatprep.subr.bf16.mxu1 %v9934_v63  ;;  %7417 = vmatprep.subr.bf16.mxu0 %v9937_v38 }
 0x498   : > { %7336 = vmatpush1.bf16.msra.mxu1 %v9932_v61  ;;  %7418 = vmatpush1.bf16.msra.mxu0 %v9935_v39  ;;  %v9992_v39 = vld [vmem:[%s13177_s7 + $0x300] ss:$24 sps:$4 sm:$0xff]  }
 0x499   : > { %7337 = vmatprep.subr.bf16.mxu1 %v9940_v2  ;;  %7419 = vmatprep.subr.bf16.mxu0 %v9943_v3  ;;  %v9995_v2 = vld [vmem:[%s13177_s7 + $0x308] ss:$24 sps:$4 sm:$0xff]  }
 0x49c   : > { %7338 = vmatpush1.bf16.msra.mxu1 %v9938_v4  ;;  %7420 = vmatpush1.bf16.msra.mxu0 %v9941_v5  ;;  %v10000_v4 = vld [vmem:[%s13177_s7 + $0x334] ss:$24 sps:$4 sm:$0xff]  }
 0x49d   : > { %7339 = vmatprep.subr.bf16.mxu1 %v9946_v9  ;;  %7421 = vmatprep.subr.bf16.mxu0 %v9949_v10  ;;  %v10003_v5 = vld [vmem:[%s13177_s7 + $0x33c] ss:$24 sps:$4 sm:$0xff]   ;;  %v9998_v10 = vld [vmem:[%s13177_s7 + $0x330] ss:$24 sps:$4 sm:$0xff]  }
 0x4a0   : > { %7340 = vmatpush1.bf16.msra.mxu1 %v9944_v12  ;;  %7422 = vmatpush1.bf16.msra.mxu0 %v9947_v13  ;;  %v10001_v12 = vld [vmem:[%s13177_s7 + $0x338] ss:$24 sps:$4 sm:$0xff]   ;;  %v10006_v13 = vld [vmem:[%s13177_s7 + $0x364] ss:$24 sps:$4 sm:$0xff]  }
 0x4a1   : > { %7341 = vmatprep.subr.bf16.mxu1 %v9952_v14  ;;  %7423 = vmatprep.subr.bf16.mxu0 %v9955_v57  ;;  %v10009_v14 = vld [vmem:[%s13177_s7 + $0x36c] ss:$24 sps:$4 sm:$0xff]   ;;  %v10004_v57 = vld [vmem:[%s13177_s7 + $0x360] ss:$24 sps:$4 sm:$0xff]  }
 0x4a4   : > { %7342 = vmatpush1.bf16.msra.mxu1 %v9950_v7  ;;  %7424 = vmatpush1.bf16.msra.mxu0 %v9953_v17  ;;  %v10007_v7 = vld [vmem:[%s13177_s7 + $0x368] ss:$24 sps:$4 sm:$0xff]   ;;  %v10012_v17 = vld [vmem:[%s13177_s7 + $0x394] ss:$24 sps:$4 sm:$0xff]  }
 0x4a5   : > { %7343 = vmatprep.subr.bf16.mxu1 %v9958_v36  ;;  %7425 = vmatprep.subr.bf16.mxu0 %v9961_v18  ;;  %v10015_v36 = vld [vmem:[%s13177_s7 + $0x39c] ss:$24 sps:$4 sm:$0xff]   ;;  %v10010_v18 = vld [vmem:[%s13177_s7 + $0x390] ss:$24 sps:$4 sm:$0xff]  }
 0x4a8   : > { %7344 = vmatpush1.bf16.msra.mxu1 %v9956_v20  ;;  %7426 = vmatpush1.bf16.msra.mxu0 %v9959_v22  ;;  %v10013_v20 = vld [vmem:[%s13177_s7 + $0x398] ss:$24 sps:$4 sm:$0xff]   ;;  %v10018_v22 = vld [vmem:[%s13177_s7 + $0x3c4] ss:$24 sps:$4 sm:$0xff]  }
 0x4a9   : > { %7345 = vmatprep.subr.bf16.mxu1 %v9964_v21  ;;  %7427 = vmatprep.subr.bf16.mxu0 %v9967_v23  ;;  %v10021_v21 = vld [vmem:[%s13177_s7 + $0x3cc] ss:$24 sps:$4 sm:$0xff]   ;;  %v10016_v23 = vld [vmem:[%s13177_s7 + $0x3c0] ss:$24 sps:$4 sm:$0xff]  }
 0x4ac   : > { %7346 = vmatpush1.bf16.msra.mxu1 %v9962_v50  ;;  %7428 = vmatpush1.bf16.msra.mxu0 %v9965_v24  ;;  %v10019_v50 = vld [vmem:[%s13177_s7 + $0x3c8] ss:$24 sps:$4 sm:$0xff]   ;;  %v10024_v24 = vld [vmem:[%s13177_s7 + $0x3f4] ss:$24 sps:$4 sm:$0xff]  }
 0x4ad   : > { %7347 = vmatprep.subr.bf16.mxu1 %v9970_v11  ;;  %7429 = vmatprep.subr.bf16.mxu0 %v9973_v25  ;;  %v10027_v11 = vld [vmem:[%s13177_s7 + $0x3fc] ss:$24 sps:$4 sm:$0xff]   ;;  %v10022_v25 = vld [vmem:[%s13177_s7 + $0x3f0] ss:$24 sps:$4 sm:$0xff]  }
 0x4b0   : > { %7348 = vmatpush1.bf16.msra.mxu1 %v9968_v29  ;;  %7430 = vmatpush1.bf16.msra.mxu0 %v9971_v30  ;;  %v10025_v29 = vld [vmem:[%s13177_s7 + $0x3f8] ss:$24 sps:$4 sm:$0xff]   ;;  %v10030_v30 = vld [vmem:[%s13177_s7 + $0x424] ss:$24 sps:$4 sm:$0xff]  }
 0x4b1   : > { %7349 = vmatprep.subr.bf16.mxu1 %v9976_v16  ;;  %7431 = vmatprep.subr.bf16.mxu0 %v9979_v34  ;;  %v10033_v16 = vld [vmem:[%s13177_s7 + $0x42c] ss:$24 sps:$4 sm:$0xff]   ;;  %v10028_v34 = vld [vmem:[%s13177_s7 + $0x420] ss:$24 sps:$4 sm:$0xff]  }
 0x4b4   : > { %7350 = vmatpush1.bf16.msra.mxu1 %v9974_v8  ;;  %7432 = vmatpush1.bf16.msra.mxu0 %v9977_v35  ;;  %v10031_v8 = vld [vmem:[%s13177_s7 + $0x428] ss:$24 sps:$4 sm:$0xff]   ;;  %v10036_v35 = vld [vmem:[%s13177_s7 + $0x454] ss:$24 sps:$4 sm:$0xff]  }
 0x4b5   : > { %7351 = vmatprep.subr.bf16.mxu1 %v9982_v37  ;;  %7433 = vmatprep.subr.bf16.mxu0 %v9985_v40  ;;  %v10039_v37 = vld [vmem:[%s13177_s7 + $0x45c] ss:$24 sps:$4 sm:$0xff]   ;;  %v10034_v40 = vld [vmem:[%s13177_s7 + $0x450] ss:$24 sps:$4 sm:$0xff]  }
 0x4b8   : > { %7352 = vmatpush1.bf16.msra.mxu1 %v9980_v41  ;;  %7434 = vmatpush1.bf16.msra.mxu0 %v9983_v42  ;;  %v10037_v41 = vld [vmem:[%s13177_s7 + $0x458] ss:$24 sps:$4 sm:$0xff]   ;;  %v10042_v42 = vld [vmem:[%s13177_s7 + $0x484] ss:$24 sps:$4 sm:$0xff]  }
 0x4b9   : > { %7353 = vmatprep.subr.bf16.mxu1 %v9988_v27  ;;  %7435 = vmatprep.subr.bf16.mxu0 %v9991_v15  ;;  %v10045_v27 = vld [vmem:[%s13177_s7 + $0x48c] ss:$24 sps:$4 sm:$0xff]   ;;  %v10040_v15 = vld [vmem:[%s13177_s7 + $0x480] ss:$24 sps:$4 sm:$0xff]  }
 0x4bc   : > { %7354 = vmatpush1.bf16.msra.mxu1 %v9986_v19  ;;  %7436 = vmatpush1.bf16.msra.mxu0 %v9989_v44  ;;  %v10043_v19 = vld [vmem:[%s13177_s7 + $0x488] ss:$24 sps:$4 sm:$0xff]   ;;  %v10048_v44 = vld [vmem:[%s13177_s7 + $0x4b4] ss:$24 sps:$4 sm:$0xff]  }
 0x4bd   : > { %7364 = vmatprep.subr.bf16.mxu1 %v9994_v53  ;;  %7446 = vmatprep.subr.bf16.mxu0 %v9997_v56  ;;  %v10051_v53 = vld [vmem:[%s13177_s7 + $0x4bc] ss:$24 sps:$4 sm:$0xff]   ;;  %v10046_v56 = vld [vmem:[%s13177_s7 + $0x4b0] ss:$24 sps:$4 sm:$0xff]  }
 0x552   : > { %v6083_v52 = vpop.f32.mrb[24].mxu1  ;;  %v12750_v49 = vpop.f32.mrb[32].mxu0 }
 0x553   : > { %v6084_v54 = vadd.f32 %v6083_v52, %v5949_v46  ;;  %v6085_v55 = vpop.f32.mrb[25].mxu1  ;;  %v6126_v58 = vpop.f32.mrb[33].mxu0  ;;  %v10049_v46 = vld [vmem:[%s13177_s7 + $0x4b8] ss:$24 sps:$4 sm:$0xff]  }
 0x554   : > { %v6086_v26 = vadd.f32 %v6085_v55, %v5953_v6  ;;  %v6127_v59 = vadd.f32 %v6126_v58, %v5961_v47  ;;  %v6087_v43 = vpop.f32.mrb[26].mxu1  ;;  %v6128_v60 = vpop.f32.mrb[34].mxu0  ;;  %v10054_v6 = vld [vmem:[%s13177_s7 + $0x4e4] ss:$24 sps:$4 sm:$0xff]   ;;  %v10052_v52 = vld [vmem:[%s13177_s7 + $0x4e0] ss:$24 sps:$4 sm:$0xff]  }
 0x555   : > { %v6131_v48 = vmax.f32 %v6084_v54, 0.0  ;;  %v6088_v31 = vpop.f32.mrb[27].mxu1  ;;  %v6129_v62 = vpop.f32.mrb[35].mxu0  ;;  %v10057_v47 = vld [vmem:[%s13177_s7 + $0x4ec] ss:$24 sps:$4 sm:$0xff]  }
 0x556   : > { %v6132_v63 = vmax.f32 %v6086_v26, 0.0  ;;  %v6134_v38 = vmax.f32 %v6127_v59, 0.0  ;;  %v10055_v54 = vld [vmem:[%s13177_s7 + $0x4e8] ss:$24 sps:$4 sm:$0xff]   ;;  %v10060_v55 = vld [vmem:[%s13177_s7 + $0x514] ss:$24 sps:$4 sm:$0xff]  }
 0x557   : > { %v12760_v3 = vpack.c.bf16 %v6131_v48, %v6131_v48  ;;  %v10063_v58 = vld [vmem:[%s13177_s7 + $0x51c] ss:$24 sps:$4 sm:$0xff]   ;;  %v10058_v26 = vld [vmem:[%s13177_s7 + $0x510] ss:$24 sps:$4 sm:$0xff]   ;;  %v10069_v60 = vld [vmem:[%s13177_s7 + $0x54c] ss:$24 sps:$4 sm:$0xff]  }
 0x558   : > { %v12752_v61 = vpack.c.bf16 %v6132_v63, %v6132_v63  ;;  %v12770_v9 = vpack.c.bf16 %v6134_v38, %v6134_v38  ;;  %v10061_v59 = vld [vmem:[%s13177_s7 + $0x518] ss:$24 sps:$4 sm:$0xff]   ;;  %v10066_v43 = vld [vmem:[%s13177_s7 + $0x544] ss:$24 sps:$4 sm:$0xff]   ;;  %v10067_v31 = vld [vmem:[%s13177_s7 + $0x548] ss:$24 sps:$4 sm:$0xff]  }
 0x559   : > { %v10064_v48 = vld [vmem:[%s13177_s7 + $0x540] ss:$24 sps:$4 sm:$0xff]   ;;  %v10072_v62 = vld [vmem:[%s13177_s7 + $0x574] ss:$24 sps:$4 sm:$0xff]   ;;  %v10070_v38 = vld [vmem:[%s13177_s7 + $0x570] ss:$24 sps:$4 sm:$0xff]  }
 0x55a   : > { %7355 = vmatprep.mubr.bf16.mxu1 %v12752_v61  ;;  %7437 = vmatprep.mubr.bf16.mxu0 %v12752_v61  ;;  %v10075_v63 = vld [vmem:[%s13177_s7 + $0x57c] ss:$24 sps:$4 sm:$0xff]  }
 0x55b   : > { %7356 = vmatmul.mubr.bf16.vlgmr.msra.gmra.mrb[28].mxu1 %v12760_v3  ;;  %7438 = vmatmul.mubr.bf16.vlgmr.msra.gmra.mrb[36].mxu0 %v12760_v3 }
 0x55c   : > { %7365 = vmatpush1.bf16.msra.mxu1 %v9992_v39  ;;  %7447 = vmatpush1.bf16.msra.mxu0 %v9995_v2  ;;  %v10073_v39 = vld [vmem:[%s13177_s7 + $0x578] ss:$24 sps:$4 sm:$0xff]   ;;  %v5957_v2 = vrot.slane %v12742_v45, %v12460_v0  ;;  %v10079_v45 = vld [vmem:[%s13177_s7 + $0x5a8] ss:$24 sps:$4 sm:$0xff]  }
 0x55d   : > { %7396 = vmatprep.mubr.bf16.mxu1 %v12770_v9  ;;  %7478 = vmatprep.mubr.bf16.mxu0 %v12770_v9 }
 0x55e   : > { %7366 = vmatprep.subr.bf16.mxu1 %v10000_v4  ;;  %7448 = vmatprep.subr.bf16.mxu0 %v10003_v5  ;;  %v10078_v4 = vld [vmem:[%s13177_s7 + $0x5a4] ss:$24 sps:$4 sm:$0xff]  }
 0x55f   : > { %v10081_v5 = vld [vmem:[%s13177_s7 + $0x5ac] ss:$24 sps:$4 sm:$0xff]  }
 0x560   : > { %7367 = vmatpush1.bf16.msra.mxu1 %v9998_v10  ;;  %7449 = vmatpush1.bf16.msra.mxu0 %v10001_v12  ;;  %v10076_v10 = vld [vmem:[%s13177_s7 + $0x5a0] ss:$24 sps:$4 sm:$0xff]   ;;  %v6125_v12 = vadd.f32 %v12750_v49, %v5957_v2  ;;  %v10159_v2 = vld [vmem:[%s13177_s7 + $0x464] ss:$24 sps:$4 sm:$0xff]  }
 0x561   : > { %7368 = vmatprep.subr.bf16.mxu1 %v10006_v13  ;;  %7450 = vmatprep.subr.bf16.mxu0 %v10009_v14  ;;  %v10084_v13 = vld [vmem:[%s13177_s7 + $0x5d4] ss:$24 sps:$4 sm:$0xff]   ;;  %v10085_v49 = vld [vmem:[%s13177_s7 + $0x5d8] ss:$24 sps:$4 sm:$0xff]  }
 0x562   : > { %v10087_v14 = vld [vmem:[%s13177_s7 + $0x5dc] ss:$24 sps:$4 sm:$0xff]  }
 0x564   : > { %7369 = vmatpush1.bf16.msra.mxu1 %v10004_v57  ;;  %7451 = vmatpush1.bf16.msra.mxu0 %v10007_v7  ;;  %v10082_v57 = vld [vmem:[%s13177_s7 + $0x5d0] ss:$24 sps:$4 sm:$0xff]   ;;  %v6133_v7 = vmax.f32 %v6125_v12, 0.0  ;;  %v10163_v12 = vld [vmem:[%s13177_s7 + $0x4c0] ss:$24 sps:$4 sm:$0xff]  }
 0x565   : > { %7370 = vmatprep.subr.bf16.mxu1 %v10012_v17  ;;  %7452 = vmatprep.subr.bf16.mxu0 %v10015_v36  ;;  %v10090_v17 = vld [vmem:[%s13177_s7 + $0x14] ss:$24 sps:$4 sm:$0xff]   ;;  %v10088_v36 = vld [vmem:[%s13177_s7 + $0x10] ss:$24 sps:$4 sm:$0xff]  }
 0x568   : > { %7371 = vmatpush1.bf16.msra.mxu1 %v10010_v18  ;;  %7453 = vmatpush1.bf16.msra.mxu0 %v10013_v20  ;;  %v12959_v18 = vpack.c.bf16 %v6133_v7, %v6133_v7  ;;  %v10093_v20 = vld [vmem:[%s13177_s7 + $0x44] ss:$24 sps:$4 sm:$0xff]   ;;  %v10174_v7 = vld [vmem:[%s13177_s7 + $0x554] ss:$24 sps:$4 sm:$0xff]  }
 0x569   : > { %7372 = vmatprep.subr.bf16.mxu1 %v10018_v22  ;;  %7454 = vmatprep.subr.bf16.mxu0 %v10021_v21  ;;  %v10091_v22 = vld [vmem:[%s13177_s7 + $0x40] ss:$24 sps:$4 sm:$0xff]   ;;  %v10096_v21 = vld [vmem:[%s13177_s7 + $0x74] ss:$24 sps:$4 sm:$0xff]  }
 0x56c   : > { %7373 = vmatpush1.bf16.msra.mxu1 %v10016_v23  ;;  %7455 = vmatpush1.bf16.msra.mxu0 %v10019_v50  ;;  %v10094_v23 = vld [vmem:[%s13177_s7 + $0x70] ss:$24 sps:$4 sm:$0xff]   ;;  %v10099_v50 = vld [vmem:[%s13177_s7 + $0xa4] ss:$24 sps:$4 sm:$0xff]  }
 0x56d   : > { %7374 = vmatprep.subr.bf16.mxu1 %v10024_v24  ;;  %7456 = vmatprep.subr.bf16.mxu0 %v10027_v11  ;;  %v10102_v24 = vld [vmem:[%s13177_s7 + $0xd4] ss:$24 sps:$4 sm:$0xff]   ;;  %v10100_v11 = vld [vmem:[%s13177_s7 + $0xd0] ss:$24 sps:$4 sm:$0xff]  }
 0x570   : > { %7375 = vmatpush1.bf16.msra.mxu1 %v10022_v25  ;;  %7457 = vmatpush1.bf16.msra.mxu0 %v10025_v29  ;;  %v10105_v25 = vld [vmem:[%s13177_s7 + $0x104] ss:$24 sps:$4 sm:$0xff]   ;;  %v10103_v29 = vld [vmem:[%s13177_s7 + $0x100] ss:$24 sps:$4 sm:$0xff]  }
 0x571   : > { %7376 = vmatprep.subr.bf16.mxu1 %v10030_v30  ;;  %7458 = vmatprep.subr.bf16.mxu0 %v10033_v16  ;;  %v10108_v30 = vld [vmem:[%s13177_s7 + $0x134] ss:$24 sps:$4 sm:$0xff]   ;;  %v10106_v16 = vld [vmem:[%s13177_s7 + $0x130] ss:$24 sps:$4 sm:$0xff]  }
 0x574   : > { %7377 = vmatpush1.bf16.msra.mxu1 %v10028_v34  ;;  %7459 = vmatpush1.bf16.msra.mxu0 %v10031_v8  ;;  %v10111_v34 = vld [vmem:[%s13177_s7 + $0x164] ss:$24 sps:$4 sm:$0xff]   ;;  %v10109_v8 = vld [vmem:[%s13177_s7 + $0x160] ss:$24 sps:$4 sm:$0xff]  }
 0x575   : > { %7378 = vmatprep.subr.bf16.mxu1 %v10036_v35  ;;  %7460 = vmatprep.subr.bf16.mxu0 %v10039_v37  ;;  %v10114_v35 = vld [vmem:[%s13177_s7 + $0x194] ss:$24 sps:$4 sm:$0xff]   ;;  %v10112_v37 = vld [vmem:[%s13177_s7 + $0x190] ss:$24 sps:$4 sm:$0xff]  }
 0x578   : > { %7379 = vmatpush1.bf16.msra.mxu1 %v10034_v40  ;;  %7461 = vmatpush1.bf16.msra.mxu0 %v10037_v41  ;;  %v10117_v40 = vld [vmem:[%s13177_s7 + $0x1c4] ss:$24 sps:$4 sm:$0xff]   ;;  %v10115_v41 = vld [vmem:[%s13177_s7 + $0x1c0] ss:$24 sps:$4 sm:$0xff]  }
 0x579   : > { %7380 = vmatprep.subr.bf16.mxu1 %v10042_v42  ;;  %7462 = vmatprep.subr.bf16.mxu0 %v10045_v27  ;;  %v10120_v42 = vld [vmem:[%s13177_s7 + $0x1f4] ss:$24 sps:$4 sm:$0xff]   ;;  %v10118_v27 = vld [vmem:[%s13177_s7 + $0x1f0] ss:$24 sps:$4 sm:$0xff]  }
 0x57c   : > { %7381 = vmatpush1.bf16.msra.mxu1 %v10040_v15  ;;  %7463 = vmatpush1.bf16.msra.mxu0 %v10043_v19  ;;  %v10123_v15 = vld [vmem:[%s13177_s7 + $0x224] ss:$24 sps:$4 sm:$0xff]   ;;  %v10121_v19 = vld [vmem:[%s13177_s7 + $0x220] ss:$24 sps:$4 sm:$0xff]  }
 0x57d   : > { %7382 = vmatprep.subr.bf16.mxu1 %v10048_v44  ;;  %7464 = vmatprep.subr.bf16.mxu0 %v10051_v53  ;;  %v10126_v44 = vld [vmem:[%s13177_s7 + $0x254] ss:$24 sps:$4 sm:$0xff]   ;;  %v10124_v53 = vld [vmem:[%s13177_s7 + $0x250] ss:$24 sps:$4 sm:$0xff]  }
 0x580   : > { %7383 = vmatpush1.bf16.msra.mxu1 %v10046_v56  ;;  %7465 = vmatpush1.bf16.msra.mxu0 %v10049_v46  ;;  %v10129_v56 = vld [vmem:[%s13177_s7 + $0x284] ss:$24 sps:$4 sm:$0xff]   ;;  %v10127_v46 = vld [vmem:[%s13177_s7 + $0x280] ss:$24 sps:$4 sm:$0xff]  }
 0x581   : > { %7384 = vmatprep.subr.bf16.mxu1 %v10054_v6  ;;  %7466 = vmatprep.subr.bf16.mxu0 %v10057_v47  ;;  %v10132_v6 = vld [vmem:[%s13177_s7 + $0x2b4] ss:$24 sps:$4 sm:$0xff]   ;;  %v10130_v47 = vld [vmem:[%s13177_s7 + $0x2b0] ss:$24 sps:$4 sm:$0xff]  }
 0x584   : > { %7385 = vmatpush1.bf16.msra.mxu1 %v10052_v52  ;;  %7467 = vmatpush1.bf16.msra.mxu0 %v10055_v54  ;;  %v10135_v52 = vld [vmem:[%s13177_s7 + $0x2e4] ss:$24 sps:$4 sm:$0xff]   ;;  %v10133_v54 = vld [vmem:[%s13177_s7 + $0x2e0] ss:$24 sps:$4 sm:$0xff]  }
 0x585   : > { %7386 = vmatprep.subr.bf16.mxu1 %v10060_v55  ;;  %7468 = vmatprep.subr.bf16.mxu0 %v10063_v58  ;;  %v10138_v55 = vld [vmem:[%s13177_s7 + $0x314] ss:$24 sps:$4 sm:$0xff]   ;;  %v10136_v58 = vld [vmem:[%s13177_s7 + $0x310] ss:$24 sps:$4 sm:$0xff]  }
 0x588   : > { %7387 = vmatpush1.bf16.msra.mxu1 %v10058_v26  ;;  %7469 = vmatpush1.bf16.msra.mxu0 %v10061_v59  ;;  %v10141_v26 = vld [vmem:[%s13177_s7 + $0x344] ss:$24 sps:$4 sm:$0xff]   ;;  %v10139_v59 = vld [vmem:[%s13177_s7 + $0x340] ss:$24 sps:$4 sm:$0xff]  }
 0x589   : > { %7388 = vmatprep.subr.bf16.mxu1 %v10066_v43  ;;  %7470 = vmatprep.subr.bf16.mxu0 %v10069_v60  ;;  %v10144_v43 = vld [vmem:[%s13177_s7 + $0x374] ss:$24 sps:$4 sm:$0xff]   ;;  %v10142_v60 = vld [vmem:[%s13177_s7 + $0x370] ss:$24 sps:$4 sm:$0xff]  }
 0x58c   : > { %7389 = vmatpush1.bf16.msra.mxu1 %v10064_v48  ;;  %7471 = vmatpush1.bf16.msra.mxu0 %v10067_v31  ;;  %v10150_v48 = vld [vmem:[%s13177_s7 + $0x3d4] ss:$24 sps:$4 sm:$0xff]   ;;  %v10148_v31 = vld [vmem:[%s13177_s7 + $0x3d0] ss:$24 sps:$4 sm:$0xff]  }
 0x58d   : > { %7390 = vmatprep.subr.bf16.mxu1 %v10072_v62  ;;  %7472 = vmatprep.subr.bf16.mxu0 %v10075_v63  ;;  %v10153_v62 = vld [vmem:[%s13177_s7 + $0x404] ss:$24 sps:$4 sm:$0xff]   ;;  %v10151_v63 = vld [vmem:[%s13177_s7 + $0x400] ss:$24 sps:$4 sm:$0xff]  }
 0x590   : > { %7391 = vmatpush1.bf16.msra.mxu1 %v10070_v38  ;;  %7473 = vmatpush1.bf16.msra.mxu0 %v10073_v39  ;;  %v10156_v38 = vld [vmem:[%s13177_s7 + $0x434] ss:$24 sps:$4 sm:$0xff]   ;;  %v10154_v39 = vld [vmem:[%s13177_s7 + $0x430] ss:$24 sps:$4 sm:$0xff]  }
 0x591   : > { %7392 = vmatprep.subr.bf16.mxu1 %v10078_v4  ;;  %7474 = vmatprep.subr.bf16.mxu0 %v10081_v5  ;;  %v10157_v4 = vld [vmem:[%s13177_s7 + $0x460] ss:$24 sps:$4 sm:$0xff]   ;;  %v10162_v5 = vld [vmem:[%s13177_s7 + $0x494] ss:$24 sps:$4 sm:$0xff]  }
 0x594   : > { %7393 = vmatpush1.bf16.msra.mxu1 %v10076_v10  ;;  %7475 = vmatpush1.bf16.msra.mxu0 %v10079_v45  ;;  %v10160_v10 = vld [vmem:[%s13177_s7 + $0x490] ss:$24 sps:$4 sm:$0xff]   ;;  %v10165_v45 = vld [vmem:[%s13177_s7 + $0x4c4] ss:$24 sps:$4 sm:$0xff]  }
 0x595   : > { %7394 = vmatprep.subr.bf16.mxu1 %v10084_v13  ;;  %7476 = vmatprep.subr.bf16.mxu0 %v10087_v14  ;;  %v10168_v13 = vld [vmem:[%s13177_s7 + $0x4f4] ss:$24 sps:$4 sm:$0xff]   ;;  %v10166_v14 = vld [vmem:[%s13177_s7 + $0x4f0] ss:$24 sps:$4 sm:$0xff]  }
 0x598   : > { %7395 = vmatpush1.bf16.msra.mxu1 %v10082_v57  ;;  %7477 = vmatpush1.bf16.msra.mxu0 %v10085_v49  ;;  %v10171_v57 = vld [vmem:[%s13177_s7 + $0x524] ss:$24 sps:$4 sm:$0xff]   ;;  %v10169_v49 = vld [vmem:[%s13177_s7 + $0x520] ss:$24 sps:$4 sm:$0xff]  }
 0x599   : > { %7487 = vmatprep.subr.bf16.mxu1 %v10090_v17  ;;  %v10172_v17 = vld [vmem:[%s13177_s7 + $0x550] ss:$24 sps:$4 sm:$0xff]  }
 0x59b   : > { %7397 = vmatmul.mubr.bf16.vlgmr.msra.gmra.mrb[28].mxu1 %v12959_v18  ;;  %7479 = vmatmul.mubr.bf16.vlgmr.msra.gmra.mrb[36].mxu0 %v12959_v18 }
 0x59c   : > { %7488 = vmatpush1.bf16.msra.mxu1 %v10088_v36  ;;  %7519 = vmatprep.mubr.bf16.mxu1 %v12752_v61  ;;  %v10097_v61 = vld [vmem:[%s13177_s7 + $0xa0] ss:$24 sps:$4 sm:$0xff]   ;;  %v10177_v36 = vld [vmem:[%s13177_s7 + $0x584] ss:$24 sps:$4 sm:$0xff]  }
 0x59d   : > { %7489 = vmatprep.subr.bf16.mxu1 %v10093_v20  ;;  %v10175_v20 = vld [vmem:[%s13177_s7 + $0x580] ss:$24 sps:$4 sm:$0xff]  }
 0x5a0   : > { %7490 = vmatpush1.bf16.msra.mxu1 %v10091_v22  ;;  %v10180_v22 = vld [vmem:[%s13177_s7 + $0x5b4] ss:$24 sps:$4 sm:$0xff]  }
 0x5a1   : > { %7491 = vmatprep.subr.bf16.mxu1 %v10096_v21  ;;  %v10178_v21 = vld [vmem:[%s13177_s7 + $0x5b0] ss:$24 sps:$4 sm:$0xff]  }
 0x5a4   : > { %7492 = vmatpush1.bf16.msra.mxu1 %v10094_v23  ;;  %v10183_v23 = vld [vmem:[%s13177_s7 + $0x5e4] ss:$24 sps:$4 sm:$0xff]  }
 0x5a5   : > { %7493 = vmatprep.subr.bf16.mxu1 %v10099_v50  ;;  %v10181_v50 = vld [vmem:[%s13177_s7 + $0x5e0] ss:$24 sps:$4 sm:$0xff]  }
 0x5a8   : > { %7494 = vmatpush1.bf16.msra.mxu1 %v10097_v61  ;;  %v6331_v61 = vld [vmem:[%s13178_s8] sm:$0x3f] }
 0x5a9   : > { %7495 = vmatprep.subr.bf16.mxu1 %v10102_v24  ;;  %v6336_v24 = vrot.slane %v6331_v61, %v12428_v33 }
 0x5ac   : > { %7496 = vmatpush1.bf16.msra.mxu1 %v10100_v11  ;;  %v6344_v11 = vrot.slane %v6331_v61, %v12460_v0  ;;  %v6355_v0 = vsub.s32 5, %v12411_v28 }
 0x5ad   : > { %7497 = vmatprep.subr.bf16.mxu1 %v10105_v25 }
 0x5b0   : > { %7498 = vmatpush1.bf16.msra.mxu1 %v10103_v29 }
 0x5b1   : > { %7499 = vmatprep.subr.bf16.mxu1 %v10108_v30 }
 0x5b4   : > { %7500 = vmatpush1.bf16.msra.mxu1 %v10106_v16 }
 0x5b5   : > { %7501 = vmatprep.subr.bf16.mxu1 %v10111_v34  ;;  %v6340_v34 = vrot.slane %v6331_v61, %v12420_v32  ;;  %v6356_v32 = vrot.slane %v6331_v61, %v6355_v0 }
 0x5b8   : > { %7502 = vmatpush1.bf16.msra.mxu1 %v10109_v8 }
 0x5b9   : > { %7503 = vmatprep.subr.bf16.mxu1 %v10114_v35  ;;  %v6348_v35 = vrot.slane %v6331_v61, %v12463_v1 }
 0x5bc   : > { %7504 = vmatpush1.bf16.msra.mxu1 %v10112_v37 }
 0x5bd   : > { %7505 = vmatprep.subr.bf16.mxu1 %v10117_v40 }
 0x5c0   : > { %7506 = vmatpush1.bf16.msra.mxu1 %v10115_v41 }
 0x5c1   : > { %7507 = vmatprep.subr.bf16.mxu1 %v10120_v42 }
 0x5c4   : > { %7508 = vmatpush1.bf16.msra.mxu1 %v10118_v27 }
 0x5c5   : > { %7509 = vmatprep.subr.bf16.mxu1 %v10123_v15  ;;  %v6352_v15 = vrot.slane %v6331_v61, %v1130_v51 }
 0x5c8   : > { %7510 = vmatpush1.bf16.msra.mxu1 %v10121_v19 }
 0x5c9   : > { %7511 = vmatprep.subr.bf16.mxu1 %v10126_v44 }
 0x5cc   : > { %7512 = vmatpush1.bf16.msra.mxu1 %v10124_v53 }
 0x5cd   : > { %7513 = vmatprep.subr.bf16.mxu1 %v10129_v56 }
 0x5d0   : > { %7514 = vmatpush1.bf16.msra.mxu1 %v10127_v46 }
 0x5d1   : > { %7515 = vmatprep.subr.bf16.mxu1 %v10132_v6 }
 0x5d4   : > { %7516 = vmatpush1.bf16.msra.mxu1 %v10130_v47 }
 0x5d5   : > { %7517 = vmatprep.subr.bf16.mxu1 %v10135_v52 }
 0x5d8   : > { %7518 = vmatpush1.bf16.msra.mxu1 %v10133_v54 }
 0x5d9   : > { %7528 = vmatprep.subr.bf16.mxu1 %v10138_v55 }
 0x5db   : > { %7520 = vmatmul.mubr.bf16.vlgmr.msra.gmra.mrb[32].mxu1 %v12760_v3  ;;  %v10147_v3 = vld [vmem:[%s13177_s7 + $0x3a4] ss:$24 sps:$4 sm:$0xff]  }
 0x5dc   : > { %7529 = vmatpush1.bf16.msra.mxu1 %v10136_v58  ;;  %7560 = vmatprep.mubr.bf16.mxu1 %v12770_v9  ;;  %v10145_v9 = vld [vmem:[%s13177_s7 + $0x3a0] ss:$24 sps:$4 sm:$0xff]  }
 0x5dd   : > { %7530 = vmatprep.subr.bf16.mxu1 %v10141_v26 }
 0x5e0   : > { %7531 = vmatpush1.bf16.msra.mxu1 %v10139_v59 }
 0x5e1   : > { %7532 = vmatprep.subr.bf16.mxu1 %v10144_v43 }
 0x5e4   : > { %7533 = vmatpush1.bf16.msra.mxu1 %v10142_v60 }
 0x5e5   : > { %7534 = vmatprep.subr.bf16.mxu1 %v10147_v3 }
 0x5e8   : > { %7535 = vmatpush1.bf16.msra.mxu1 %v10145_v9 }
 0x5e9   : > { %7536 = vmatprep.subr.bf16.mxu1 %v10150_v48 }
 0x5ec   : > { %7537 = vmatpush1.bf16.msra.mxu1 %v10148_v31 }
 0x5ed   : > { %7538 = vmatprep.subr.bf16.mxu1 %v10153_v62 }
 0x5f0   : > { %7539 = vmatpush1.bf16.msra.mxu1 %v10151_v63 }
 0x5f1   : > { %7540 = vmatprep.subr.bf16.mxu1 %v10156_v38 }
 0x5f4   : > { %7541 = vmatpush1.bf16.msra.mxu1 %v10154_v39 }
 0x5f5   : > { %7542 = vmatprep.subr.bf16.mxu1 %v10159_v2 }
 0x5f8   : > { %7543 = vmatpush1.bf16.msra.mxu1 %v10157_v4 }
 0x5f9   : > { %7544 = vmatprep.subr.bf16.mxu1 %v10162_v5 }
 0x5fc   : > { %7545 = vmatpush1.bf16.msra.mxu1 %v10160_v10 }
 0x5fd   : > { %7546 = vmatprep.subr.bf16.mxu1 %v10165_v45 }
 0x600   : > { %7547 = vmatpush1.bf16.msra.mxu1 %v10163_v12 }
 0x601   : > { %7548 = vmatprep.subr.bf16.mxu1 %v10168_v13 }
 0x604   : > { %7549 = vmatpush1.bf16.msra.mxu1 %v10166_v14 }
 0x605   : > { %7550 = vmatprep.subr.bf16.mxu1 %v10171_v57 }
 0x608   : > { %7551 = vmatpush1.bf16.msra.mxu1 %v10169_v49 }
 0x609   : > { %7552 = vmatprep.subr.bf16.mxu1 %v10174_v7 }
 0x60c   : > { %7553 = vmatpush1.bf16.msra.mxu1 %v10172_v17 }
 0x60d   : > { %7554 = vmatprep.subr.bf16.mxu1 %v10177_v36 }
 0x610   : > { %7555 = vmatpush1.bf16.msra.mxu1 %v10175_v20 }
 0x611   : > { %7556 = vmatprep.subr.bf16.mxu1 %v10180_v22 }
 0x614   : > { %7557 = vmatpush1.bf16.msra.mxu1 %v10178_v21 }
 0x615   : > { %7558 = vmatprep.subr.bf16.mxu1 %v10183_v23 }
 0x618   : > { %7559 = vmatpush1.bf16.msra.mxu1 %v10181_v50 }
 0x61b   : > { %7561 = vmatmul.mubr.bf16.vlgmr.msra.gmra.mrb[32].mxu1 %v12959_v18 }
 0x66e   : > { %v7398_v25 = vpop.f32.mrb[28].mxu1  ;;  %v7480_v29 = vpop.f32.mrb[36].mxu0 }
 0x66f   : > { %v8842_v30 = vadd.f32 %v7398_v25, %v6336_v24  ;;  %v8844_v16 = vadd.f32 %v7480_v29, %v6344_v11  ;;  %v7400_v8 = vpop.f32.mrb[29].mxu1  ;;  %v7482_v37 = vpop.f32.mrb[37].mxu0 }
 0x670   : > { %v7402_v40 = vpop.f32.mrb[30].mxu1  ;;  %v7484_v18 = vpop.f32.mrb[38].mxu0  ;;  %v8843_v27 = vadd.f32 %v7400_v8, %v6340_v34  ;;  %v8845_v33 = vadd.f32 %v7482_v37, %v6348_v35 }
 0x671   : > { %v7485_v41 = vpop.f32.mrb[39].mxu0  ;;  %7589 = vmax.xlane.f32.xlu1 %v8844_v16  ;;  %v7403_v42 = vpop.f32.mrb[31].mxu1  ;;  %7569 = vmax.xlane.f32.xlu0 %v8842_v30 }
 0x675   : > { %7599 = vmax.xlane.f32.xlu1 %v8845_v33  ;;  %7579 = vmax.xlane.f32.xlu0 %v8843_v27 }
 0x6ee   : > { %v7562_v19 = vpop.f32.mrb[32].mxu1 }
 0x6ef   : > { %v8846_v44 = vadd.f32 %v7562_v19, %v6352_v15  ;;  %v7564_v1 = vpop.f32.mrb[33].mxu1 }
 0x6f0   : > { %v8847_v53 = vadd.f32 %v7564_v1, %v6356_v32  ;;  %v7566_v56 = vpop.f32.mrb[34].mxu1 }
 0x6f1   : > { %v7567_v46 = vpop.f32.mrb[35].mxu1  ;;  %7609 = vmax.xlane.f32.xlu0 %v8846_v44 }
 0x6f2   : > { %7619 = vmax.xlane.f32.xlu1 %v8847_v53 }
 0x6fe   : > { %v7590_v6 = vpop.xlane.xlu1 %7589  ;;  %v7570_v47 = vpop.xlane.xlu0 %7569 }
 0x6ff   : > { %v7591_v52 = vsub.f32 %v8844_v16, %v7590_v6  ;;  %v7571_v54 = vsub.f32 %v8842_v30, %v7570_v47 }
 0x701   : > { %v7572_v55 = vmul.f32 1.442695, %v7571_v54  ;;  %v7592_v59 = vmul.f32 1.442695, %v7591_v52 }
 0x702   : > { %v7600_v58 = vpop.xlane.xlu1 %7599  ;;  %v7580_v26 = vpop.xlane.xlu0 %7579 }
 0x703   : > { %v7581_v43 = vsub.f32 %v8843_v27, %v7580_v26  ;;  %10184 = vpow2.f32 %v7572_v55  ;;  %v7601_v28 = vsub.f32 %v8845_v33, %v7600_v58 }
 0x704   : > { %10186 = vpow2.f32 %v7592_v59 }
 0x705   : > { %v7582_v51 = vmul.f32 1.442695, %v7581_v43  ;;  %v7602_v60 = vmul.f32 1.442695, %v7601_v28 }
 0x707   : > { %10188 = vpow2.f32 %v7582_v51 }
 0x708   : > { %10190 = vpow2.f32 %v7602_v60 }
 0x70d   : > { %v10185_v3 = vpop.eup %10184 }
 0x70e   : > { %7574 = vadd.xlane.f32.xlu0 %v10185_v3  ;;  %v10187_v9 = vpop.eup %10186 }
 0x711   : > { %v10189_v48 = vpop.eup %10188 }
 0x712   : > { %7594 = vadd.xlane.f32.xlu0 %v10187_v9  ;;  %7584 = vadd.xlane.f32.xlu1 %v10189_v48  ;;  %v10191_v31 = vpop.eup %10190 }
 0x716   : > { %7604 = vadd.xlane.f32.xlu1 %v10191_v31 }
 0x77e   : > { %v7610_v62 = vpop.xlane.xlu0 %7609 }
 0x77f   : > { %v7611_v63 = vsub.f32 %v8846_v44, %v7610_v62  ;;  %v7620_v38 = vpop.xlane.xlu1 %7619 }
 0x780   : > { %v7621_v39 = vsub.f32 %v8847_v53, %v7620_v38 }
 0x781   : > { %v7612_v2 = vmul.f32 1.442695, %v7611_v63 }
 0x782   : > { %v7622_v4 = vmul.f32 1.442695, %v7621_v39 }
 0x783   : > { %10192 = vpow2.f32 %v7612_v2 }
 0x784   : > { %10194 = vpow2.f32 %v7622_v4 }
 0x78d   : > { %v10193_v5 = vpop.eup %10192 }
 0x78e   : > { %v10195_v10 = vpop.eup %10194  ;;  %7614 = vadd.xlane.f32.xlu0 %v10193_v5 }
 0x78f   : > { %7624 = vadd.xlane.f32.xlu1 %v10195_v10 }
 0x79b   : > { %v7575_v45 = vpop.xlane.xlu0 %7574 }
 0x79c   : > { %10196 = vrcp.f32 %v7575_v45 }
 0x79f   : > { %v7585_v12 = vpop.xlane.xlu1 %7584  ;;  %v7595_v13 = vpop.xlane.xlu0 %7594 }
 0x7a0   : > { %10198 = vrcp.f32 %v7585_v12 }
 0x7a1   : > { %10200 = vrcp.f32 %v7595_v13 }
 0x7a3   : > { %v7605_v14 = vpop.xlane.xlu1 %7604 }
 0x7a4   : > { %10202 = vrcp.f32 %v7605_v14 }
 0x7a6   : > { %v10197_v57 = vpop.eup %10196 }
 0x7a7   : > { %v7577_v49 = vmul.f32 %v10197_v57, %v10185_v3 }
 0x7a9   : > { %7578 = vst [vmem:[%s332_s27] sm:$0xff] %v7577_v49 }
 0x7aa   : > { %v10199_v7 = vpop.eup %10198 }
 0x7ab   : > { %v10201_v17 = vpop.eup %10200  ;;  %v7587_v36 = vmul.f32 %v10199_v7, %v10189_v48 }
 0x7ac   : > { %v7597_v20 = vmul.f32 %v10201_v17, %v10187_v9 }
 0x7ad   : > { %7588 = vst [vmem:[%s332_s27 + $0x8] sm:$0xff] %v7587_v36 }
 0x7ae   : > { %v10203_v22 = vpop.eup %10202  ;;  %7598 = vst [vmem:[%s332_s27 + $0x10] sm:$0xff] %v7597_v20 }
 0x7af   : > { %v7607_v21 = vmul.f32 %v10203_v22, %v10191_v31 }
 0x7b1   : > { %7608 = vst [vmem:[%s332_s27 + $0x18] sm:$0xff] %v7607_v21 }
 0x81b   : > { %v7615_v23 = vpop.xlane.xlu0 %7614 }
 0x81c   : > { %10204 = vrcp.f32 %v7615_v23  ;;  %v7625_v50 = vpop.xlane.xlu1 %7624 }
 0x81d   : > { %10206 = vrcp.f32 %v7625_v50 }
 0x826   : > { %v10205_v61 = vpop.eup %10204 }
 0x827   : > { %v10207_v24 = vpop.eup %10206  ;;  %v7617_v11 = vmul.f32 %v10205_v61, %v10193_v5 }
 0x828   : > { %v7627_v25 = vmul.f32 %v10207_v24, %v10195_v10 }
 0x829   : > { %7618 = vst [vmem:[%s332_s27 + $0x20] sm:$0xff] %v7617_v11 }
 0x82a   : > { %7628 = vst [vmem:[%s332_s27 + $0x28] sm:$0xff] %v7627_v25 }
 0x82b PF: > { %s19_s30 = sadd.s32 1, %s10214_s30  }
 0x82c   : > { %p16_p4 = scmp.ge.s32.totalorder %s19_s30, 4  }
 0x82e   :  { %18 = sbr.rel (!%p16_p4) target bundleno = 1 (0x1), region = 86 }

</bundles_post_ra>
